<compile_context>
chip_gen: v6e
topology: v6e:2x2x1
jax: 0.10.0
libtpu: 0.0.40
codegen_flags: <defaults>
</compile_context>

<pallas_src>
import jax
import jax.numpy as jnp
from jax.experimental import pallas as pl
from jax.experimental.pallas import tpu as pltpu


def _round_up(x, m):
    return (x + m - 1) // m * m


def _padded_bytes(shape, itemsize):
    """VMEM footprint including Mosaic lane/sublane layout padding."""
    shape = tuple(shape)
    if len(shape) == 1:
        shape = (1,) + shape
    sub = 8 * (4 // itemsize)                       # sublane tile: 8 (f32) / 16 (bf16)
    lead = 1
    for d in shape[:-2]:
        lead *= d
    return lead * _round_up(shape[-2], sub) * _round_up(shape[-1], 128) * itemsize


def _vmem_limit_bytes():
    """Generation-aware scoped-VMEM limit (v5e/v6e: 128 MiB, v7x: 64 MiB per TC)."""
    try:
        cap = int(pltpu.get_tpu_info().vmem_capacity_bytes)
    except Exception:                               # conservative fallback
        cap = 64 * 1024 * 1024
    return max(16 * 1024 * 1024, min(int(cap * 0.7), 128 * 1024 * 1024))


def _pick_hc(h_tile, w):
    """conv2 M-chunk height: keep the (hc*W, 128) f32 accumulator vreg-friendly."""
    for hc in range(h_tile, 1, -2):
        if h_tile % hc == 0 and hc * w <= 512:
            return hc
    return 2


def _pick_h_tile(h, w, cin, c1p, c2p, cout, budget):
    """Largest even divisor of H whose layout-padded working set fits `budget`.
    Prefers >= 2 bands so the band axis can still be megacore-sharded at N=1."""
    cands = [d for d in range(h, 1, -1) if h % d == 0 and d % 2 == 0]

    def est(ht):
        hc = _pick_hc(ht, w)
        b = 0
        b += 2 * _padded_bytes((ht, w + 2, cin), 2)           # main input band (x2 pipeline bufs)
        b += 2 * _padded_bytes((4, w + 2, cin), 2)            # bottom-halo slab block
        b += 2 * _padded_bytes((3, 3 * cin, c1p), 2)          # conv1 weights
        b += 2 * _padded_bytes((3, 3 * c1p, c2p), 2)          # conv2 weights
        b += 2 * _padded_bytes((1, c1p), 4) + 2 * _padded_bytes((1, c2p), 4)
        b += 2 * _padded_bytes((ht, w, cout), 4)              # maintained output block
        b += 2 * _padded_bytes((ht // 2, w // 2, cout), 4)    # reduced output block
        b += _padded_bytes((ht + 2, w + 2, c1p), 2)           # h1 band scratch
        # dominant transients: im2col concats + f32 accumulators
        b += _padded_bytes((ht + 2, w, 3 * cin), 2) + _padded_bytes(((ht + 2) * w, c1p), 4)
        b += _padded_bytes((hc, w, 3 * c1p), 2) + _padded_bytes((hc * w, c2p), 4)
        return b

    fit = [d for d in cands if est(d) <= budget]
    if not fit:
        return cands[-1]                                      # smallest even divisor
    multi = [d for d in fit if h // d >= 2]
    return (multi or fit)[0]                                  # lists are descending


def _prep_conv_params(w_oihw, b, k_pad, n_pad):
    """torch (Co,Ci,3,3) -> per-dh K-concatenated (3, 3*k_pad, n_pad) bf16 weights
    + (1, n_pad) f32 bias.  Padded K rows / N cols / bias entries are zero, which
    keeps the padded channels of the intermediate activation exactly zero."""
    co, ci, kh, kw = w_oihw.shape
    wt = jnp.transpose(w_oihw, (2, 3, 1, 0))                          # (3, 3, Ci, Co)
    wt = jnp.pad(wt, ((0, 0), (0, 0), (0, k_pad - ci), (0, n_pad - co)))
    wt = wt.reshape(kh, kw * k_pad, n_pad).astype(jnp.bfloat16)       # K idx = dw*k_pad + ci
    bp = jnp.pad(b.reshape(1, co), ((0, 0), (0, n_pad - co))).astype(jnp.float32)
    return wt, bp


# ---------------- fused kernel: conv3x3+ReLU -> conv3x3+ReLU -> 2x2 maxpool ----------------

def _make_down_block_kernel(h_tile, hc, w_img, cout):
    h1rows = h_tile + 2                     # conv1 rows produced per band (incl. 1-row halo/side)

    def conv_taps(get_tap, w_ref, rows_out, c):
        """3x3 conv as 3 MXU matmuls: per kernel-row dh the 3 column taps are
        lane-concatenated along K (K = 3*C), accumulated in f32."""
        acc = None
        for dh in range(3):
            part = jnp.concatenate([get_tap(dh, dw) for dw in range(3)], axis=-1)
            t = jnp.dot(part.reshape(rows_out * w_img, 3 * c), w_ref[dh],
                        preferred_element_type=jnp.float32)
            acc = t if acc is None else acc + t
        return acc                                            # (rows_out*W, Co) f32

    def kernel(xm_ref, xh_ref, w1_ref, w2_ref, b1_ref, b2_ref, o_ref, p_ref, h1b):
        cin = xm_ref.shape[-1]
        c1p = h1b.shape[-1]

        # ---- conv1 + ReLU for this band (stays in VMEM; 1 recomputed halo row / side) ----
        # band input rows = h_tile rows from the main block + 4 rows from the halo slab.
        xband = jnp.concatenate([xm_ref[...], xh_ref[...]], axis=0)   # (h_tile+4, W+2, Cin) bf16
        a1 = conv_taps(lambda dh, dw: xband[dh:dh + h1rows, dw:dw + w_img, :],
                       w1_ref, h1rows, cin)                           # (h1rows*W, C1p) f32
        h1 = jnp.maximum(a1 + b1_ref[...], 0.0)
        h1 = h1.reshape(h1rows, w_img, c1p).astype(h1b.dtype)

        # stash h1 with conv2's zero W-padding columns.
        zcol = jnp.zeros((h1rows, 1, c1p), h1b.dtype)
        h1b[:, pl.ds(0, 1), :] = zcol
        h1b[:, pl.ds(1, w_img), :] = h1
        h1b[:, pl.ds(w_img + 1, 1), :] = zcol

        # conv2's zero ROW padding: the halo row above the first band / below the last
        # band lies outside the image and must be zero, not conv1 of zero-padded input.
        @pl.when(pl.program_id(1) == 0)
        def _():
            h1b[pl.ds(0, 1), :, :] = jnp.zeros((1, w_img + 2, c1p), h1b.dtype)

        @pl.when(pl.program_id(1) == pl.num_programs(1) - 1)
        def _():
            h1b[pl.ds(h_tile + 1, 1), :, :] = jnp.zeros((1, w_img + 2, c1p), h1b.dtype)

        # ---- conv2 + bias + ReLU with fused 2x2 max-pool, chunked over rows ----
        for c0 in range(0, h_tile, hc):
            a2 = conv_taps(
                lambda dh, dw: h1b[pl.ds(c0 + dh, hc), pl.ds(dw, w_img), :],
                w2_ref, hc, c1p)                                      # (hc*W, C2p) f32
            y = jnp.maximum(a2 + b2_ref[...], 0.0)
            c2p = y.shape[-1]
            y = y.reshape(hc, w_img, c2p)
            # maintained output at true Cout (masked store, 1/16th the HBM bytes here)
            o_ref[pl.ds(c0, hc), :, :] = y[:, :, :cout].astype(o_ref.dtype)
            # fused MaxPool2d(2): H pairs then W pairs, from the 3-D view.
            y4 = y.reshape(hc // 2, 2, w_img, c2p)
            yh = jnp.maximum(y4[:, 0], y4[:, 1])
            y5 = yh.reshape(hc // 2, w_img // 2, 2, c2p)
            pooled = jnp.maximum(y5[:, :, 0, :], y5[:, :, 1, :])
            p_ref[pl.ds(c0 // 2, hc // 2), :, :] = pooled[:, :, :cout].astype(p_ref.dtype)

    return kernel


# ---------------- wrapper ----------------

def down_block_forward(x_nchw, params):
    """maintained = ReLU(conv3x3(ReLU(conv3x3(x)))); reduced = MaxPool2d(2)(maintained).
    NCHW in / NCHW out, matching the PyTorch DownBlock."""
    n, cin, h, w = x_nchw.shape
    cout = params["w1"].shape[0]
    assert h % 2 == 0 and w % 2 == 0, "MaxPool2d(2) needs even spatial dims"
    c1p = _round_up(cout, 128)       # conv1/conv2 channel lane padding -- VMEM-only now
    c2p = _round_up(cout, 128)

    vmem_limit = _vmem_limit_bytes()
    h_tile = _pick_h_tile(h, w, cin, c1p, c2p, cout, budget=vmem_limit // 2)
    hc = _pick_hc(h_tile, w)
    nb = h // h_tile

    # NCHW -> NHWC, 2-row / 1-col zero border (conv1 halo incl. conv2's extra row),
    # cast to bf16 for the MXU.  This pad is Cin-sized (tiny); the expensive h1
    # pad / HBM round-trip of the previous version is gone entirely (fused in VMEM).
    x = jnp.transpose(x_nchw, (0, 2, 3, 1))
    xp = jnp.pad(x, ((0, 0), (2, 2), (1, 1), (0, 0))).astype(jnp.bfloat16)

    # 4-row bottom-halo slab per band, gathered once so both kernel inputs are plain
    # BlockSpecs => Pallas auto double-buffers every HBM<->VMEM band transfer.
    rows = (jnp.arange(nb)[:, None] * h_tile + h_tile + jnp.arange(4)[None, :]).reshape(-1)
    xh = xp[:, rows, :, :].reshape(n, nb, 4, w + 2, cin)

    w1, b1 = _prep_conv_params(params["w1"], params["b1"], cin, c1p)
    w2, b2 = _prep_conv_params(params["w2"], params["b2"], c1p, c2p)

    kernel = _make_down_block_kernel(h_tile, hc, w, cout)
    maintained, reduced = pl.pallas_call(
        kernel,
        out_shape=(jax.ShapeDtypeStruct((n, h, w, cout), jnp.float32),
                   jax.ShapeDtypeStruct((n, h // 2, w // 2, cout), jnp.float32)),
        grid=(n, nb),
        in_specs=[
            pl.BlockSpec((None, h_tile, w + 2, cin), lambda i, j: (i, j, 0, 0)),
            pl.BlockSpec((None, None, 4, w + 2, cin), lambda i, j: (i, j, 0, 0, 0)),
            pl.BlockSpec((3, 3 * cin, c1p), lambda i, j: (0, 0, 0)),      # resident w1
            pl.BlockSpec((3, 3 * c1p, c2p), lambda i, j: (0, 0, 0)),      # resident w2
            pl.BlockSpec((1, c1p), lambda i, j: (0, 0)),                  # b1
            pl.BlockSpec((1, c2p), lambda i, j: (0, 0)),                  # b2
        ],
        out_specs=(
            pl.BlockSpec((None, h_tile, w, cout), lambda i, j: (i, j, 0, 0)),
            pl.BlockSpec((None, h_tile // 2, w // 2, cout), lambda i, j: (i, j, 0, 0)),
        ),
        scratch_shapes=[pltpu.VMEM((h_tile + 2, w + 2, c1p), jnp.bfloat16)],
        compiler_params=pltpu.CompilerParams(
            dimension_semantics=("parallel", "parallel"),
            vmem_limit_bytes=vmem_limit),
    )(xp, xh, w1, w2, b1, b2)

    return (jnp.transpose(maintained, (0, 3, 1, 2)),
            jnp.transpose(reduced, (0, 3, 1, 2)))


def init_params(key, cin, cout):
    k1, k2, k3, k4 = jax.random.split(key, 4)
    s1 = 1.0 / jnp.sqrt(cin * 9.0)
    s2 = 1.0 / jnp.sqrt(cout * 9.0)
    return {
        "w1": jax.random.uniform(k1, (cout, cin, 3, 3), jnp.float32, -s1, s1),
        "b1": jax.random.uniform(k2, (cout,), jnp.float32, -s1, s1),
        "w2": jax.random.uniform(k3, (cout, cout, 3, 3), jnp.float32, -s2, s2),
        "b2": jax.random.uniform(k4, (cout,), jnp.float32, -s2, s2),
    }


def _reference(x_nchw, params, mimic_bf16):
    """Pure-XLA reference (Conv+ReLU x2, 2x2 max-pool).  mimic_bf16=True rounds the
    matmul operands to bf16 like the kernel's MXU feed, so tolerance can stay tight."""
    def cast(v):
        return v.astype(jnp.bfloat16).astype(jnp.float32) if mimic_bf16 else v

    def conv(x, w, b):
        y = jax.lax.conv_general_dilated(
            cast(x), cast(w), window_strides=(1, 1), padding="SAME",
            dimension_numbers=("NCHW", "OIHW", "NCHW"),
            precision=jax.lax.Precision.HIGHEST)
        return jax.nn.relu(y + b[None, :, None, None])

    hh = conv(conv(x_nchw, params["w1"], params["b1"]), params["w2"], params["b2"])
    rr = jax.lax.reduce_window(hh, -jnp.inf, jax.lax.max,
                               (1, 1, 2, 2), (1, 1, 2, 2), "VALID")
    return hh, rr


if __name__ == "__main__":
    key = jax.random.PRNGKey(0)
    k_x, k_p = jax.random.split(key)

    N, Cin, H, W = 2, 4, 16, 16
    Cout = 8
    x = jax.random.normal(k_x, (N, Cin, H, W), jnp.float32)            # NCHW, like PyTorch
    params = init_params(k_p, Cin, Cout)

    maintained, reduced = jax.jit(down_block_forward)(x, params)
    jax.block_until_ready((maintained, reduced))

    assert maintained.shape == (N, Cout, H, W)
    assert reduced.shape == (N, Cout, H // 2, W // 2)

    # Tight check vs. a reference mimicking the kernel's bf16-operand/f32-accumulate
    # numerics (catches halo / tap off-by-ones), plus a looser pure-f32 check.
    ref_m16, ref_r16 = _reference(x, params, mimic_bf16=True)
    ref_m32, ref_r32 = _reference(x, params, mimic_bf16=False)
    err16 = max(float(jnp.max(jnp.abs(maintained - ref_m16))),
                float(jnp.max(jnp.abs(reduced - ref_r16))))
    err32 = max(float(jnp.max(jnp.abs(maintained - ref_m32))),
                float(jnp.max(jnp.abs(reduced - ref_r32))))
    assert err16 < 5e-3, ("bf16-mimic mismatch", err16)
    assert err32 < 5e-2, ("f32 reference mismatch", err32)

    print("KERNEL_OK")
</pallas_src>

<mosaic_0001>
module attributes {stable_mosaic.version = 11 : i64} {
  func.func @kernel(%arg0: i32, %arg1: i32, %arg2: memref<1x8x18x4xbf16, #tpu.memory_space<vmem>>, %arg3: memref<1x1x4x18x4xbf16, #tpu.memory_space<vmem>>, %arg4: memref<3x12x128xbf16, #tpu.memory_space<vmem>>, %arg5: memref<3x384x128xbf16, #tpu.memory_space<vmem>>, %arg6: memref<1x128xf32, #tpu.memory_space<vmem>>, %arg7: memref<1x128xf32, #tpu.memory_space<vmem>>, %arg8: memref<1x8x16x8xf32, #tpu.memory_space<vmem>>, %arg9: memref<1x4x8x8xf32, #tpu.memory_space<vmem>>, %arg10: memref<10x18x128xbf16, #tpu.memory_space<vmem>>) attributes {dimension_semantics = [#tpu.dimension_semantics<parallel>, #tpu.dimension_semantics<parallel>], iteration_bounds = array<i64: 2, 2>, scalar_prefetch = 0 : i64, scratch_operands = 1 : i64, tpu.core_type = #tpu.core_type<tc>, window_params = [{transform_indices = @transform_0, window_bounds = array<i64: 1, 8, 18, 4>}, {transform_indices = @transform_1, window_bounds = array<i64: 1, 1, 4, 18, 4>}, {pipeline_mode = #tpu.pipeline_mode<synchronous>, transform_indices = @transform_2, window_bounds = array<i64: 3, 12, 128>}, {pipeline_mode = #tpu.pipeline_mode<synchronous>, transform_indices = @transform_3, window_bounds = array<i64: 3, 384, 128>}, {pipeline_mode = #tpu.pipeline_mode<synchronous>, transform_indices = @transform_4, window_bounds = array<i64: 1, 128>}, {pipeline_mode = #tpu.pipeline_mode<synchronous>, transform_indices = @transform_5, window_bounds = array<i64: 1, 128>}, {transform_indices = @transform_6, window_bounds = array<i64: 1, 8, 16, 8>}, {transform_indices = @transform_7, window_bounds = array<i64: 1, 4, 8, 8>}]} {
    %c0 = arith.constant 0 : index
    %c0_0 = arith.constant 0 : index
    %c0_1 = arith.constant 0 : index
    %c0_2 = arith.constant 0 : index
    %0 = vector.load %arg2[%c0, %c0_0, %c0_1, %c0_2] : memref<1x8x18x4xbf16, #tpu.memory_space<vmem>>, vector<1x8x18x4xbf16>
    %1 = vector.shape_cast %0 : vector<1x8x18x4xbf16> to vector<8x18x4xbf16>
    %c0_3 = arith.constant 0 : index
    %c0_4 = arith.constant 0 : index
    %c0_5 = arith.constant 0 : index
    %c0_6 = arith.constant 0 : index
    %c0_7 = arith.constant 0 : index
    %2 = vector.load %arg3[%c0_3, %c0_4, %c0_5, %c0_6, %c0_7] : memref<1x1x4x18x4xbf16, #tpu.memory_space<vmem>>, vector<1x1x4x18x4xbf16>
    %3 = vector.shape_cast %2 : vector<1x1x4x18x4xbf16> to vector<4x18x4xbf16>
    %4 = tpu.concatenate %1, %3 in 0 : vector<8x18x4xbf16>, vector<4x18x4xbf16> -> vector<12x18x4xbf16>
    %5 = vector.extract_strided_slice %4 {offsets = [0, 0, 0], sizes = [10, 16, 4], strides = [1, 1, 1]} : vector<12x18x4xbf16> to vector<10x16x4xbf16>
    %6 = vector.extract_strided_slice %4 {offsets = [0, 1, 0], sizes = [10, 16, 4], strides = [1, 1, 1]} : vector<12x18x4xbf16> to vector<10x16x4xbf16>
    %7 = vector.extract_strided_slice %4 {offsets = [0, 2, 0], sizes = [10, 16, 4], strides = [1, 1, 1]} : vector<12x18x4xbf16> to vector<10x16x4xbf16>
    %8 = tpu.concatenate %5, %6, %7 in 2 : vector<10x16x4xbf16>, vector<10x16x4xbf16>, vector<10x16x4xbf16> -> vector<10x16x12xbf16>
    %9 = vector.shape_cast %8 : vector<10x16x12xbf16> to vector<160x12xbf16>
    %c0_8 = arith.constant 0 : index
    %c0_9 = arith.constant 0 : index
    %c0_10 = arith.constant 0 : index
    %10 = vector.load %arg4[%c0_8, %c0_9, %c0_10] : memref<3x12x128xbf16, #tpu.memory_space<vmem>>, vector<1x12x128xbf16>
    %11 = vector.shape_cast %10 : vector<1x12x128xbf16> to vector<12x128xbf16>
    %cst = arith.constant dense<0.000000e+00> : vector<160x128xf32>
    %12 = tpu.matmul %9, %11, %cst {dimension_numbers = #tpu.dot_dimension_numbers<[1], [0], [0], [1], [0, 0, 1, 1], [], []>} : vector<160x12xbf16>, vector<12x128xbf16>, vector<160x128xf32> -> vector<160x128xf32>
    %13 = vector.extract_strided_slice %4 {offsets = [1, 0, 0], sizes = [10, 16, 4], strides = [1, 1, 1]} : vector<12x18x4xbf16> to vector<10x16x4xbf16>
    %14 = vector.extract_strided_slice %4 {offsets = [1, 1, 0], sizes = [10, 16, 4], strides = [1, 1, 1]} : vector<12x18x4xbf16> to vector<10x16x4xbf16>
    %15 = vector.extract_strided_slice %4 {offsets = [1, 2, 0], sizes = [10, 16, 4], strides = [1, 1, 1]} : vector<12x18x4xbf16> to vector<10x16x4xbf16>
    %16 = tpu.concatenate %13, %14, %15 in 2 : vector<10x16x4xbf16>, vector<10x16x4xbf16>, vector<10x16x4xbf16> -> vector<10x16x12xbf16>
    %17 = vector.shape_cast %16 : vector<10x16x12xbf16> to vector<160x12xbf16>
    %c1 = arith.constant 1 : index
    %c0_11 = arith.constant 0 : index
    %c0_12 = arith.constant 0 : index
    %18 = vector.load %arg4[%c1, %c0_11, %c0_12] : memref<3x12x128xbf16, #tpu.memory_space<vmem>>, vector<1x12x128xbf16>
    %19 = vector.shape_cast %18 : vector<1x12x128xbf16> to vector<12x128xbf16>
    %cst_13 = arith.constant dense<0.000000e+00> : vector<160x128xf32>
    %20 = tpu.matmul %17, %19, %cst_13 {dimension_numbers = #tpu.dot_dimension_numbers<[1], [0], [0], [1], [0, 0, 1, 1], [], []>} : vector<160x12xbf16>, vector<12x128xbf16>, vector<160x128xf32> -> vector<160x128xf32>
    %21 = arith.addf %12, %20 : vector<160x128xf32>
    %22 = vector.extract_strided_slice %4 {offsets = [2, 0, 0], sizes = [10, 16, 4], strides = [1, 1, 1]} : vector<12x18x4xbf16> to vector<10x16x4xbf16>
    %23 = vector.extract_strided_slice %4 {offsets = [2, 1, 0], sizes = [10, 16, 4], strides = [1, 1, 1]} : vector<12x18x4xbf16> to vector<10x16x4xbf16>
    %24 = vector.extract_strided_slice %4 {offsets = [2, 2, 0], sizes = [10, 16, 4], strides = [1, 1, 1]} : vector<12x18x4xbf16> to vector<10x16x4xbf16>
    %25 = tpu.concatenate %22, %23, %24 in 2 : vector<10x16x4xbf16>, vector<10x16x4xbf16>, vector<10x16x4xbf16> -> vector<10x16x12xbf16>
    %26 = vector.shape_cast %25 : vector<10x16x12xbf16> to vector<160x12xbf16>
    %c2 = arith.constant 2 : index
    %c0_14 = arith.constant 0 : index
    %c0_15 = arith.constant 0 : index
    %27 = vector.load %arg4[%c2, %c0_14, %c0_15] : memref<3x12x128xbf16, #tpu.memory_space<vmem>>, vector<1x12x128xbf16>
    %28 = vector.shape_cast %27 : vector<1x12x128xbf16> to vector<12x128xbf16>
    %cst_16 = arith.constant dense<0.000000e+00> : vector<160x128xf32>
    %29 = tpu.matmul %26, %28, %cst_16 {dimension_numbers = #tpu.dot_dimension_numbers<[1], [0], [0], [1], [0, 0, 1, 1], [], []>} : vector<160x12xbf16>, vector<12x128xbf16>, vector<160x128xf32> -> vector<160x128xf32>
    %30 = arith.addf %21, %29 : vector<160x128xf32>
    %c0_17 = arith.constant 0 : index
    %c0_18 = arith.constant 0 : index
    %31 = vector.load %arg6[%c0_17, %c0_18] : memref<1x128xf32, #tpu.memory_space<vmem>>, vector<1x128xf32>
    %32 = vector.broadcast %31 : vector<1x128xf32> to vector<160x128xf32>
    %33 = arith.addf %30, %32 : vector<160x128xf32>
    %cst_19 = arith.constant 0.000000e+00 : f32
    %34 = vector.broadcast %cst_19 : f32 to vector<160x128xf32>
    %35 = arith.maximumf %33, %34 : vector<160x128xf32>
    %36 = vector.shape_cast %35 : vector<160x128xf32> to vector<10x16x128xf32>
    %37 = arith.truncf %36 : vector<10x16x128xf32> to vector<10x16x128xbf16>
    %cst_20 = arith.constant 0.000000e+00 : bf16
    %38 = vector.broadcast %cst_20 : bf16 to vector<10x1x128xbf16>
    %c0_21 = arith.constant 0 : index
    %c0_22 = arith.constant 0 : index
    %c0_23 = arith.constant 0 : index
    %39 = vector.load %arg10[%c0_21, %c0_22, %c0_23] : memref<10x18x128xbf16, #tpu.memory_space<vmem>>, vector<10x1x128xbf16>
    tpu.vector_store %arg10[%c0_21, %c0_22, %c0_23], %38 {strides = array<i32>} : memref<10x18x128xbf16, #tpu.memory_space<vmem>>, vector<10x1x128xbf16>,
    %c0_24 = arith.constant 0 : index
    %c1_25 = arith.constant 1 : index
    %c0_26 = arith.constant 0 : index
    %40 = vector.load %arg10[%c0_24, %c1_25, %c0_26] : memref<10x18x128xbf16, #tpu.memory_space<vmem>>, vector<10x16x128xbf16>
    tpu.vector_store %arg10[%c0_24, %c1_25, %c0_26], %37 {strides = array<i32>} : memref<10x18x128xbf16, #tpu.memory_space<vmem>>, vector<10x16x128xbf16>,
    %c0_27 = arith.constant 0 : index
    %c17 = arith.constant 17 : index
    %c0_28 = arith.constant 0 : index
    %41 = vector.load %arg10[%c0_27, %c17, %c0_28] : memref<10x18x128xbf16, #tpu.memory_space<vmem>>, vector<10x1x128xbf16>
    tpu.vector_store %arg10[%c0_27, %c17, %c0_28], %38 {strides = array<i32>} : memref<10x18x128xbf16, #tpu.memory_space<vmem>>, vector<10x1x128xbf16>,
    %c0_i32 = arith.constant 0 : i32
    %42 = arith.cmpi eq, %arg1, %c0_i32 : i32
    %43 = arith.extui %42 : i1 to i32
    %c0_i32_29 = arith.constant 0 : i32
    %44 = arith.cmpi ne, %43, %c0_i32_29 : i32
    scf.if %44 {
      %cst_81 = arith.constant 0.000000e+00 : bf16
      %100 = vector.broadcast %cst_81 : bf16 to vector<1x18x128xbf16>
      %c0_82 = arith.constant 0 : index
      %c0_83 = arith.constant 0 : index
      %c0_84 = arith.constant 0 : index
      %101 = vector.load %arg10[%c0_82, %c0_83, %c0_84] : memref<10x18x128xbf16, #tpu.memory_space<vmem>>, vector<1x18x128xbf16>
      tpu.vector_store %arg10[%c0_82, %c0_83, %c0_84], %100 {strides = array<i32>} : memref<10x18x128xbf16, #tpu.memory_space<vmem>>, vector<1x18x128xbf16>,
    } else {
    }
    %c1_i32 = arith.constant 1 : i32
    %45 = arith.cmpi eq, %arg1, %c1_i32 : i32
    %46 = arith.extui %45 : i1 to i32
    %c0_i32_30 = arith.constant 0 : i32
    %47 = arith.cmpi ne, %46, %c0_i32_30 : i32
    scf.if %47 {
      %cst_81 = arith.constant 0.000000e+00 : bf16
      %100 = vector.broadcast %cst_81 : bf16 to vector<1x18x128xbf16>
      %c9 = arith.constant 9 : index
      %c0_82 = arith.constant 0 : index
      %c0_83 = arith.constant 0 : index
      %101 = vector.load %arg10[%c9, %c0_82, %c0_83] : memref<10x18x128xbf16, #tpu.memory_space<vmem>>, vector<1x18x128xbf16>
      tpu.vector_store %arg10[%c9, %c0_82, %c0_83], %100 {strides = array<i32>} : memref<10x18x128xbf16, #tpu.memory_space<vmem>>, vector<1x18x128xbf16>,
    } else {
    }
    %c0_31 = arith.constant 0 : index
    %c0_32 = arith.constant 0 : index
    %c0_33 = arith.constant 0 : index
    %48 = vector.load %arg10[%c0_31, %c0_32, %c0_33] : memref<10x18x128xbf16, #tpu.memory_space<vmem>>, vector<8x16x128xbf16>
    %c0_34 = arith.constant 0 : index
    %c1_35 = arith.constant 1 : index
    %c0_36 = arith.constant 0 : index
    %49 = vector.load %arg10[%c0_34, %c1_35, %c0_36] : memref<10x18x128xbf16, #tpu.memory_space<vmem>>, vector<8x16x128xbf16>
    %c0_37 = arith.constant 0 : index
    %c2_38 = arith.constant 2 : index
    %c0_39 = arith.constant 0 : index
    %50 = vector.load %arg10[%c0_37, %c2_38, %c0_39] : memref<10x18x128xbf16, #tpu.memory_space<vmem>>, vector<8x16x128xbf16>
    %51 = tpu.concatenate %48, %49, %50 in 2 : vector<8x16x128xbf16>, vector<8x16x128xbf16>, vector<8x16x128xbf16> -> vector<8x16x384xbf16>
    %52 = vector.shape_cast %51 : vector<8x16x384xbf16> to vector<128x384xbf16>
    %c0_40 = arith.constant 0 : index
    %c0_41 = arith.constant 0 : index
    %c0_42 = arith.constant 0 : index
    %53 = vector.load %arg5[%c0_40, %c0_41, %c0_42] : memref<3x384x128xbf16, #tpu.memory_space<vmem>>, vector<1x384x128xbf16>
    %54 = vector.shape_cast %53 : vector<1x384x128xbf16> to vector<384x128xbf16>
    %cst_43 = arith.constant dense<0.000000e+00> : vector<128x128xf32>
    %55 = tpu.matmul %52, %54, %cst_43 {dimension_numbers = #tpu.dot_dimension_numbers<[1], [0], [0], [1], [0, 0, 1, 1], [], []>} : vector<128x384xbf16>, vector<384x128xbf16>, vector<128x128xf32> -> vector<128x128xf32>
    %c1_44 = arith.constant 1 : index
    %c0_45 = arith.constant 0 : index
    %c0_46 = arith.constant 0 : index
    %56 = vector.load %arg10[%c1_44, %c0_45, %c0_46] : memref<10x18x128xbf16, #tpu.memory_space<vmem>>, vector<8x16x128xbf16>
    %c1_47 = arith.constant 1 : index
    %c1_48 = arith.constant 1 : index
    %c0_49 = arith.constant 0 : index
    %57 = vector.load %arg10[%c1_47, %c1_48, %c0_49] : memref<10x18x128xbf16, #tpu.memory_space<vmem>>, vector<8x16x128xbf16>
    %c1_50 = arith.constant 1 : index
    %c2_51 = arith.constant 2 : index
    %c0_52 = arith.constant 0 : index
    %58 = vector.load %arg10[%c1_50, %c2_51, %c0_52] : memref<10x18x128xbf16, #tpu.memory_space<vmem>>, vector<8x16x128xbf16>
    %59 = tpu.concatenate %56, %57, %58 in 2 : vector<8x16x128xbf16>, vector<8x16x128xbf16>, vector<8x16x128xbf16> -> vector<8x16x384xbf16>
    %60 = vector.shape_cast %59 : vector<8x16x384xbf16> to vector<128x384xbf16>
    %c1_53 = arith.constant 1 : index
    %c0_54 = arith.constant 0 : index
    %c0_55 = arith.constant 0 : index
    %61 = vector.load %arg5[%c1_53, %c0_54, %c0_55] : memref<3x384x128xbf16, #tpu.memory_space<vmem>>, vector<1x384x128xbf16>
    %62 = vector.shape_cast %61 : vector<1x384x128xbf16> to vector<384x128xbf16>
    %cst_56 = arith.constant dense<0.000000e+00> : vector<128x128xf32>
    %63 = tpu.matmul %60, %62, %cst_56 {dimension_numbers = #tpu.dot_dimension_numbers<[1], [0], [0], [1], [0, 0, 1, 1], [], []>} : vector<128x384xbf16>, vector<384x128xbf16>, vector<128x128xf32> -> vector<128x128xf32>
    %64 = arith.addf %55, %63 : vector<128x128xf32>
    %c2_57 = arith.constant 2 : index
    %c0_58 = arith.constant 0 : index
    %c0_59 = arith.constant 0 : index
    %65 = vector.load %arg10[%c2_57, %c0_58, %c0_59] : memref<10x18x128xbf16, #tpu.memory_space<vmem>>, vector<8x16x128xbf16>
    %c2_60 = arith.constant 2 : index
    %c1_61 = arith.constant 1 : index
    %c0_62 = arith.constant 0 : index
    %66 = vector.load %arg10[%c2_60, %c1_61, %c0_62] : memref<10x18x128xbf16, #tpu.memory_space<vmem>>, vector<8x16x128xbf16>
    %c2_63 = arith.constant 2 : index
    %c2_64 = arith.constant 2 : index
    %c0_65 = arith.constant 0 : index
    %67 = vector.load %arg10[%c2_63, %c2_64, %c0_65] : memref<10x18x128xbf16, #tpu.memory_space<vmem>>, vector<8x16x128xbf16>
    %68 = tpu.concatenate %65, %66, %67 in 2 : vector<8x16x128xbf16>, vector<8x16x128xbf16>, vector<8x16x128xbf16> -> vector<8x16x384xbf16>
    %69 = vector.shape_cast %68 : vector<8x16x384xbf16> to vector<128x384xbf16>
    %c2_66 = arith.constant 2 : index
    %c0_67 = arith.constant 0 : index
    %c0_68 = arith.constant 0 : index
    %70 = vector.load %arg5[%c2_66, %c0_67, %c0_68] : memref<3x384x128xbf16, #tpu.memory_space<vmem>>, vector<1x384x128xbf16>
    %71 = vector.shape_cast %70 : vector<1x384x128xbf16> to vector<384x128xbf16>
    %cst_69 = arith.constant dense<0.000000e+00> : vector<128x128xf32>
    %72 = tpu.matmul %69, %71, %cst_69 {dimension_numbers = #tpu.dot_dimension_numbers<[1], [0], [0], [1], [0, 0, 1, 1], [], []>} : vector<128x384xbf16>, vector<384x128xbf16>, vector<128x128xf32> -> vector<128x128xf32>
    %73 = arith.addf %64, %72 : vector<128x128xf32>
    %c0_70 = arith.constant 0 : index
    %c0_71 = arith.constant 0 : index
    %74 = vector.load %arg7[%c0_70, %c0_71] : memref<1x128xf32, #tpu.memory_space<vmem>>, vector<1x128xf32>
    %75 = vector.broadcast %74 : vector<1x128xf32> to vector<128x128xf32>
    %76 = arith.addf %73, %75 : vector<128x128xf32>
    %cst_72 = arith.constant 0.000000e+00 : f32
    %77 = vector.broadcast %cst_72 : f32 to vector<128x128xf32>
    %78 = arith.maximumf %76, %77 : vector<128x128xf32>
    %79 = vector.shape_cast %78 : vector<128x128xf32> to vector<8x16x128xf32>
    %80 = vector.extract_strided_slice %79 {offsets = [0, 0, 0], sizes = [8, 16, 8], strides = [1, 1, 1]} : vector<8x16x128xf32> to vector<8x16x8xf32>
    %c0_73 = arith.constant 0 : index
    %c0_74 = arith.constant 0 : index
    %c0_75 = arith.constant 0 : index
    %c0_76 = arith.constant 0 : index
    %81 = vector.load %arg8[%c0_73, %c0_74, %c0_75, %c0_76] : memref<1x8x16x8xf32, #tpu.memory_space<vmem>>, vector<1x8x16x8xf32>
    %82 = vector.shape_cast %81 : vector<1x8x16x8xf32> to vector<8x16x8xf32>
    %83 = vector.shape_cast %80 : vector<8x16x8xf32> to vector<1x8x16x8xf32>
    tpu.vector_store %arg8[%c0_73, %c0_74, %c0_75, %c0_76], %83 {strides = array<i32>} : memref<1x8x16x8xf32, #tpu.memory_space<vmem>>, vector<1x8x16x8xf32>,
    %84 = vector.shape_cast %79 : vector<8x16x128xf32> to vector<4x2x16x128xf32>
    %85 = vector.extract_strided_slice %84 {offsets = [0, 0, 0, 0], sizes = [4, 1, 16, 128], strides = [1, 1, 1, 1]} : vector<4x2x16x128xf32> to vector<4x1x16x128xf32>
    %86 = vector.shape_cast %85 : vector<4x1x16x128xf32> to vector<4x16x128xf32>
    %87 = vector.extract_strided_slice %84 {offsets = [0, 1, 0, 0], sizes = [4, 1, 16, 128], strides = [1, 1, 1, 1]} : vector<4x2x16x128xf32> to vector<4x1x16x128xf32>
    %88 = vector.shape_cast %87 : vector<4x1x16x128xf32> to vector<4x16x128xf32>
    %89 = arith.maximumf %86, %88 : vector<4x16x128xf32>
    %90 = vector.shape_cast %89 : vector<4x16x128xf32> to vector<4x8x2x128xf32>
    %91 = vector.extract_strided_slice %90 {offsets = [0, 0, 0, 0], sizes = [4, 8, 1, 128], strides = [1, 1, 1, 1]} : vector<4x8x2x128xf32> to vector<4x8x1x128xf32>
    %92 = vector.shape_cast %91 : vector<4x8x1x128xf32> to vector<4x8x128xf32>
    %93 = vector.extract_strided_slice %90 {offsets = [0, 0, 1, 0], sizes = [4, 8, 1, 128], strides = [1, 1, 1, 1]} : vector<4x8x2x128xf32> to vector<4x8x1x128xf32>
    %94 = vector.shape_cast %93 : vector<4x8x1x128xf32> to vector<4x8x128xf32>
    %95 = arith.maximumf %92, %94 : vector<4x8x128xf32>
    %96 = vector.extract_strided_slice %95 {offsets = [0, 0, 0], sizes = [4, 8, 8], strides = [1, 1, 1]} : vector<4x8x128xf32> to vector<4x8x8xf32>
    %c0_77 = arith.constant 0 : index
    %c0_78 = arith.constant 0 : index
    %c0_79 = arith.constant 0 : index
    %c0_80 = arith.constant 0 : index
    %97 = vector.load %arg9[%c0_77, %c0_78, %c0_79, %c0_80] : memref<1x4x8x8xf32, #tpu.memory_space<vmem>>, vector<1x4x8x8xf32>
    %98 = vector.shape_cast %97 : vector<1x4x8x8xf32> to vector<4x8x8xf32>
    %99 = vector.shape_cast %96 : vector<4x8x8xf32> to vector<1x4x8x8xf32>
    tpu.vector_store %arg9[%c0_77, %c0_78, %c0_79, %c0_80], %99 {strides = array<i32>} : memref<1x4x8x8xf32, #tpu.memory_space<vmem>>, vector<1x4x8x8xf32>,
    return
  }
  func.func @transform_0(%arg0: i32, %arg1: i32) -> (i32, i32, i32, i32) {
    %c0_i32 = arith.constant 0 : i32
    %c0_i32_0 = arith.constant 0 : i32
    %c0_i32_1 = arith.constant 0 : i32
    return %arg0, %arg1, %c0_i32, %c0_i32_0 : i32, i32, i32, i32
  }
  func.func @transform_1(%arg0: i32, %arg1: i32) -> (i32, i32, i32, i32, i32) {
    %c0_i32 = arith.constant 0 : i32
    %c0_i32_0 = arith.constant 0 : i32
    %c0_i32_1 = arith.constant 0 : i32
    %c0_i32_2 = arith.constant 0 : i32
    return %arg0, %arg1, %c0_i32, %c0_i32_0, %c0_i32_1 : i32, i32, i32, i32, i32
  }
  func.func @transform_2(%arg0: i32, %arg1: i32) -> (i32, i32, i32) {
    %c0_i32 = arith.constant 0 : i32
    %c0_i32_0 = arith.constant 0 : i32
    %c0_i32_1 = arith.constant 0 : i32
    %c0_i32_2 = arith.constant 0 : i32
    return %c0_i32, %c0_i32_0, %c0_i32_1 : i32, i32, i32
  }
  func.func @transform_3(%arg0: i32, %arg1: i32) -> (i32, i32, i32) {
    %c0_i32 = arith.constant 0 : i32
    %c0_i32_0 = arith.constant 0 : i32
    %c0_i32_1 = arith.constant 0 : i32
    %c0_i32_2 = arith.constant 0 : i32
    return %c0_i32, %c0_i32_0, %c0_i32_1 : i32, i32, i32
  }
  func.func @transform_4(%arg0: i32, %arg1: i32) -> (i32, i32) {
    %c0_i32 = arith.constant 0 : i32
    %c0_i32_0 = arith.constant 0 : i32
    %c0_i32_1 = arith.constant 0 : i32
    return %c0_i32, %c0_i32_0 : i32, i32
  }
  func.func @transform_5(%arg0: i32, %arg1: i32) -> (i32, i32) {
    %c0_i32 = arith.constant 0 : i32
    %c0_i32_0 = arith.constant 0 : i32
    %c0_i32_1 = arith.constant 0 : i32
    return %c0_i32, %c0_i32_0 : i32, i32
  }
  func.func @transform_6(%arg0: i32, %arg1: i32) -> (i32, i32, i32, i32) {
    %c0_i32 = arith.constant 0 : i32
    %c0_i32_0 = arith.constant 0 : i32
    %c0_i32_1 = arith.constant 0 : i32
    return %arg0, %arg1, %c0_i32, %c0_i32_0 : i32, i32, i32, i32
  }
  func.func @transform_7(%arg0: i32, %arg1: i32) -> (i32, i32, i32, i32) {
    %c0_i32 = arith.constant 0 : i32
    %c0_i32_0 = arith.constant 0 : i32
    %c0_i32_1 = arith.constant 0 : i32
    return %arg0, %arg1, %c0_i32, %c0_i32_0 : i32, i32, i32, i32
  }
}

</mosaic_0001>

<bundles_post_ra>
// kernel: down_block_forward.1
= control target key start
LH: loop header
LB: loop body
LE: loop exit
PB: predicated region body
PF: predicated region fallthrough
CT: control target
= control target key end

     0   :  { %s5544_s24 = smov 0   ;;  %s5546_s25 = smov 0   ;;  %s6923_s0 = inlined_call_operand.vmem [shape: bf16[2,20,18,4], index: 0, kind: input, shape index: {}]   ;;  %s6924_s1 = inlined_call_operand.vmem [shape: bf16[2,2,4,18,4], index: 1, kind: input, shape index: {}]   ;;  %s6925_s2 = inlined_call_operand.vmem [shape: bf16[3,12,128], index: 2, kind: input, shape index: {}]   ;;  %s6926_s3 = inlined_call_operand.vmem [shape: bf16[3,384,128], index: 3, kind: input, shape index: {}]   ;;  %s6927_s4 = inlined_call_operand.vmem [shape: f32[1,128], index: 4, kind: input, shape index: {}]   ;;  %s6928_s5 = inlined_call_operand.vmem [shape: f32[1,128], index: 5, kind: input, shape index: {}]   ;;  %s6929_s6 = inlined_call_operand.vmem [shape: f32[2,16,16,8], index: 6, kind: output, shape index: {0}]   ;;  %s6930_s7 = inlined_call_operand.vmem [shape: f32[2,8,8,8], index: 7, kind: output, shape index: {1}]  }
   0x1   :  { %s5548_s26 = smov 0   ;;  %s5550_s27 = smov 0  }
   0x2   :  { %s5552_s28 = smov 0  }
   0x3 LB: > { %s27_s29 = sadd.s32 1, %s5489_s26  ;;  %s30_s30 = sadd.s32 1, %s5493_s27  ;;  %s5497_s28 = sphi %s5552_s28, %s18_s28   ;;  %s5493_s27 = sphi %s5550_s27, %s6961_s27   ;;  %s5489_s26 = sphi %s5548_s26, %s6960_s26   ;;  %s5485_s25 = sphi %s5546_s25, %s6959_s25   ;;  %s5481_s24 = sphi %s5544_s24, %s6958_s24  }
   0x4   : > { %p28_p0 = scmp.ge.s32.totalorder %s27_s29, 2  ;;  %p4411_p1 = scmp.ge.s32.totalorder %s5497_s28, 1 }
   0x5   : > { %p290_p2 = scmp.lt.s32.totalorder %s5497_s28, 5 }
   0x6   : > { %s6963_s29 = smov (%p28_p0, %s27_s29), 0  ;;  %s6965_s30 = smov (!%p28_p0, %s30_s30), %s5493_s27 }
   0x7   : > { %p291_p3 = pnand %p4411_p1, %p290_p2  ;;  %p32_p4 = scmp.ge.s32.totalorder %s6965_s30, 2 }
   0x9   : > { %s6967_s30 = smov (%p32_p4, %s6965_s30), 0  ;;  %294 = sbr.rel (%p291_p3) target bundleno = 909 (0x38d), region = 44 }
   0xe   : > { %s4412_s8 = sshll.u32 %s5481_s24, 3  ;;  %p361_p5 = scmp.lt.s32.totalorder %s5485_s25, 1  ;;  %v5312_v0 = vld [vmem:[%s6925_s2 + $0x8] sm:$0x3f]   ;;  %vm819_vm0 = vcmask 1045504   ;;  %vm664_vm1 = vcmask 1046528  }
   0xf   : > { %p363_p6 = scmp.lt.s32.totalorder %s4412_s8, 19  ;;  %p388_p7 = scmp.lt.s32.totalorder %s4412_s8, 15  ;;  %vm523_vm2 = vsmask.f32 7424  ;;  %5236 = vmatprep.subr.msk.bf16.mxu0 %vm819_vm0, %v5312_v0  ;;  %v821_v1 = vsel %vm819_vm0, %v5312_v0, 0  ;;  %vm715_vm3 = vcmask 31744  }
  0x10   : > { %s6969_s25 = smov (!%p361_p5, %s5485_s25), 1  ;;  %s4419_s13 = sshll.u32 %s5481_s24, 2  ;;  %5075 = vmatpush3.bf16.msra.mxu0 %v821_v1  ;;  %vm736_vm4 = vcmask 64512   ;;  %vm798_vm5 = vcmask 97280   ;;  %vm1293_vm6 = vcmask 1040384   ;;  %vm1578_vm9 = vcmask 1043456  }
  0x11   : > { %s364_s9 = scalar_select %p363_p6, %s4412_s8, 19  ;;  %vm1294_vm7 = vsmask.f32 256  ;;  %vm1579_vm10 = vsmask.f32 7938 }
  0x12   : > { %s5240_s10 = smul.u32 60, %s6969_s25  ;;  %s4417_s11 = sshll.u32 %s6969_s25, 5  ;;  %vm5827_vm8 = vmand %vm1293_vm6, %vm1294_vm7  ;;  %vm1376_vm11 = vsmask.f32 4368 }
  0x13   : > { %s5239_s12 = smul.u32 3, %s364_s9  ;;  %s6971_s8 = smov (!%p388_p7, %s4412_s8), 15  ;;  %vm5888_vm12 = vmand %vm1578_vm9, %vm1579_vm10 }
  0x14   : > { %p5582_p8 = scmp.lt.s32.totalorder %s4419_s13, 7  ;;  %s4416_s19 = sshll.u32 %s6971_s8, 1  ;;  %vm5899_vm13 = vmor %vm1294_vm7, %vm1376_vm11 }
  0x15   : > { %s367_s14 = sadd.s32 %s5240_s10, %s5239_s12  ;;  %s392_s23 = sadd.s32 %s4417_s11, %s4416_s19  ;;  %vm5929_vm14 = vmand %vm1293_vm6, %vm1579_vm10 }
  0x16   : > { %s4413_s18 = sshll.u32 %s367_s14, 2  ;;  %s4418_s9 = sshll.u32 %s392_s23, 3 }
  0x17   : > { %s5592_s22 = scalar_lea.vmem %s6923_s0, %s4413_s18  ;;  %s4420_s10 = sshll.u32 %s6969_s25, 3 }
  0x18   : > { %s5600_s14 = scalar_lea.vmem %s6929_s6, %s4418_s9  ;;  %v5603_v2 = vld [vmem:[%s5592_s22 + $0xc] sm:$0xff]   ;;  %v5289_v3 = vld [vmem:[%s5592_s22 + $0x14] ss:$0 sps:$4 sm:$0x11]   ;;  %s6973_s13 = smov (!%p5582_p8, %s4419_s13), 7  ;;  %v5609_v4 = vld [vmem:[%s5592_s22 + $0x18] sm:$0xff]  }
  0x19   : > { %v668_v5 = vrot.slane %v5603_v2, 1  ;;  %v669_v6 = vrot.slane %v5289_v3, 1  ;;  %v537_v7 = vshrl.u32 %v5603_v2, 16  ;;  %v539_v8 = vshll.u32 %v5603_v2, 16  ;;  %s402_s11 = sadd.s32 %s4420_s10, %s6973_s13  ;;  %s5499_s19 = smov 8   ;;  %v5626_v20 = vld [vmem:[%s5592_s22 + $0x30] sm:$0xff]  }
  0x1a   : > { %v544_v9 = vshll.u32 %v5289_v3, 16  ;;  %v5291_v10 = vld [vmem:[%s5592_s22 + $0x20] ss:$0 sps:$4 sm:$0x11]   ;;  %s4421_s16 = sshll.u32 %s402_s11, 3  ;;  %v671_v13 = vrot.slane %v5609_v4, 1 }
  0x1b   : > { %v670_v11 = vsel %vm664_vm1, %v668_v5, %v669_v6  ;;  %v541_v12 = vrot.slane %v539_v8, 1  ;;  %v549_v14 = vshrl.u32 %v5609_v4, 16  ;;  %s5621_s18 = scalar_lea.vmem %s6930_s7, %s4421_s16  ;;  %v672_v16 = vrot.slane %v5291_v10, 1  ;;  %v5293_v21 = vld [vmem:[%s5592_s22 + $0x38] ss:$0 sps:$4 sm:$0x11]  }
  0x1c   : > { %697 = vrot.lane.b32.xlu1 %v670_v11, %s5499_s19  ;;  %v546_v15 = vrot.slane %v544_v9, 1  ;;  %v551_v17 = vshll.u32 %v5609_v4, 16  ;;  %v556_v18 = vshll.u32 %v5291_v10, 16  ;;  %v573_v26 = vshrl.u32 %v5626_v20, 16  ;;  %v5634_v29 = vld [vmem:[%s5592_s22 + $0x24] sm:$0xff]   ;;  %s5500_s13 = smov 4  }
  0x1d   : > { %v542_v19 = vor.u32 %v541_v12, %v537_v7  ;;  %v673_v22 = vsel %vm664_vm1, %v671_v13, %v672_v16  ;;  %v575_v27 = vshll.u32 %v5626_v20, 16  ;;  %v580_v28 = vshll.u32 %v5293_v21, 16  ;;  %v5295_v31 = vld [vmem:[%s5592_s22 + $0x2c] ss:$0 sps:$4 sm:$0x11]   ;;  %v5653_v52 = vld [vmem:[%s5592_s22 + $0x3c] sm:$0xff]  }
  0x1e   : > { %v553_v23 = vrot.slane %v551_v17, 1  ;;  %v558_v24 = vrot.slane %v556_v18, 1  ;;  %v677_v32 = vrot.slane %v5626_v20, 1  ;;  %v5641_v33 = vld [vmem:[%s5592_s22 + $0x48] sm:$0xff]   ;;  %v561_v36 = vshrl.u32 %v5634_v29, 16  ;;  %p378_p9 = scmp.lt.s32.totalorder %s5481_s24, 1 }
  0x1f   : > { %v547_v25 = vsel %vm523_vm2, %v542_v19, %v546_v15  ;;  %v577_v34 = vrot.slane %v575_v27, 1  ;;  %v582_v35 = vrot.slane %v580_v28, 1  ;;  %v563_v37 = vshll.u32 %v5634_v29, 16  ;;  %v5297_v44 = vld [vmem:[%s5592_s22 + $0x50] ss:$0 sps:$4 sm:$0x11]  }
  0x20   : > { %646 = vrot.lane.b32.xlu0 %v547_v25, %s5500_s13  ;;  %699 = vrot.lane.b32.xlu1 %v673_v22, %s5499_s19  ;;  %v554_v30 = vor.u32 %v553_v23, %v549_v14  ;;  %v568_v39 = vshll.u32 %v5295_v31, 16  ;;  %v678_v40 = vrot.slane %v5293_v21, 1  ;;  %v674_v43 = vrot.slane %v5634_v29, 1  ;;  %v5299_v55 = vld [vmem:[%s5592_s22 + $0x44] ss:$0 sps:$4 sm:$0x11]  }
  0x21   : > { %v578_v41 = vor.u32 %v577_v34, %v573_v26  ;;  %v565_v42 = vrot.slane %v563_v37, 1  ;;  %v597_v45 = vshrl.u32 %v5641_v33, 16  ;;  %v599_v47 = vshll.u32 %v5641_v33, 16  ;;  %s5242_s20 = smul.u32 24, %s6969_s25  ;;  %v5668_v1 = vld [vmem:[%s5592_s22 + $0x54] sm:$0xff]   ;;  %p4504_p10 = scmp.ne.s32.totalorder %s5481_s24, 0 }
  0x22   : > { %v559_v38 = vsel %vm523_vm2, %v554_v30, %v558_v24  ;;  %v570_v46 = vrot.slane %v568_v39, 1  ;;  %v675_v50 = vrot.slane %v5295_v31, 1  ;;  %v604_v51 = vshll.u32 %v5297_v44, 16  ;;  %s379_s21 = scalar_select %p378_p9, %s5481_s24, 1  ;;  %v5313_v13 = vld [vmem:[%s6925_s2 + $0x10] sm:$0x3f]  }
  0x23   : > { %v583_v48 = vsel %vm523_vm2, %v578_v41, %v582_v35  ;;  %v566_v49 = vor.u32 %v565_v42, %v561_v36  ;;  %v679_v53 = vsel %vm664_vm1, %v677_v32, %v678_v40  ;;  %v601_v54 = vrot.slane %v599_v47, 1  ;;  %v5303_v5 = vld [vmem:[%s5592_s22 + $0x5c] ss:$0 sps:$4 sm:$0x11]   ;;  %5238 = vmatprep.subr.msk.bf16.mxu0 %vm819_vm0, %v5313_v13  ;;  %v5704_v31 = vld [vmem:[%s5592_s22] sm:$0xff]  }
  0x24   : > { %648 = vrot.lane.b32.xlu0 %v559_v38, %s5500_s13  ;;  %652 = vrot.lane.b32.xlu1 %v583_v48, %s5500_s13  ;;  %v606_v57 = vrot.slane %v604_v51, 1  ;;  %v585_v58 = vshrl.u32 %v5653_v52, 16  ;;  %v587_v59 = vshll.u32 %v5653_v52, 16  ;;  %v592_v61 = vshll.u32 %v5299_v55, 16  ;;  %s5241_s23 = smul.u32 12, %s379_s21 }
  0x25   : > { %v571_v56 = vsel %vm523_vm2, %v566_v49, %v570_v46  ;;  %v602_v60 = vor.u32 %v601_v54, %v597_v45  ;;  %v676_v62 = vsel %vm664_vm1, %v674_v43, %v675_v50  ;;  %v683_v0 = vrot.slane %v5641_v33, 1  ;;  %v5309_v49 = vld [vmem:[%s5592_s22 + $0x8] ss:$0 sps:$4 sm:$0x11]  }
  0x26   : > { %v589_v63 = vrot.slane %v587_v59, 1  ;;  %v594_v3 = vrot.slane %v592_v61, 1  ;;  %v684_v8 = vrot.slane %v5297_v44, 1  ;;  %s382_s25 = sadd.s32 %s5242_s20, %s5241_s23  ;;  %v611_v9 = vshll.u32 %v5668_v1, 16  ;;  %v5314_v61 = vld [vmem:[%s6925_s2] sm:$0x3f]  }
  0x27   : > { %v607_v6 = vsel %vm523_vm2, %v602_v60, %v606_v57  ;;  %v680_v10 = vrot.slane %v5653_v52, 1  ;;  %v681_v11 = vrot.slane %v5299_v55, 1  ;;  %s4414_s9 = sshll.u32 %s382_s25, 2  ;;  %v616_v12 = vshll.u32 %v5303_v5, 16  ;;  %5237 = vmatprep.subr.msk.bf16.mxu1 %vm819_vm0, %v5314_v61 }
  0x28   : > { %650 = vrot.lane.b32.xlu0 %v571_v56, %s5500_s13  ;;  %703 = vrot.lane.b32.xlu1 %v679_v53, %s5499_s19  ;;  %v590_v7 = vor.u32 %v589_v63, %v585_v58  ;;  %s5683_s16 = scalar_lea.vmem %s6924_s1, %s4414_s9  ;;  %v609_v15 = vshrl.u32 %v5668_v1, 16  ;;  %v613_v16 = vrot.slane %v611_v9, 1  ;;  %v685_v17 = vsel %vm664_vm1, %v683_v0, %v684_v8 }
  0x29   : > { %v5690_v18 = vld [vmem:[%s5683_s16] sm:$0xff]   ;;  %v5301_v19 = vld [vmem:[%s5683_s16 + $0x8] ss:$0 sps:$4 sm:$0x11]   ;;  %v618_v21 = vrot.slane %v616_v12, 1  ;;  %v5694_v22 = vld [vmem:[%s5683_s16 + $0xc] sm:$0xff]   ;;  %v682_v23 = vsel %vm664_vm1, %v680_v10, %v681_v11 }
  0x2a   : > { %v595_v14 = vsel %vm523_vm2, %v590_v7, %v594_v3  ;;  %v621_v24 = vshrl.u32 %v5690_v18, 16  ;;  %v623_v25 = vshll.u32 %v5690_v18, 16  ;;  %v628_v26 = vshll.u32 %v5301_v19, 16  ;;  %v5305_v28 = vld [vmem:[%s5683_s16 + $0x14] ss:$0 sps:$4 sm:$0x11]  }
  0x2b   : > { %v614_v27 = vor.u32 %v613_v16, %v609_v15  ;;  %v635_v30 = vshll.u32 %v5694_v22, 16  ;;  %v686_v35 = vrot.slane %v5668_v1, 1  ;;  %v687_v36 = vrot.slane %v5303_v5, 1  ;;  %v5710_v40 = vld [vmem:[%s5683_s16 + $0x18] sm:$0xff]   ;;  %v5726_v60 = vld [vmem:[%s5683_s16 + $0x24] sm:$0xff]  }
  0x2c   : > { %701 = vrot.lane.b32.xlu0 %v676_v62, %s5499_s19  ;;  %656 = vrot.lane.b32.xlu1 %v607_v6, %s5500_s13  ;;  %v625_v32 = vrot.slane %v623_v25, 1  ;;  %v630_v34 = vrot.slane %v628_v26, 1  ;;  %v689_v37 = vrot.slane %v5690_v18, 1  ;;  %v690_v38 = vrot.slane %v5301_v19, 1 }
  0x2d   : > { %v640_v39 = vshll.u32 %v5305_v28, 16  ;;  %v619_v42 = vsel %vm523_vm2, %v614_v27, %v618_v21  ;;  %v633_v43 = vshrl.u32 %v5694_v22, 16  ;;  %v637_v44 = vrot.slane %v635_v30, 1  ;;  %v5307_v45 = vld [vmem:[%s5683_s16 + $0x20] ss:$0 sps:$4 sm:$0x11]  }
  0x2e   : > { %v626_v41 = vor.u32 %v625_v32, %v621_v24  ;;  %v770_v46 = vshll.u32 %v5710_v40, 16  ;;  %v688_v48 = vsel %vm664_vm1, %v686_v35, %v687_v36  ;;  %v527_v50 = vshll.u32 %v5704_v31, 16  ;;  %v5311_v12 = vld [vmem:[%s5683_s16 + $0x2c] ss:$0 sps:$4 sm:$0x11]  }
  0x2f   : > { %v691_v51 = vsel %vm664_vm1, %v689_v37, %v690_v38  ;;  %v642_v53 = vrot.slane %v640_v39, 1  ;;  %v692_v54 = vrot.slane %v5694_v22, 1  ;;  %v693_v55 = vrot.slane %v5305_v28, 1 }
  0x30   : > { %654 = vrot.lane.b32.xlu0 %v595_v14, %s5500_s13  ;;  %707 = vrot.lane.b32.xlu1 %v685_v17, %s5499_s19  ;;  %v631_v47 = vsel %vm523_vm2, %v626_v41, %v630_v34  ;;  %v638_v56 = vor.u32 %v637_v44, %v633_v43  ;;  %v768_v57 = vshrl.u32 %v5710_v40, 16  ;;  %v772_v58 = vrot.slane %v770_v46, 1 }
  0x31   : > { %v775_v59 = vshll.u32 %v5307_v45, 16  ;;  %v525_v62 = vshrl.u32 %v5704_v31, 16  ;;  %v529_v63 = vrot.slane %v527_v50, 1  ;;  %v532_v0 = vshll.u32 %v5309_v49, 16 }
  0x32   : > { %v1101_v3 = vsel %vm819_vm0, %v5313_v13, 0  ;;  %v694_v5 = vsel %vm664_vm1, %v692_v54, %v693_v55  ;;  %v781_v6 = vrot.slane %v5710_v40, 1  ;;  %v782_v7 = vrot.slane %v5307_v45, 1 }
  0x33   : > { %v944_v8 = vsel %vm819_vm0, %v5314_v61, 0  ;;  %v643_v9 = vsel %vm523_vm2, %v638_v56, %v642_v53  ;;  %v773_v10 = vor.u32 %v772_v58, %v768_v57  ;;  %v777_v11 = vrot.slane %v775_v59, 1 }
  0x34   : > { %705 = vrot.lane.b32.xlu0 %v682_v23, %s5499_s19  ;;  %660 = vrot.lane.b32.xlu1 %v631_v47, %s5500_s13  ;;  %v1070_v13 = vshll.u32 %v5726_v60, 16  ;;  %v665_v14 = vrot.slane %v5704_v31, 1  ;;  %v783_v15 = vsel %vm664_vm1, %v781_v6, %v782_v7  ;;  %v530_v16 = vor.u32 %v529_v63, %v525_v62 }
  0x35   : > { %5097 = vmatpush3.bf16.msra.mxu1 %v944_v8  ;;  %v534_v17 = vrot.slane %v532_v0, 1  ;;  %v666_v19 = vrot.slane %v5309_v49, 1  ;;  %v778_v21 = vsel %vm523_vm2, %v773_v10, %v777_v11  ;;  %v1068_v23 = vshrl.u32 %v5726_v60, 16 }
  0x36   : > { %v1072_v24 = vrot.slane %v1070_v13, 1  ;;  %v1075_v25 = vshll.u32 %v5311_v12, 16  ;;  %v1081_v32 = vrot.slane %v5726_v60, 1  ;;  %v1082_v34 = vrot.slane %v5311_v12, 1 }
  0x37   : > { %v535_v26 = vsel %vm523_vm2, %v530_v16, %v534_v17  ;;  %v667_v27 = vsel %vm664_vm1, %v665_v14, %v666_v19  ;;  %v1296_v19 = vld [vmem:[#allocation2] sm:$0x1] }
  0x38   : > { %658 = vrot.lane.b32.xlu0 %v619_v42, %s5500_s13  ;;  %711 = vrot.lane.b32.xlu1 %v691_v51, %s5499_s19  ;;  %v1073_v28 = vor.u32 %v1072_v24, %v1068_v23  ;;  %v1077_v30 = vrot.slane %v1075_v25, 1  ;;  %v1083_v36 = vsel %vm664_vm1, %v1081_v32, %v1082_v34  ;;  %v1305_v23 = vld [vmem:[#allocation2 + $0x24] sm:$0x1]  ;;  %v1302_v25 = vld [vmem:[#allocation2 + $0x18] sm:$0x1] }
  0x39   : > { %v1306_v24 = vsel %vm5827_vm8, 0, %v1305_v23  ;;  %v1317_v34 = vld [vmem:[#allocation2 + $0x54] sm:$0x1] }
  0x3a   : > { %v1078_v35 = vsel %vm523_vm2, %v1073_v28, %v1077_v30  ;;  %1307 = vst [vmem:[#allocation2 + $0x24] sm:$0x1] %v1306_v24  ;;  %v1308_v30 = vld [vmem:[#allocation2 + $0x30] sm:$0x1] }
  0x3b   : > { %v1309_v32 = vsel %vm5827_vm8, 0, %v1308_v30 }
  0x3c   : > { %709 = vrot.lane.b32.xlu0 %v688_v48, %s5499_s19  ;;  %713 = vrot.lane.b32.xlu1 %v694_v5, %s5499_s19  ;;  %1310 = vst [vmem:[#allocation2 + $0x30] sm:$0x1] %v1309_v32 }
  0x40   : > { %662 = vrot.lane.b32.xlu0 %v643_v9, %s5500_s13  ;;  %784 = vrot.lane.b32.xlu1 %v783_v15, %s5499_s19 }
  0x44   : > { %779 = vrot.lane.b32.xlu0 %v778_v21, %s5500_s13  ;;  %695 = vrot.lane.b32.xlu1 %v667_v27, %s5499_s19  ;;  %v1297_v21 = vsel %vm5827_vm8, 0, %v1296_v19  ;;  %v1311_v27 = vld [vmem:[#allocation2 + $0x3c] sm:$0x1] }
  0x45   : > { %1298 = vst [vmem:[#allocation2] sm:$0x1] %v1297_v21  ;;  %v1312_v28 = vsel %vm5827_vm8, 0, %v1311_v27 }
  0x46   : > { %1313 = vst [vmem:[#allocation2 + $0x3c] sm:$0x1] %v1312_v28 }
  0x48   : > { %644 = vrot.lane.b32.xlu0 %v535_v26, %s5500_s13  ;;  %1084 = vrot.lane.b32.xlu1 %v1083_v36, %s5499_s19  ;;  %v1303_v26 = vsel %vm5827_vm8, 0, %v1302_v25  ;;  %v1314_v36 = vld [vmem:[#allocation2 + $0x48] sm:$0x1] }
  0x49   : > { %1304 = vst [vmem:[#allocation2 + $0x18] sm:$0x1] %v1303_v26 }
  0x4c   : > { %1079 = vrot.lane.b32.xlu0 %v1078_v35, %s5500_s13  ;;  %v1318_v35 = vsel %vm5827_vm8, 0, %v1317_v34 }
  0x4d   : > { %1319 = vst [vmem:[#allocation2 + $0x54] sm:$0x1] %v1318_v35 }
  0x8e   : > { %v698_v37 = vpop.permute.xlu1 %697 }
  0x92   : > { %v647_v38 = vpop.permute.xlu0 %646  ;;  %v700_v39 = vpop.permute.xlu1 %699 }
  0x93   : > { %v719_v41 = vsel %vm715_vm3, %v5603_v2, %v647_v38  ;;  %v1323_v38 = vld [vmem:[#allocation2 + $0x6c] sm:$0x1] }
  0x94   : > { %v740_v42 = vsel %vm736_vm4, %v719_v41, %v698_v37  ;;  %v1315_v37 = vsel %vm5827_vm8, 0, %v1314_v36  ;;  %v1320_v41 = vld [vmem:[#allocation2 + $0x60] sm:$0x1] }
  0x95   : > { %5076 = vmatprep.mubr.msk.bf16.mxu0 %vm798_vm5, %v740_v42  ;;  %1316 = vst [vmem:[#allocation2 + $0x48] sm:$0x1] %v1315_v37 }
  0x96   : > { %v649_v43 = vpop.permute.xlu0 %648  ;;  %v653_v45 = vpop.permute.xlu1 %652 }
  0x97   : > { %v721_v44 = vsel %vm715_vm3, %v5609_v4, %v649_v43  ;;  %v725_v49 = vsel %vm715_vm3, %v5626_v20, %v653_v45 }
  0x98   : > { %v742_v46 = vsel %vm736_vm4, %v721_v44, %v700_v39  ;;  %v1324_v39 = vsel %vm5827_vm8, 0, %v1323_v38 }
  0x99   : > { %5077 = vmatmul.mubr.msk.bf16.vlgmr.msra.gmra.mxu0 %vm798_vm5, %v742_v46  ;;  %1325 = vst [vmem:[#allocation2 + $0x6c] sm:$0x1] %v1324_v39 }
  0x9a   : > { %5119 = vmatpush3.bf16.msra.mxu0 %v1101_v3  ;;  %v651_v47 = vpop.permute.xlu0 %650  ;;  %v704_v48 = vpop.permute.xlu1 %703 }
  0x9b   : > { %v723_v2 = vsel %vm715_vm3, %v5634_v29, %v651_v47  ;;  %v746_v53 = vsel %vm736_vm4, %v725_v49, %v704_v48 }
  0x9e   : > { %v702_v50 = vpop.permute.xlu0 %701  ;;  %v657_v4 = vpop.permute.xlu1 %656 }
  0x9f   : > { %v744_v51 = vsel %vm736_vm4, %v723_v2, %v702_v50  ;;  %v729_v56 = vsel %vm715_vm3, %v5641_v33, %v657_v4 }
  0xa0   : > { %5080 = vmatprep.mubr.msk.bf16.mxu0 %vm798_vm5, %v744_v51 }
  0xa1   : > { %5081 = vmatmul.mubr.msk.bf16.gmra.mxu0 %vm798_vm5, %v746_v53 }
  0xa2   : > { %v655_v54 = vpop.permute.xlu0 %654  ;;  %v708_v55 = vpop.permute.xlu1 %707 }
  0xa3   : > { %v727_v20 = vsel %vm715_vm3, %v5653_v52, %v655_v54  ;;  %v750_v58 = vsel %vm736_vm4, %v729_v56, %v708_v55 }
  0xa6   : > { %v706_v57 = vpop.permute.xlu0 %705  ;;  %v661_v59 = vpop.permute.xlu1 %660 }
  0xa7   : > { %v748_v29 = vsel %vm736_vm4, %v727_v20, %v706_v57  ;;  %v733_v62 = vsel %vm715_vm3, %v5690_v18, %v661_v59 }
  0xa8   : > { %5084 = vmatprep.mubr.msk.bf16.mxu0 %vm798_vm5, %v748_v29 }
  0xa9   : > { %5085 = vmatmul.mubr.msk.bf16.gmra.mxu0 %vm798_vm5, %v750_v58 }
  0xaa   : > { %v659_v61 = vpop.permute.xlu0 %658  ;;  %v712_v63 = vpop.permute.xlu1 %711 }
  0xab   : > { %v731_v33 = vsel %vm715_vm3, %v5668_v1, %v659_v61  ;;  %v754_v3 = vsel %vm736_vm4, %v733_v62, %v712_v63 }
  0xae   : > { %v710_v0 = vpop.permute.xlu0 %709  ;;  %v714_v6 = vpop.permute.xlu1 %713 }
  0xaf   : > { %v752_v52 = vsel %vm736_vm4, %v731_v33, %v710_v0 }
  0xb0   : > { %5088 = vmatprep.mubr.msk.bf16.mxu0 %vm798_vm5, %v752_v52 }
  0xb1   : > { %5089 = vmatmul.mubr.msk.bf16.gmra.mxu0 %vm798_vm5, %v754_v3 }
  0xb2   : > { %v663_v5 = vpop.permute.xlu0 %662  ;;  %v785_v8 = vpop.permute.xlu1 %784 }
  0xb3   : > { %v735_v7 = vsel %vm715_vm3, %v5694_v22, %v663_v5 }
  0xb4   : > { %v756_v18 = vsel %vm736_vm4, %v735_v7, %v714_v6 }
  0xb5   : > { %5092 = vmatprep.mubr.msk.bf16.mxu0 %vm798_vm5, %v756_v18 }
  0xb6   : > { %v780_v1 = vpop.permute.xlu0 %779  ;;  %v696_v12 = vpop.permute.xlu1 %695 }
  0xb7   : > { %v787_v9 = vsel %vm715_vm3, %v5710_v40, %v780_v1 }
  0xb8   : > { %v789_v10 = vsel %vm736_vm4, %v787_v9, %v785_v8 }
  0xb9   : > { %5093 = vmatmul.mubr.msk.bf16.gmra.mxu0 %vm798_vm5, %v789_v10 }
  0xba   : > { %5120 = vmatprep.mubr.msk.bf16.mxu0 %vm798_vm5, %v742_v46  ;;  %v645_v11 = vpop.permute.xlu0 %644  ;;  %v1085_v15 = vpop.permute.xlu1 %1084 }
  0xbb   : > { %v717_v22 = vsel %vm715_vm3, %v5704_v31, %v645_v11  ;;  %v1299_v31 = vld [vmem:[#allocation2 + $0xc] sm:$0x1] }
  0xbc   : > { %v738_v13 = vsel %vm736_vm4, %v717_v22, %v696_v12  ;;  %v1300_v17 = vsel %vm5827_vm8, 0, %v1299_v31 }
  0xbd   : > { %5098 = vmatprep.mubr.msk.bf16.mxu1 %vm798_vm5, %v738_v13  ;;  %1301 = vst [vmem:[#allocation2 + $0xc] sm:$0x1] %v1300_v17 }
  0xbe   : > { %5099 = vmatmul.mubr.msk.bf16.vlgmr.msra.gmra.mxu1 %vm798_vm5, %v740_v42  ;;  %v1080_v14 = vpop.permute.xlu0 %1079  ;;  %v1321_v42 = vsel %vm5827_vm8, 0, %v1320_v41 }
  0xbf   : > { %5102 = vmatprep.mubr.msk.bf16.mxu1 %vm798_vm5, %v742_v46  ;;  %v1087_v40 = vsel %vm715_vm3, %v5726_v60, %v1080_v14  ;;  %1322 = vst [vmem:[#allocation2 + $0x60] sm:$0x1] %v1321_v42  ;;  %v1641_v42 = vld [vmem:[#allocation2 + $0x68] sm:$0x1] }
  0xc0   : > { %v1089_v16 = vsel %vm736_vm4, %v1087_v40, %v1085_v15 }
  0xc1   : > { %5121 = vmatmul.mubr.msk.bf16.vlgmr.msra.gmra.mxu0 %vm798_vm5, %v744_v51 }
  0xc2   : > { %5124 = vmatprep.mubr.msk.bf16.mxu0 %vm798_vm5, %v746_v53 }
  0xc6   : > { %5103 = vmatmul.mubr.msk.bf16.gmra.mxu1 %vm798_vm5, %v744_v51 }
  0xc7   : > { %5106 = vmatprep.mubr.msk.bf16.mxu1 %vm798_vm5, %v746_v53 }
  0xc9   : > { %5125 = vmatmul.mubr.msk.bf16.gmra.mxu0 %vm798_vm5, %v748_v29 }
  0xca   : > { %5128 = vmatprep.mubr.msk.bf16.mxu0 %vm798_vm5, %v750_v58 }
  0xce   : > { %5107 = vmatmul.mubr.msk.bf16.gmra.mxu1 %vm798_vm5, %v748_v29 }
  0xcf   : > { %5110 = vmatprep.mubr.msk.bf16.mxu1 %vm798_vm5, %v750_v58 }
  0xd1   : > { %5129 = vmatmul.mubr.msk.bf16.gmra.mxu0 %vm798_vm5, %v752_v52 }
  0xd2   : > { %5132 = vmatprep.mubr.msk.bf16.mxu0 %vm798_vm5, %v754_v3 }
  0xd6   : > { %5111 = vmatmul.mubr.msk.bf16.gmra.mxu1 %vm798_vm5, %v752_v52  ;;  %v5880_v52 = vld [vmem:[%s6927_s4] ss:$0 sm:$0xff] }
  0xd7   : > { %5114 = vmatprep.mubr.msk.bf16.mxu1 %vm798_vm5, %v754_v3 }
  0xd9   : > { %5133 = vmatmul.mubr.msk.bf16.gmra.mxu0 %vm798_vm5, %v756_v18 }
  0xda   : > { %5136 = vmatprep.mubr.msk.bf16.mxu0 %vm798_vm5, %v789_v10 }
  0xde   : > { %5115 = vmatmul.mubr.msk.bf16.gmra.mxu1 %vm798_vm5, %v756_v18 }
  0xe1   : > { %5137 = vmatmul.mubr.msk.bf16.gmra.mxu0 %vm798_vm5, %v1089_v16 }
 0x159   : > { %v5078_v43 = vpop.f32.mrf.mxu0 }
 0x15b   : > { %v857_v44 = vpop.f32.mrf.mxu0 }
 0x15d   : > { %v5079_v45 = vpop.f32.mrf.mxu0 }
 0x15f   : > { %v860_v46 = vpop.f32.mrf.mxu0 }
 0x161   : > { %v5082_v47 = vpop.f32.mrf.mxu0 }
 0x163   : > { %v873_v48 = vpop.f32.mrf.mxu0 }
 0x165   : > { %v5083_v49 = vpop.f32.mrf.mxu0 }
 0x167   : > { %v5851_v2 = vpop.f32.mrf.mxu0 }
 0x169   : > { %v5853_v50 = vpop.f32.mrf.mxu0 }
 0x16b   : > { %v5855_v51 = vpop.f32.mrf.mxu0 }
 0x16d   : > { %v5857_v53 = vpop.f32.mrf.mxu0 }
 0x16f   : > { %v5859_v4 = vpop.f32.mrf.mxu0 }
 0x171   : > { %v5861_v54 = vpop.f32.mrf.mxu0 }
 0x173   : > { %v5863_v55 = vpop.f32.mrf.mxu0 }
 0x175   : > { %v5865_v56 = vpop.f32.mrf.mxu0 }
 0x177   : > { %v5867_v20 = vpop.f32.mrf.mxu0 }
 0x179   : > { %v5869_v57 = vpop.f32.mrf.mxu0 }
 0x17b   : > { %v5871_v29 = vpop.f32.mrf.mxu0 }
 0x17d   : > { %v5873_v58 = vpop.f32.mrf.mxu0 }
 0x17e   : > { %v5100_v59 = vpop.f32.mrf.mxu1 }
 0x17f   : > { %v989_v61 = vadd.f32 %v5100_v59, %v5078_v43  ;;  %v5875_v62 = vpop.f32.mrf.mxu0  ;;  %v1588_v43 = vld [vmem:[#allocation2 + $0xc] sm:$0xf] }
 0x180   : > { %v980_v33 = vpop.f32.mrf.mxu1 }
 0x181   : > { %v981_v63 = vadd.f32 %v980_v33, %v857_v44  ;;  %v5122_v0 = vpop.f32.mrf.mxu0 }
 0x182   : > { %v1218_v3 = vadd.f32 %v5122_v0, %v989_v61  ;;  %v5101_v5 = vpop.f32.mrf.mxu1  ;;  %v1581_v0 = vld [vmem:[#allocation2] sm:$0xf] }
 0x183   : > { %v992_v6 = vadd.f32 %v5101_v5, %v5079_v45  ;;  %v1137_v7 = vpop.f32.mrf.mxu0 }
 0x184   : > { %v1245_v18 = vadd.f32 %v5880_v52, %v1218_v3  ;;  %v1216_v1 = vadd.f32 %v1137_v7, %v981_v63  ;;  %v983_v8 = vpop.f32.mrf.mxu1 }
 0x185   : > { %v984_v9 = vadd.f32 %v983_v8, %v860_v46  ;;  %v5123_v10 = vpop.f32.mrf.mxu0 }
 0x186   : > { %v1265_v11 = vmax.f32 %v1245_v18, 0.0  ;;  %v1243_v12 = vadd.f32 %v5880_v52, %v1216_v1  ;;  %v1219_v22 = vadd.f32 %v5123_v10, %v992_v6  ;;  %v5104_v13 = vpop.f32.mrf.mxu1 }
 0x187   : > { %v1005_v14 = vadd.f32 %v5104_v13, %v5082_v47  ;;  %v1140_v15 = vpop.f32.mrf.mxu0 }
 0x188   : > { %v4783_v40 = vpack.c.bf16 %v1265_v11, %v1265_v11  ;;  %v1263_v16 = vmax.f32 %v1243_v12, 0.0  ;;  %v1246_v31 = vadd.f32 %v5880_v52, %v1219_v22  ;;  %v1217_v17 = vadd.f32 %v1140_v15, %v984_v9  ;;  %v996_v19 = vpop.f32.mrf.mxu1  ;;  %v1592_v12 = vld [vmem:[#allocation2 + $0x14] sm:$0x1] }
 0x189   : > { %v997_v21 = vadd.f32 %v996_v19, %v873_v48  ;;  %v5126_v23 = vpop.f32.mrf.mxu0 }
 0x18a   : > { %v1396_v24 = vshrl.u32 %v4783_v40, 16  ;;  %v4781_v25 = vpack.c.bf16 %v1263_v16, %v1263_v16  ;;  %v1266_v26 = vmax.f32 %v1246_v31, 0.0  ;;  %v5105_v27 = vpop.f32.mrf.mxu1  ;;  %v1399_v28 = vshll.u32 %v4783_v40, 16 }
 0x18b   : > { %v1244_v30 = vadd.f32 %v5880_v52, %v1217_v17  ;;  %v1222_v32 = vadd.f32 %v5126_v23, %v1005_v14  ;;  %v1008_v34 = vadd.f32 %v5105_v27, %v5083_v49  ;;  %v1153_v35 = vpop.f32.mrf.mxu0 }
 0x18c   : > { %v1398_v36 = vrot.slane %v1396_v24, 7  ;;  %v1379_v37 = vshrl.u32 %v4781_v25, 16  ;;  %v1382_v38 = vshll.u32 %v4781_v25, 16  ;;  %v4784_v39 = vpack.c.bf16 %v1266_v26, %v1266_v26  ;;  %v999_v41 = vpop.f32.mrf.mxu1 }
 0x18d   : > { %v1264_v44 = vmax.f32 %v1244_v30, 0.0  ;;  %v1249_v45 = vadd.f32 %v5880_v52, %v1222_v32  ;;  %v1220_v46 = vadd.f32 %v1153_v35, %v997_v21  ;;  %v1000_v47 = vadd.f32 %v999_v41, %v5851_v2  ;;  %v5127_v48 = vpop.f32.mrf.mxu0  ;;  %v1585_v32 = vld [vmem:[#allocation2 + $0x8] sm:$0x1] }
 0x18e   : > { %v1401_v49 = vor.u32 %v1399_v28, %v1398_v36  ;;  %v1402_v59 = vrot.slane %v1398_v36, 4  ;;  %v1381_v61 = vrot.slane %v1379_v37, 7  ;;  %v1404_v33 = vshrl.u32 %v4784_v39, 16  ;;  %v5108_v63 = vpop.f32.mrf.mxu1 }
 0x18f   : > { %v1407_v3 = vshll.u32 %v4784_v39, 16  ;;  %v4782_v5 = vpack.c.bf16 %v1264_v44, %v1264_v44  ;;  %v1269_v6 = vmax.f32 %v1249_v45, 0.0  ;;  %v1247_v7 = vadd.f32 %v5880_v52, %v1220_v46  ;;  %v1156_v18 = vpop.f32.mrf.mxu0  ;;  %v1602_v44 = vld [vmem:[#allocation2 + $0x24] sm:$0xf] }
 0x190   : > { %v1589_v1 = vsel %vm5888_vm12, %v1401_v49, %v1588_v43  ;;  %v1384_v8 = vor.u32 %v1382_v38, %v1381_v61  ;;  %v1385_v9 = vrot.slane %v1381_v61, 4  ;;  %v1406_v10 = vrot.slane %v1404_v33, 7  ;;  %v1012_v2 = vpop.f32.mrf.mxu1 }
 0x191   : > { %1590 = vst [vmem:[#allocation2 + $0xc] sm:$0xf] %v1589_v1  ;;  %v1387_v22 = vshrl.u32 %v4782_v5, 16  ;;  %v1390_v13 = vshll.u32 %v4782_v5, 16  ;;  %v4787_v14 = vpack.c.bf16 %v1269_v6, %v1269_v6  ;;  %v1267_v15 = vmax.f32 %v1247_v7, 0.0  ;;  %v5130_v40 = vpop.f32.mrf.mxu0 }
 0x192   : > { %v1582_v16 = vsel %vm5888_vm12, %v1384_v8, %v1581_v0  ;;  %v1409_v31 = vor.u32 %v1407_v3, %v1406_v10  ;;  %v1411_v17 = vrot.slane %v1406_v10, 4  ;;  %v1223_v19 = vadd.f32 %v5127_v48, %v1008_v34  ;;  %v5109_v21 = vpop.f32.mrf.mxu1 }
 0x193   : > { %1583 = vst [vmem:[#allocation2] sm:$0xf] %v1582_v16  ;;  %v1389_v23 = vrot.slane %v1387_v22, 7  ;;  %v1430_v24 = vshrl.u32 %v4787_v14, 16  ;;  %v1433_v25 = vshll.u32 %v4787_v14, 16  ;;  %v4785_v26 = vpack.c.bf16 %v1267_v15, %v1267_v15  ;;  %v1169_v27 = vpop.f32.mrf.mxu0 }
 0x194   : > { %v1410_v28 = vsel %vm5899_vm13, %v1402_v59, %v1409_v31  ;;  %v1593_v30 = vsel %vm5827_vm8, %v1411_v17, %v1592_v12  ;;  %v1250_v35 = vadd.f32 %v5880_v52, %v1223_v19  ;;  %v1021_v36 = vadd.f32 %v5108_v63, %v5853_v50  ;;  %v1015_v37 = vpop.f32.mrf.mxu1 }
 0x195   : > { %1591 = vst [vmem:[#allocation2 + $0x10] sm:$0xf] %v1410_v28  ;;  %1594 = vst [vmem:[#allocation2 + $0x14] sm:$0x1] %v1593_v30  ;;  %v1392_v34 = vor.u32 %v1390_v13, %v1389_v23  ;;  %v1394_v38 = vrot.slane %v1389_v23, 4  ;;  %v5911_v39 = vrot.slane %v1430_v24, 7  ;;  %v5131_v43 = vpop.f32.mrf.mxu0  ;;  %v1221_v48 = vadd.f32 %v1156_v18, %v1000_v47 }
 0x196   : > { %v1413_v41 = vshrl.u32 %v4785_v26, 16  ;;  %v1416_v45 = vshll.u32 %v4785_v26, 16  ;;  %v1270_v46 = vmax.f32 %v1250_v35, 0.0  ;;  %v1013_v49 = vadd.f32 %v1012_v2, %v5855_v51  ;;  %v5112_v59 = vpop.f32.mrf.mxu1  ;;  %v1595_v18 = vld [vmem:[#allocation2 + $0x18] sm:$0xf] }
 0x197   : > { %v1393_v61 = vsel %vm5899_vm13, %v1385_v9, %v1392_v34  ;;  %v1586_v50 = vsel %vm5827_vm8, %v1394_v38, %v1585_v32  ;;  %v1435_v33 = vor.u32 %v1433_v25, %v5911_v39  ;;  %v1436_v63 = vrot.slane %v5911_v39, 4  ;;  %v1172_v0 = vpop.f32.mrf.mxu0  ;;  %v1606_v26 = vld [vmem:[#allocation2 + $0x2c] sm:$0x1] }
 0x198   : > { %1584 = vst [vmem:[#allocation2 + $0x4] sm:$0xf] %v1393_v61  ;;  %1587 = vst [vmem:[#allocation2 + $0x8] sm:$0x1] %v1586_v50  ;;  %v5920_v3 = vrot.slane %v1413_v41, 7  ;;  %v4788_v5 = vpack.c.bf16 %v1270_v46, %v1270_v46  ;;  %v1248_v47 = vadd.f32 %v5880_v52, %v1221_v48  ;;  %v1226_v51 = vadd.f32 %v5130_v40, %v1021_v36  ;;  %v1028_v6 = vpop.f32.mrf.mxu1 }
 0x199   : > { %v1603_v7 = vsel %vm5888_vm12, %v1435_v33, %v1602_v44  ;;  %v1024_v1 = vadd.f32 %v5109_v21, %v5857_v53  ;;  %v1224_v8 = vadd.f32 %v1169_v27, %v1013_v49  ;;  %v1016_v9 = vadd.f32 %v1015_v37, %v5859_v4  ;;  %v5134_v10 = vpop.f32.mrf.mxu0 }
 0x19a   : > { %1604 = vst [vmem:[#allocation2 + $0x24] sm:$0xf] %v1603_v7  ;;  %v1418_v12 = vor.u32 %v1416_v45, %v5920_v3  ;;  %v1419_v22 = vrot.slane %v5920_v3, 4  ;;  %v1438_v13 = vshrl.u32 %v4788_v5, 16  ;;  %v1441_v14 = vshll.u32 %v4788_v5, 16  ;;  %v5935_v15 = vpop.f32.mrf.mxu1 }
 0x19b   : > { %v1268_v53 = vmax.f32 %v1248_v47, 0.0  ;;  %v1253_v40 = vadd.f32 %v5880_v52, %v1226_v51  ;;  %v1251_v4 = vadd.f32 %v5880_v52, %v1224_v8  ;;  %v1227_v16 = vadd.f32 %v5131_v43, %v1024_v1  ;;  %v5939_v31 = vpop.f32.mrf.mxu0  ;;  %v1599_v5 = vld [vmem:[#allocation2 + $0x20] sm:$0x1] }
 0x19c   : > { %v1655_v17 = vld [vmem:[#allocation2 + $0x14] sm:$0x1]  ;;  %v1596_v19 = vsel %vm5888_vm12, %v1418_v12, %v1595_v18  ;;  %v1440_v21 = vrot.slane %v1438_v13, 7  ;;  %v1037_v23 = vadd.f32 %v5112_v59, %v5861_v54  ;;  %v1225_v24 = vadd.f32 %v1172_v0, %v1016_v9  ;;  %v5946_v32 = vpop.f32.mrf.mxu1  ;;  %v1616_v12 = vld [vmem:[#allocation2 + $0x3c] sm:$0xf] }
 0x19d   : > { %v1656_v25 = vsel %vm5929_vm14, 0, %v1655_v17  ;;  %1597 = vst [vmem:[#allocation2 + $0x18] sm:$0xf] %v1596_v19  ;;  %v4786_v27 = vpack.c.bf16 %v1268_v53, %v1268_v53  ;;  %v1273_v28 = vmax.f32 %v1253_v40, 0.0  ;;  %v1271_v30 = vmax.f32 %v1251_v4, 0.0  ;;  %v5948_v35 = vpop.f32.mrf.mxu0 }
 0x19e   : > { %1657 = vst [vmem:[#allocation2 + $0x14] sm:$0x1] %v1656_v25  ;;  %v1443_v36 = vor.u32 %v1441_v14, %v1440_v21  ;;  %v1445_v37 = vrot.slane %v1440_v21, 4  ;;  %v1254_v34 = vadd.f32 %v5880_v52, %v1227_v16  ;;  %v1252_v54 = vadd.f32 %v5880_v52, %v1225_v24  ;;  %v5116_v0 = vpop.f32.mrf.mxu1  ;;  %v1609_v21 = vld [vmem:[#allocation2 + $0x30] sm:$0xf] }
 0x19f   : > { %v1652_v38 = vld [vmem:[#allocation2 + $0x8] sm:$0x1]  ;;  %v1421_v39 = vshrl.u32 %v4786_v27, 16  ;;  %v1424_v41 = vshll.u32 %v4786_v27, 16  ;;  %v4791_v43 = vpack.c.bf16 %v1273_v28, %v1273_v28  ;;  %v4789_v44 = vpack.c.bf16 %v1271_v30, %v1271_v30  ;;  %v1188_v3 = vpop.f32.mrf.mxu0 }
 0x1a0   : > { %v1653_v45 = vsel %vm5929_vm14, 0, %v1652_v38  ;;  %v1444_v46 = vsel %vm5899_vm13, %v1436_v63, %v1443_v36  ;;  %v1607_v48 = vsel %vm5827_vm8, %v1445_v37, %v1606_v26  ;;  %v1274_v49 = vmax.f32 %v1254_v34, 0.0  ;;  %v1044_v24 = vpop.f32.mrf.mxu1 }
 0x1a1   : > { %1654 = vst [vmem:[#allocation2 + $0x8] sm:$0x1] %v1653_v45  ;;  %1605 = vst [vmem:[#allocation2 + $0x28] sm:$0xf] %v1444_v46  ;;  %v1423_v59 = vrot.slane %v1421_v39, 7  ;;  %v1464_v61 = vshrl.u32 %v4791_v43, 16  ;;  %v1029_v18 = vadd.f32 %v1028_v6, %v5863_v55  ;;  %v1230_v40 = vadd.f32 %v5134_v10, %v1037_v23  ;;  %v5138_v55 = vpop.f32.mrf.mxu0 }
 0x1a2   : > { %1608 = vst [vmem:[#allocation2 + $0x2c] sm:$0x1] %v1607_v48  ;;  %v1467_v50 = vshll.u32 %v4791_v43, 16  ;;  %v1447_v33 = vshrl.u32 %v4789_v44, 16  ;;  %v1450_v47 = vshll.u32 %v4789_v44, 16  ;;  %v4792_v51 = vpack.c.bf16 %v1274_v49, %v1274_v49 }
 0x1a3   : > { %v1272_v7 = vmax.f32 %v1252_v54, 0.0  ;;  %v1426_v63 = vor.u32 %v1424_v41, %v1423_v59  ;;  %v1428_v1 = vrot.slane %v1423_v59, 4  ;;  %v1466_v8 = vrot.slane %v1464_v61, 7  ;;  %v1620_v23 = vld [vmem:[#allocation2 + $0x44] sm:$0x1] }
 0x1a4   : > { %v1449_v9 = vrot.slane %v1447_v33, 7  ;;  %v1472_v13 = vshrl.u32 %v4792_v51, 16  ;;  %v1475_v14 = vshll.u32 %v4792_v51, 16  ;;  %v1040_v30 = vadd.f32 %v5935_v15, %v5865_v56  ;;  %v1613_v41 = vld [vmem:[#allocation2 + $0x38] sm:$0x1]  ;;  %v5117_v56 = vpop.f32.mrf.mxu1  ;;  %v1201_v15 = vpop.f32.mrf.mxu0 }
 0x1a5   : > { %v4790_v53 = vpack.c.bf16 %v1272_v7, %v1272_v7  ;;  %v1427_v4 = vsel %vm5899_vm13, %v1419_v22, %v1426_v63  ;;  %v1600_v16 = vsel %vm5827_vm8, %v1428_v1, %v1599_v5  ;;  %v1469_v17 = vor.u32 %v1467_v50, %v1466_v8 }
 0x1a6   : > { %v1470_v19 = vrot.slane %v1466_v8, 4  ;;  %1598 = vst [vmem:[#allocation2 + $0x1c] sm:$0xf] %v1427_v4  ;;  %1601 = vst [vmem:[#allocation2 + $0x20] sm:$0x1] %v1600_v16  ;;  %v1452_v6 = vor.u32 %v1450_v47, %v1449_v9  ;;  %v1453_v25 = vrot.slane %v1449_v9, 4  ;;  %v1257_v22 = vadd.f32 %v5880_v52, %v1230_v40  ;;  %v5139_v8 = vpop.f32.mrf.mxu0 }
 0x1a7   : > { %v1474_v26 = vrot.slane %v1472_v13, 7  ;;  %v1455_v27 = vshrl.u32 %v4790_v53, 16  ;;  %v1617_v10 = vsel %vm5888_vm12, %v1469_v17, %v1616_v12  ;;  %v1458_v28 = vshll.u32 %v4790_v53, 16  ;;  %v1630_v53 = vld [vmem:[#allocation2 + $0x54] sm:$0xf] }
 0x1a8   : > { %1618 = vst [vmem:[#allocation2 + $0x3c] sm:$0xf] %v1617_v10  ;;  %v1610_v37 = vsel %vm5888_vm12, %v1452_v6, %v1609_v21  ;;  %v1277_v43 = vmax.f32 %v1257_v22, 0.0  ;;  %v1228_v44 = vadd.f32 %v5939_v31, %v1029_v18  ;;  %v1032_v45 = vadd.f32 %v5946_v32, %v5867_v20  ;;  %v1623_v22 = vld [vmem:[#allocation2 + $0x48] sm:$0xf] }
 0x1a9   : > { %v1661_v36 = vld [vmem:[#allocation2 + $0x2c] sm:$0x1]  ;;  %v1477_v34 = vor.u32 %v1475_v14, %v1474_v26  ;;  %v1479_v54 = vrot.slane %v1474_v26, 4  ;;  %v1457_v38 = vrot.slane %v1455_v27, 7  ;;  %1611 = vst [vmem:[#allocation2 + $0x30] sm:$0xf] %v1610_v37  ;;  %v1231_v31 = vadd.f32 %v5948_v35, %v1040_v30  ;;  %v1047_v35 = vpop.f32.mrf.mxu1 }
 0x1aa   : > { %v1662_v39 = vsel %vm5929_vm14, 0, %v1661_v36  ;;  %v4795_v61 = vpack.c.bf16 %v1277_v43, %v1277_v43  ;;  %v1255_v50 = vadd.f32 %v5880_v52, %v1228_v44  ;;  %v1053_v20 = vadd.f32 %v5116_v0, %v5869_v57 }
 0x1ab   : > { %1663 = vst [vmem:[#allocation2 + $0x2c] sm:$0x1] %v1662_v39  ;;  %v1478_v46 = vsel %vm5899_vm13, %v1470_v19, %v1477_v34  ;;  %v1621_v48 = vsel %vm5827_vm8, %v1479_v54, %v1620_v23  ;;  %v1460_v49 = vor.u32 %v1458_v28, %v1457_v38  ;;  %v1462_v59 = vrot.slane %v1457_v38, 4  ;;  %v1204_v38 = vpop.f32.mrf.mxu0 }
 0x1ac   : > { %1619 = vst [vmem:[#allocation2 + $0x40] sm:$0xf] %v1478_v46  ;;  %1622 = vst [vmem:[#allocation2 + $0x44] sm:$0x1] %v1621_v48  ;;  %v1229_v5 = vadd.f32 %v1188_v3, %v1032_v45  ;;  %v1045_v47 = vadd.f32 %v1044_v24, %v5871_v29  ;;  %v1498_v7 = vshrl.u32 %v4795_v61, 16  ;;  %v1501_v18 = vshll.u32 %v4795_v61, 16 }
 0x1ad   : > { %v1461_v32 = vsel %vm5899_vm13, %v1453_v25, %v1460_v49  ;;  %v1614_v33 = vsel %vm5827_vm8, %v1462_v59, %v1613_v41  ;;  %v1658_v51 = vld [vmem:[#allocation2 + $0x20] sm:$0x1]  ;;  %v1275_v63 = vmax.f32 %v1255_v50, 0.0  ;;  %v1258_v1 = vadd.f32 %v5880_v52, %v1231_v31  ;;  %v1634_v49 = vld [vmem:[#allocation2 + $0x5c] sm:$0x1] }
 0x1ae   : > { %1612 = vst [vmem:[#allocation2 + $0x34] sm:$0xf] %v1461_v32  ;;  %1615 = vst [vmem:[#allocation2 + $0x38] sm:$0x1] %v1614_v33  ;;  %v1659_v57 = vsel %vm5929_vm14, 0, %v1658_v51  ;;  %v1256_v0 = vadd.f32 %v5880_v52, %v1229_v5  ;;  %v1234_v9 = vadd.f32 %v5138_v55, %v1053_v20  ;;  %v1056_v3 = vadd.f32 %v5117_v56, %v5873_v58 }
 0x1af   : > { %1660 = vst [vmem:[#allocation2 + $0x20] sm:$0x1] %v1659_v57  ;;  %v1500_v29 = vrot.slane %v1498_v7, 7  ;;  %v4793_v12 = vpack.c.bf16 %v1275_v63, %v1275_v63  ;;  %v1278_v13 = vmax.f32 %v1258_v1, 0.0  ;;  %v1232_v14 = vadd.f32 %v1201_v15, %v1045_v47  ;;  %v1627_v59 = vld [vmem:[#allocation2 + $0x50] sm:$0x1] }
 0x1b0   : > { %v1276_v40 = vmax.f32 %v1256_v0, 0.0  ;;  %v1261_v4 = vadd.f32 %v5880_v52, %v1234_v9  ;;  %v1048_v16 = vadd.f32 %v1047_v35, %v5875_v62  ;;  %v1235_v17 = vadd.f32 %v5139_v8, %v1056_v3  ;;  %v1644_v57 = vld [vmem:[#allocation2 + $0x6c] sm:$0xf] }
 0x1b1   : > { %v1503_v19 = vor.u32 %v1501_v18, %v1500_v29  ;;  %v1504_v21 = vrot.slane %v1500_v29, 4  ;;  %v1481_v24 = vshrl.u32 %v4793_v12, 16  ;;  %v1484_v6 = vshll.u32 %v4793_v12, 16 }
 0x1b2   : > { %v4796_v55 = vpack.c.bf16 %v1278_v13, %v1278_v13  ;;  %v4794_v26 = vpack.c.bf16 %v1276_v40, %v1276_v40  ;;  %v1281_v58 = vmax.f32 %v1261_v4, 0.0  ;;  %v1259_v27 = vadd.f32 %v5880_v52, %v1232_v14  ;;  %v1637_v14 = vld [vmem:[#allocation2 + $0x60] sm:$0xf] }
 0x1b3   : > { %v1667_v25 = vld [vmem:[#allocation2 + $0x44] sm:$0x1]  ;;  %v1631_v23 = vsel %vm5888_vm12, %v1503_v19, %v1630_v53  ;;  %v1483_v28 = vrot.slane %v1481_v24, 7  ;;  %v1262_v62 = vadd.f32 %v5880_v52, %v1235_v17  ;;  %v1233_v31 = vadd.f32 %v1204_v38, %v1048_v16  ;;  %v1648_v17 = vld [vmem:[#allocation2 + $0x74] sm:$0x1] }
 0x1b4   : > { %v1668_v10 = vsel %vm5929_vm14, 0, %v1667_v25  ;;  %1632 = vst [vmem:[#allocation2 + $0x54] sm:$0xf] %v1631_v23  ;;  %v1506_v36 = vshrl.u32 %v4796_v55, 16  ;;  %v1509_v37 = vshll.u32 %v4796_v55, 16  ;;  %v1489_v34 = vshrl.u32 %v4794_v26, 16 }
 0x1b5   : > { %1669 = vst [vmem:[#allocation2 + $0x44] sm:$0x1] %v1668_v10  ;;  %v1664_v30 = vld [vmem:[#allocation2 + $0x38] sm:$0x1]  ;;  %v1492_v54 = vshll.u32 %v4794_v26, 16  ;;  %v1486_v41 = vor.u32 %v1484_v6, %v1483_v28  ;;  %v1487_v43 = vrot.slane %v1483_v28, 4  ;;  %v4799_v44 = vpack.c.bf16 %v1281_v58, %v1281_v58 }
 0x1b6   : > { %v1665_v39 = vsel %vm5929_vm14, 0, %v1664_v30  ;;  %v1508_v45 = vrot.slane %v1506_v36, 7  ;;  %v1491_v56 = vrot.slane %v1489_v34, 7  ;;  %v1279_v15 = vmax.f32 %v1259_v27, 0.0 }
 0x1b7   : > { %1666 = vst [vmem:[#allocation2 + $0x38] sm:$0x1] %v1665_v39  ;;  %v1282_v46 = vmax.f32 %v1262_v62, 0.0  ;;  %v1624_v48 = vsel %vm5888_vm12, %v1486_v41, %v1623_v22  ;;  %v1532_v61 = vshrl.u32 %v4799_v44, 16  ;;  %v1535_v50 = vshll.u32 %v4799_v44, 16 }
 0x1b8   : > { %1625 = vst [vmem:[#allocation2 + $0x48] sm:$0xf] %v1624_v48  ;;  %v1511_v20 = vor.u32 %v1509_v37, %v1508_v45  ;;  %v1513_v32 = vrot.slane %v1508_v45, 4  ;;  %v1494_v33 = vor.u32 %v1492_v54, %v1491_v56  ;;  %v1496_v5 = vrot.slane %v1491_v56, 4 }
 0x1b9   : > { %v1534_v47 = vrot.slane %v1532_v61, 7  ;;  %v4797_v51 = vpack.c.bf16 %v1279_v15, %v1279_v15  ;;  %v4800_v7 = vpack.c.bf16 %v1282_v46, %v1282_v46  ;;  %v1260_v18 = vadd.f32 %v5880_v52, %v1233_v31 }
 0x1ba   : > { %v1512_v63 = vsel %vm5899_vm13, %v1504_v21, %v1511_v20  ;;  %v1635_v1 = vsel %vm5827_vm8, %v1513_v32, %v1634_v49  ;;  %v1495_v35 = vsel %vm5899_vm13, %v1487_v43, %v1494_v33  ;;  %v1628_v8 = vsel %vm5827_vm8, %v1496_v5, %v1627_v59 }
 0x1bb   : > { %1633 = vst [vmem:[#allocation2 + $0x58] sm:$0xf] %v1512_v63  ;;  %1636 = vst [vmem:[#allocation2 + $0x5c] sm:$0x1] %v1635_v1  ;;  %v1537_v0 = vor.u32 %v1535_v50, %v1534_v47  ;;  %v1515_v9 = vshrl.u32 %v4797_v51, 16  ;;  %v1540_v52 = vshrl.u32 %v4800_v7, 16 }
 0x1bc   : > { %1626 = vst [vmem:[#allocation2 + $0x4c] sm:$0xf] %v1495_v35  ;;  %1629 = vst [vmem:[#allocation2 + $0x50] sm:$0x1] %v1628_v8  ;;  %v1280_v3 = vmax.f32 %v1260_v18, 0.0  ;;  %v1518_v13 = vshll.u32 %v4797_v51, 16 }
 0x1bd   : > { %v1645_v29 = vsel %vm5888_vm12, %v1537_v0, %v1644_v57  ;;  %v1517_v12 = vrot.slane %v1515_v9, 7  ;;  %v1542_v53 = vrot.slane %v1540_v52, 7  ;;  %v1543_v40 = vshll.u32 %v4800_v7, 16 }
 0x1be   : > { %1646 = vst [vmem:[#allocation2 + $0x6c] sm:$0xf] %v1645_v29  ;;  %v4798_v4 = vpack.c.bf16 %v1280_v3, %v1280_v3  ;;  %v1538_v19 = vrot.slane %v1534_v47, 4 }
 0x1bf   : > { %v1520_v16 = vor.u32 %v1518_v13, %v1517_v12  ;;  %v1545_v21 = vor.u32 %v1543_v40, %v1542_v53  ;;  %v1547_v24 = vrot.slane %v1542_v53, 4  ;;  %v1521_v62 = vrot.slane %v1517_v12, 4 }
 0x1c0   : > { %v1523_v6 = vshrl.u32 %v4798_v4, 16  ;;  %v1526_v23 = vshll.u32 %v4798_v4, 16 }
 0x1c1   : > { %v1638_v25 = vsel %vm5888_vm12, %v1520_v16, %v1637_v14  ;;  %v1546_v58 = vsel %vm5899_vm13, %v1538_v19, %v1545_v21  ;;  %v1649_v27 = vsel %vm5827_vm8, %v1547_v24, %v1648_v17 }
 0x1c2   : > { %v1673_v55 = vld [vmem:[#allocation2 + $0x5c] sm:$0x1]  ;;  %1639 = vst [vmem:[#allocation2 + $0x60] sm:$0xf] %v1638_v25  ;;  %v1525_v10 = vrot.slane %v1523_v6, 7 }
 0x1c3   : > { %v1670_v26 = vld [vmem:[#allocation2 + $0x50] sm:$0x1]  ;;  %v1674_v28 = vsel %vm5929_vm14, 0, %v1673_v55  ;;  %1647 = vst [vmem:[#allocation2 + $0x70] sm:$0xf] %v1546_v58 }
 0x1c4   : > { %v1671_v22 = vsel %vm5929_vm14, 0, %v1670_v26  ;;  %1650 = vst [vmem:[#allocation2 + $0x74] sm:$0x1] %v1649_v27  ;;  %1675 = vst [vmem:[#allocation2 + $0x5c] sm:$0x1] %v1674_v28  ;;  %v1528_v30 = vor.u32 %v1526_v23, %v1525_v10  ;;  %v1530_v36 = vrot.slane %v1525_v10, 4 }
 0x1c5   : > { %1672 = vst [vmem:[#allocation2 + $0x50] sm:$0x1] %v1671_v22 }
 0x1c6   : > { %v1529_v37 = vsel %vm5899_vm13, %v1521_v62, %v1528_v30  ;;  %v1642_v34 = vsel %vm5827_vm8, %v1530_v36, %v1641_v42 }
 0x1c7   : > { %1640 = vst [vmem:[#allocation2 + $0x64] sm:$0xf] %v1529_v37  ;;  %1643 = vst [vmem:[#allocation2 + $0x68] sm:$0x1] %v1642_v34 }
 0x1cb   : > { %v1679_v54 = vld [vmem:[#allocation2 + $0x74] sm:$0x1] }
 0x1cc   : > { %v1680_v38 = vsel %vm5929_vm14, 0, %v1679_v54  ;;  %1685 = sbr.rel (%p4504_p10) target bundleno = 468 (0x1d4), region = 48 }
 0x1cd   : > { %1681 = vst [vmem:[#allocation2 + $0x74] sm:$0x1] %v1680_v38 }
 0x1ce   : > { %v1676_v39 = vld [vmem:[#allocation2 + $0x68] sm:$0x1] }
 0x1cf   : > { %v1677_v41 = vsel %vm5929_vm14, 0, %v1676_v39 }
 0x1d0   : > { %1678 = vst [vmem:[#allocation2 + $0x68] sm:$0x1] %v1677_v41 }
 0x1d1   : > { %v5501_v11 = vmov 0  }
 0x1d2   : > { %1686 = vst [vmem:[#allocation2] sm:$0xf] %v5501_v11  ;;  %1687 = vst [vmem:[#allocation2 + $0x4] sm:$0xf] %v5501_v11 }
 0x1d3   : > { %1688 = vst [vmem:[#allocation2 + $0x8] sm:$0x1] %v5501_v11 }
 0x1d4 PF: > { %p4505_p11 = scmp.ne.s32.totalorder %s5481_s24, 1 }
 0x1d6   : > { %1692 = sbr.rel (%p4505_p11) target bundleno = 478 (0x1de), region = 52 }
 0x1db   : > { %v5502_v60 = vmov 0  }
 0x1dc   : > { %1694 = vst [vmem:[#allocation2 + $0x6c] sm:$0xf] %v5502_v60  ;;  %1695 = vst [vmem:[#allocation2 + $0x70] sm:$0xf] %v5502_v60 }
 0x1dd   : > { %1696 = vst [vmem:[#allocation2 + $0x74] sm:$0x1] %v5502_v60 }
 0x1de PF: > { %v5315_v2 = vld [vmem:[%s6926_s3 + $0x138] sm:$0xff]   ;;  %v5318_v45 = vld [vmem:[%s6926_s3 + $0x130] sm:$0xff]   ;;  %v5321_v46 = vld [vmem:[%s6926_s3 + $0x128] sm:$0xff]   ;;  %vm4194_vm15 = vcmask 1041409   ;;  %vm4196_vm0 = vcmask 1042434   ;;  %vm4202_vm3 = vcmask 1045509  }
 0x1df   : > { %v5316_v43 = vld [vmem:[%s6926_s3 + $0xf8] sm:$0xff]   ;;  %4834 = vmatprep.subr.bf16.mxu1 %v5315_v2  ;;  %v5319_v56 = vld [vmem:[%s6926_s3 + $0xf0] sm:$0xff]   ;;  %v5322_v48 = vld [vmem:[%s6926_s3 + $0xe8] sm:$0xff]   ;;  %vm4204_vm5 = vcmask 1046534   ;;  %vm4206_vm6 = vcmask 1047559  }
 0x1e0   : > { %v5317_v44 = vld [vmem:[%s6926_s3 + $0x178] sm:$0xff]   ;;  %4835 = vmatpush3.bf16.msra.mxu1 %v5316_v43  ;;  %v5320_v15 = vld [vmem:[%s6926_s3 + $0x170] sm:$0xff]   ;;  %v5323_v49 = vld [vmem:[%s6926_s3 + $0x168] sm:$0xff]  }
 0x1e1   : > { %5140 = vmatprep.subr.bf16.mxu0 %v5317_v44  ;;  %4836 = vmatprep.subr.bf16.mxu1 %v5318_v45  ;;  %v5324_v59 = vld [vmem:[%s6926_s3 + $0x120] sm:$0xff]   ;;  %v5327_v31 = vld [vmem:[%s6926_s3 + $0x118] sm:$0xff]   ;;  %v5330_v33 = vld [vmem:[%s6926_s3 + $0x110] sm:$0xff]  }
 0x1e2   : > { %5141 = vmatpush3.bf16.msra.mxu0 %v5317_v44  ;;  %v5325_v61 = vld [vmem:[%s6926_s3 + $0xe0] sm:$0xff]   ;;  %v5329_v20 = vld [vmem:[%s6926_s3 + $0x158] sm:$0xff]   ;;  %v5332_v5 = vld [vmem:[%s6926_s3 + $0x150] sm:$0xff]  }
 0x1e3   : > { %5142 = vmatprep.subr.bf16.mxu0 %v5320_v15  ;;  %v5326_v50 = vld [vmem:[%s6926_s3 + $0x160] sm:$0xff]   ;;  %v5328_v32 = vld [vmem:[%s6926_s3 + $0xd8] sm:$0xff]   ;;  %v5331_v47 = vld [vmem:[%s6926_s3 + $0xd0] sm:$0xff]  }
 0x1e4   : > { %4837 = vmatpush3.bf16.msra.mxu1 %v5319_v56  ;;  %v5333_v51 = vld [vmem:[%s6926_s3 + $0x108] sm:$0xff]   ;;  %v5336_v63 = vld [vmem:[%s6926_s3 + $0x100] sm:$0xff]   ;;  %v2011_v35 = vld [vmem:[#allocation2 + $0x10] sm:$0xf] }
 0x1e5   : > { %4838 = vmatprep.subr.bf16.mxu1 %v5321_v46  ;;  %v5334_v7 = vld [vmem:[%s6926_s3 + $0xc8] sm:$0xff]   ;;  %v5338_v8 = vld [vmem:[%s6926_s3 + $0x140] sm:$0xff]   ;;  %v5340_v0 = vld [vmem:[#allocation2 + $0x14] ss:$0 sps:$4 sm:$0x11]  }
 0x1e6   : > { %5143 = vmatpush3.bf16.msra.mxu0 %v5320_v15  ;;  %v5335_v18 = vld [vmem:[%s6926_s3 + $0x148] sm:$0xff]   ;;  %v5337_v52 = vld [vmem:[%s6926_s3 + $0xc0] sm:$0xff]   ;;  %v2122_v12 = vshll.u32 %v5340_v0, 16  ;;  %v5341_v14 = vld [vmem:[%s6926_s3 + $0x78] sm:$0xff]   ;;  %v2243_v53 = vrot.slane %v5340_v0, 1 }
 0x1e7   : > { %5144 = vmatprep.subr.bf16.mxu0 %v5323_v49  ;;  %v2010_v1 = vld [vmem:[#allocation2 + $0xc] sm:$0xf]  ;;  %v2012_v40 = vld [vmem:[#allocation2 + $0x18] sm:$0xf]  ;;  %v2013_v4 = vld [vmem:[#allocation2 + $0x1c] sm:$0xf] }
 0x1e8   : > { %4839 = vmatpush3.bf16.msra.mxu1 %v5322_v48  ;;  %v4530_v57 = vcombine.low %v2010_v1, %v2011_v35  ;;  %v2034_v9 = vld [vmem:[#allocation2 + $0xc] sm:$0xe]  ;;  %v2124_v17 = vrot.slane %v2122_v12, 1  ;;  %v6110_v21 = vcombine.low %v2012_v40, %v2013_v4  ;;  %v2035_v24 = vld [vmem:[#allocation2 + $0x18] sm:$0xe]  ;;  %v5347_v62 = vld [vmem:[%s6926_s3 + $0x70] sm:$0xff]  }
 0x1e9   : > { %4840 = vmatprep.subr.bf16.mxu1 %v5324_v59  ;;  %v4546_v13 = vcombine.low %v2034_v9, %v2011_v35  ;;  %v5345_v6 = vld [vmem:[#allocation2 + $0x20] ss:$0 sps:$4 sm:$0x11]   ;;  %v5343_v26 = vld [vmem:[%s6926_s3 + $0x38] sm:$0xff]   ;;  %v4547_v58 = vcombine.low %v2035_v24, %v2013_v4  ;;  %v2014_v30 = vld [vmem:[#allocation2 + $0x24] sm:$0xf] }
 0x1ea   : > { %5145 = vmatpush3.bf16.msra.mxu0 %v5323_v49  ;;  %v2115_v3 = vshrl.u32 %v4530_v57, 16  ;;  %v2117_v29 = vshll.u32 %v4530_v57, 16  ;;  %v2246_v27 = vrot.slane %v5345_v6, 1  ;;  %v2127_v10 = vshrl.u32 %v6110_v21, 16  ;;  %v5348_v34 = vld [vmem:[%s6926_s3 + $0x30] sm:$0xff]   ;;  %v5351_v11 = vld [vmem:[%s6926_s3 + $0x68] sm:$0xff]  }
 0x1eb   : > { %5146 = vmatprep.subr.bf16.mxu0 %v5326_v50  ;;  %v2242_v19 = vrot.slane %v4546_v13, 1  ;;  %v2129_v23 = vshll.u32 %v6110_v21, 16  ;;  %v2134_v28 = vshll.u32 %v5345_v6, 16  ;;  %v2245_v42 = vrot.slane %v4547_v58, 1  ;;  %v2015_v54 = vld [vmem:[#allocation2 + $0x28] sm:$0xf] }
 0x1ec   : > { %4841 = vmatpush3.bf16.msra.mxu1 %v5325_v61  ;;  %v2119_v16 = vrot.slane %v2117_v29, 1  ;;  %v6126_v39 = vcombine.low %v2014_v30, %v2015_v54  ;;  %v5350_v41 = vld [vmem:[#allocation2 + $0x2c] ss:$0 sps:$4 sm:$0x11]   ;;  %v5359_v60 = vld [vmem:[%s6926_s3 + $0xb8] sm:$0xff]   ;;  %v5360_v46 = vld [vmem:[%s6926_s3 + $0xb0] sm:$0xff]  }
 0x1ed   : > { %4842 = vmatprep.subr.bf16.mxu1 %v5327_v31  ;;  %v2244_v55 = vsel %vm664_vm1, %v2242_v19, %v2243_v53  ;;  %v2131_v36 = vrot.slane %v2129_v23, 1  ;;  %v2136_v37 = vrot.slane %v2134_v28, 1  ;;  %v2247_v38 = vsel %vm664_vm1, %v2245_v42, %v2246_v27  ;;  %v2036_v43 = vld [vmem:[#allocation2 + $0x24] sm:$0xe]  ;;  %v2016_v59 = vld [vmem:[#allocation2 + $0x30] sm:$0xf] }
 0x1ee   : > { %5147 = vmatpush3.bf16.msra.mxu0 %v5326_v50  ;;  %v2120_v25 = vor.u32 %v2119_v16, %v2115_v3  ;;  %5156 = vmatprep.mubr.bf16.mxu0 %v2244_v55  ;;  %v2139_v44 = vshrl.u32 %v6126_v39, 16  ;;  %v2141_v45 = vshll.u32 %v6126_v39, 16  ;;  %v2146_v56 = vshll.u32 %v5350_v41, 16  ;;  %v2017_v61 = vld [vmem:[#allocation2 + $0x34] sm:$0xf]  ;;  %v5357_v1 = vld [vmem:[%s6926_s3 + $0x60] sm:$0xff]  }
 0x1ef   : > { %5148 = vmatprep.subr.bf16.mxu0 %v5329_v20  ;;  %v2132_v2 = vor.u32 %v2131_v36, %v2127_v10  ;;  %v4548_v15 = vcombine.low %v2036_v43, %v2015_v54  ;;  %v2249_v49 = vrot.slane %v5350_v41, 1  ;;  %v5358_v9 = vld [vmem:[%s6926_s3 + $0x20] sm:$0xff]   ;;  %v5363_v29 = vld [vmem:[%s6926_s3 + $0x58] sm:$0xff]   ;;  %v5371_v55 = vld [vmem:[%s6926_s3 + $0x50] sm:$0xff]  }
 0x1f0   : > { %4843 = vmatpush3.bf16.msra.mxu1 %v5328_v32  ;;  %v2125_v22 = vsel %vm523_vm2, %v2120_v25, %v2124_v17  ;;  %v2143_v50 = vrot.slane %v2141_v45, 1  ;;  %v2148_v31 = vrot.slane %v2146_v56, 1  ;;  %v5353_v32 = vld [vmem:[%s6926_s3 + $0x28] sm:$0xff]   ;;  %v5370_v12 = vld [vmem:[%s6926_s3 + $0xa0] sm:$0xff]   ;;  %v2018_v40 = vld [vmem:[#allocation2 + $0x3c] sm:$0xf] }
 0x1f1   : > { %4844 = vmatprep.subr.bf16.mxu1 %v5330_v33  ;;  %2499 = vmatprep.mubr.bf16.mxu1 %v2125_v22  ;;  %v2137_v48 = vsel %vm523_vm2, %v2132_v2, %v2136_v37  ;;  %v6143_v33 = vcombine.low %v2016_v59, %v2017_v61  ;;  %v2019_v4 = vld [vmem:[#allocation2 + $0x40] sm:$0xf]  ;;  %v5362_v19 = vld [vmem:[#allocation2 + $0x44] ss:$0 sps:$4 sm:$0x11]   ;;  %v5372_v42 = vld [vmem:[%s6926_s3 + $0x10] sm:$0xff]  }
 0x1f2   : > { %5149 = vmatpush3.bf16.msra.mxu0 %v5329_v20  ;;  %v2248_v20 = vrot.slane %v4548_v15, 1  ;;  %v6166_v17 = vcombine.low %v2018_v40, %v2019_v4  ;;  %v2038_v24 = vld [vmem:[#allocation2 + $0x3c] sm:$0xe]  ;;  %v2170_v25 = vshll.u32 %v5362_v19, 16  ;;  %v2255_v23 = vrot.slane %v5362_v19, 1  ;;  %v5378_v37 = vld [vmem:[%s6926_s3 + $0x48] sm:$0xff]  }
 0x1f3   : > { %5150 = vmatprep.subr.bf16.mxu0 %v5332_v5  ;;  %v4550_v10 = vcombine.low %v2038_v24, %v2019_v4  ;;  %v2020_v22 = vld [vmem:[#allocation2 + $0x48] sm:$0xf]  ;;  %v2021_v36 = vld [vmem:[#allocation2 + $0x4c] sm:$0xf] }
 0x1f4   : > { %4845 = vmatpush3.bf16.msra.mxu1 %v5331_v47  ;;  %v5355_v47 = vld [vmem:[#allocation2 + $0x38] ss:$0 sps:$4 sm:$0x11]   ;;  %v2165_v6 = vshll.u32 %v6166_v17, 16  ;;  %v2163_v27 = vshrl.u32 %v6166_v17, 16  ;;  %v5383_v56 = vld [vmem:[%s6926_s3 + $0x88] sm:$0xff]  }
 0x1f5   : > { %4846 = vmatprep.subr.bf16.mxu1 %v5333_v51  ;;  %v5366_v51 = vld [vmem:[%s6926_s3 + $0xa8] sm:$0xff]   ;;  %v2252_v35 = vrot.slane %v5355_v47, 1  ;;  %v2158_v0 = vshll.u32 %v5355_v47, 16  ;;  %v2254_v30 = vrot.slane %v4550_v10, 1  ;;  %v2040_v47 = vld [vmem:[#allocation2 + $0x54] sm:$0xe] }
 0x1f6   : > { %5151 = vmatpush3.bf16.msra.mxu0 %v5332_v5  ;;  %v2037_v5 = vld [vmem:[#allocation2 + $0x30] sm:$0xe]  ;;  %v2167_v28 = vrot.slane %v2165_v6, 1  ;;  %v2039_v54 = vld [vmem:[#allocation2 + $0x48] sm:$0xe] }
 0x1f7   : > { %5152 = vmatprep.subr.bf16.mxu0 %v5335_v18  ;;  %v5368_v41 = vld [vmem:[#allocation2 + $0x50] ss:$0 sps:$4 sm:$0x11]   ;;  %v4551_v2 = vcombine.low %v2039_v54, %v2021_v36  ;;  %v5387_v10 = vld [vmem:[#allocation2 + $0x8] ss:$0 sps:$4 sm:$0x11]  }
 0x1f8   : > { %4847 = vmatpush3.bf16.msra.mxu1 %v5334_v7  ;;  %v2144_v7 = vor.u32 %v2143_v50, %v2139_v44  ;;  %v5382_v44 = vld [vmem:[%s6926_s3 + $0x8] sm:$0xff]   ;;  %v2022_v50 = vld [vmem:[#allocation2 + $0x54] sm:$0xf] }
 0x1f9   : > { %4848 = vmatprep.subr.bf16.mxu1 %v5336_v63  ;;  %v4549_v63 = vcombine.low %v2037_v5, %v2017_v61  ;;  %v2257_v45 = vrot.slane %v4551_v2, 1  ;;  %v5385_v61 = vld [vmem:[%s6926_s3 + $0x40] sm:$0xff]   ;;  %v5376_v5 = vld [vmem:[#allocation2 + $0x5c] ss:$0 sps:$4 sm:$0x11]  }
 0x1fa   : > { %5153 = vmatpush3.bf16.msra.mxu0 %v5335_v18  ;;  %v2250_v18 = vsel %vm664_vm1, %v2248_v20, %v2249_v49  ;;  %v5384_v20 = vld [vmem:[%s6926_s3 + $0x80] sm:$0xff]  }
 0x1fb   : > { %5154 = vmatprep.subr.bf16.mxu0 %v5338_v8  ;;  %v2251_v3 = vrot.slane %v4549_v63, 1 }
 0x1fc   : > { %4849 = vmatpush3.bf16.msra.mxu1 %v5337_v52  ;;  %v2149_v52 = vsel %vm523_vm2, %v2144_v7, %v2148_v31  ;;  %v2023_v31 = vld [vmem:[#allocation2 + $0x58] sm:$0xf] }
 0x1fd   : > { %4914 = vmatprep.subr.bf16.mxu1 %v5341_v14  ;;  %v2160_v14 = vrot.slane %v2158_v0, 1  ;;  %v2253_v53 = vsel %vm664_vm1, %v2251_v3, %v2252_v35  ;;  %v4552_v7 = vcombine.low %v2040_v47, %v2023_v31  ;;  %v1724_v47 = vld [vmem:[#allocation2 + $0x24] sm:$0xe] }
 0x1fe   : > { %5155 = vmatpush3.bf16.msra.mxu0 %v5338_v8  ;;  %v2151_v8 = vshrl.u32 %v6143_v33, 16 }
 0x1ff   : > { %2500 = vmatmul.mubr.bf16.vlgmr.msra.gmra.mxu1 %v4530_v57  ;;  %5172 = vmatprep.subr.bf16.mxu0 %v5359_v60  ;;  %v2153_v57 = vshll.u32 %v6143_v33, 16  ;;  %v2260_v0 = vrot.slane %v4552_v7, 1 }
 0x200   : > { %4915 = vmatpush3.bf16.msra.mxu1 %v5343_v26  ;;  %2507 = vmatprep.mubr.bf16.mxu1 %v2137_v48  ;;  %v5373_v26 = vld [vmem:[%s6926_s3 + $0x98] sm:$0xff]  }
 0x201   : > { %5157 = vmatmul.mubr.bf16.vlgmr.msra.gmra.mxu0 %v2247_v38  ;;  %4916 = vmatprep.subr.bf16.mxu1 %v5347_v62  ;;  %v2155_v13 = vrot.slane %v2153_v57, 1  ;;  %v5374_v62 = vld [vmem:[%s6926_s3 + $0x90] sm:$0xff]   ;;  %v6190_v38 = vcombine.low %v2020_v22, %v2021_v36  ;;  %v2025_v57 = vld [vmem:[#allocation2 + $0x64] sm:$0xf] }
 0x202   : > { %5173 = vmatpush3.bf16.msra.mxu0 %v5359_v60  ;;  %5160 = vmatprep.mubr.bf16.mxu0 %v2250_v18  ;;  %v2256_v60 = vsel %vm664_vm1, %v2254_v30, %v2255_v23  ;;  %v2024_v18 = vld [vmem:[#allocation2 + $0x60] sm:$0xf]  ;;  %v6231_v23 = vld [vmem:[%s6926_s3 + $0x238] sm:$0xff]   ;;  %v6234_v36 = vld [vmem:[#allocation2 + $0x14] ss:$0 sps:$4 sm:$0x11]  }
 0x203   : > { %5174 = vmatprep.subr.bf16.mxu0 %v5360_v46  ;;  %v2156_v16 = vor.u32 %v2155_v13, %v2151_v8  ;;  %v2177_v43 = vshll.u32 %v6190_v38, 16  ;;  %v2175_v15 = vshrl.u32 %v6190_v38, 16  ;;  %v2261_v8 = vrot.slane %v5376_v5, 1 }
 0x204   : > { %4917 = vmatpush3.bf16.msra.mxu1 %v5348_v34  ;;  %v2172_v34 = vrot.slane %v2170_v25, 1  ;;  %v1933_v2 = vrot.slane %v6234_v36, 1 }
 0x205   : > { %4918 = vmatprep.subr.bf16.mxu1 %v5351_v11  ;;  %v2161_v58 = vsel %vm523_vm2, %v2156_v16, %v2160_v14  ;;  %v2168_v11 = vor.u32 %v2167_v28, %v2163_v27  ;;  %v2179_v59 = vrot.slane %v2177_v43, 1  ;;  %v5392_v14 = vld [vmem:[%s6926_s3 + $0x1f8] sm:$0xff]   ;;  %v1721_v27 = vld [vmem:[#allocation2] sm:$0xe]  ;;  %v1700_v28 = vld [vmem:[#allocation2 + $0x10] sm:$0xf] }
 0x206   : > { %5175 = vmatpush3.bf16.msra.mxu0 %v5360_v46  ;;  %v2182_v46 = vshll.u32 %v5368_v41, 16 }
 0x207   : > { %2508 = vmatmul.mubr.bf16.gmra.mxu1 %v6110_v21  ;;  %5176 = vmatprep.subr.bf16.mxu0 %v5366_v51  ;;  %v5365_v21 = vld [vmem:[%s6926_s3 + $0x18] sm:$0xff]   ;;  %v2173_v48 = vsel %vm523_vm2, %v2168_v11, %v2172_v34  ;;  %v2180_v63 = vor.u32 %v2179_v59, %v2175_v15 }
 0x208   : > { %2515 = vmatprep.mubr.bf16.mxu1 %v2149_v52  ;;  %4919 = vmatpush3.bf16.msra.mxu1 %v5353_v32  ;;  %v6210_v32 = vcombine.low %v2022_v50, %v2023_v31  ;;  %v5393_v34 = vld [vmem:[%s6926_s3 + $0x1b8] sm:$0xff]   ;;  %v6256_v50 = vld [vmem:[#allocation2 + $0x28] sm:$0xf] }
 0x209   : > { %4920 = vmatprep.subr.bf16.mxu1 %v5357_v1  ;;  %5161 = vmatmul.mubr.bf16.gmra.mxu0 %v2253_v53  ;;  %v2184_v1 = vrot.slane %v2182_v46, 1  ;;  %v2262_v53 = vsel %vm664_vm1, %v2260_v0, %v2261_v8  ;;  %v5403_v31 = vld [vmem:[%s6926_s3 + $0x1e8] sm:$0xff]  }
 0x20a   : > { %5177 = vmatpush3.bf16.msra.mxu0 %v5366_v51  ;;  %5164 = vmatprep.mubr.bf16.mxu0 %v2256_v60  ;;  %v5389_v51 = vld [vmem:[%s6926_s3] sm:$0xff]   ;;  %v2189_v35 = vshll.u32 %v6210_v32, 16  ;;  %v2187_v52 = vshrl.u32 %v6210_v32, 16  ;;  %v1699_v0 = vld [vmem:[#allocation2 + $0xc] sm:$0xf] }
 0x20b   : > { %5178 = vmatprep.subr.bf16.mxu0 %v5370_v12  ;;  %v2185_v40 = vsel %vm523_vm2, %v2180_v63, %v2184_v1  ;;  %v4525_v63 = vcombine.low %v1724_v47, %v6256_v50  ;;  %v5422_v47 = vld [vmem:[%s6926_s3 + $0x228] sm:$0xff]  }
 0x20c   : > { %4921 = vmatpush3.bf16.msra.mxu1 %v5358_v9  ;;  %v2041_v9 = vld [vmem:[#allocation2 + $0x60] sm:$0xe]  ;;  %v2191_v3 = vrot.slane %v2189_v35, 1 }
 0x20d   : > { %4922 = vmatprep.subr.bf16.mxu1 %v5363_v29  ;;  %v6217_v29 = vcombine.low %v2024_v18, %v2025_v57  ;;  %v4553_v13 = vcombine.low %v2041_v9, %v2025_v57  ;;  %v6263_v18 = vld [vmem:[#allocation2 + $0x2c] ss:$0 sps:$4 sm:$0x11]   ;;  %v1938_v35 = vrot.slane %v4525_v63, 1 }
 0x20e   : > { %5179 = vmatpush3.bf16.msra.mxu0 %v5370_v12  ;;  %v5380_v12 = vld [vmem:[#allocation2 + $0x68] ss:$0 sps:$4 sm:$0x11]   ;;  %v1939_v8 = vrot.slane %v6263_v18, 1 }
 0x20f   : > { %2516 = vmatmul.mubr.bf16.gmra.mxu1 %v6126_v39  ;;  %5180 = vmatprep.subr.bf16.mxu0 %v5373_v26  ;;  %v2258_v39 = vrot.slane %v5368_v41, 1  ;;  %v2263_v4 = vrot.slane %v4553_v13, 1  ;;  %v2264_v16 = vrot.slane %v5380_v12, 1  ;;  %v2201_v6 = vshll.u32 %v6217_v29, 16  ;;  %v5404_v57 = vld [vmem:[%s6926_s3 + $0x1a8] sm:$0xff]  }
 0x210   : > { %2523 = vmatprep.mubr.bf16.mxu1 %v2161_v58  ;;  %4923 = vmatpush3.bf16.msra.mxu1 %v5365_v21  ;;  %v2199_v21 = vshrl.u32 %v6217_v29, 16  ;;  %v2206_v25 = vshll.u32 %v5380_v12, 16  ;;  %v2192_v58 = vor.u32 %v2191_v3, %v2187_v52  ;;  %v1701_v3 = vld [vmem:[#allocation2 + $0x18] sm:$0xf]  ;;  %v6276_v12 = vcombine.low %v1699_v0, %v1700_v28  ;;  %v6278_v13 = vld [vmem:[#allocation2 + $0x34] sm:$0xf] }
 0x211   : > { %4924 = vmatprep.subr.bf16.mxu1 %v5371_v55  ;;  %v2259_v49 = vsel %vm664_vm1, %v2257_v45, %v2258_v39  ;;  %v2265_v24 = vsel %vm664_vm1, %v2263_v4, %v2264_v16  ;;  %v1697_v55 = vld [vmem:[#allocation2] sm:$0xf]  ;;  %v2203_v22 = vrot.slane %v2201_v6, 1  ;;  %v5394_v39 = vld [vmem:[%s6926_s3 + $0x1f0] sm:$0xff]   ;;  %v1702_v45 = vld [vmem:[#allocation2 + $0x1c] sm:$0xf] }
 0x212   : > { %5181 = vmatpush3.bf16.msra.mxu0 %v5373_v26  ;;  %v1698_v26 = vld [vmem:[#allocation2 + $0x4] sm:$0xf]  ;;  %v2208_v15 = vrot.slane %v2206_v25, 1  ;;  %v6284_v4 = vld [vmem:[#allocation2 + $0x38] ss:$0 sps:$4 sm:$0x11]  }
 0x213   : > { %5182 = vmatprep.subr.bf16.mxu0 %v5374_v62  ;;  %5165 = vmatmul.mubr.bf16.gmra.mxu0 %v2259_v49  ;;  %v6240_v41 = vcombine.low %v1697_v55, %v1698_v26  ;;  %v6254_v49 = vld [vmem:[#allocation2 + $0x20] ss:$0 sps:$4 sm:$0x11]  }
 0x214   : > { %4925 = vmatpush3.bf16.msra.mxu1 %v5372_v42  ;;  %5168 = vmatprep.mubr.bf16.mxu0 %v2262_v53  ;;  %v1930_v42 = vrot.slane %v5387_v10, 1  ;;  %v5406_v53 = vld [vmem:[%s6926_s3 + $0x1a0] sm:$0xff]  }
 0x215   : > { %4926 = vmatprep.subr.bf16.mxu1 %v5378_v37  ;;  %v1804_v46 = vshll.u32 %v6240_v41, 16 }
 0x216   : > { %5183 = vmatpush3.bf16.msra.mxu0 %v5374_v62  ;;  %v1722_v62 = vld [vmem:[#allocation2 + $0xc] sm:$0xe] }
 0x217   : > { %2524 = vmatmul.mubr.bf16.gmra.mxu1 %v6143_v33  ;;  %5184 = vmatprep.subr.bf16.mxu0 %v5383_v56  ;;  %v2194_v33 = vshll.u32 %v5376_v5, 16  ;;  %v4523_v37 = vcombine.low %v1722_v62, %v1700_v28  ;;  %v1936_v5 = vrot.slane %v6254_v49, 1  ;;  %v1806_v7 = vrot.slane %v1804_v46, 1  ;;  %v5416_v28 = vld [vmem:[%s6926_s3 + $0x198] sm:$0xff]  }
 0x218   : > { %2531 = vmatprep.mubr.bf16.mxu1 %v2173_v48  ;;  %4927 = vmatpush3.bf16.msra.mxu1 %v5382_v44  ;;  %v5395_v44 = vld [vmem:[%s6926_s3 + $0x1b0] sm:$0xff]   ;;  %v1723_v48 = vld [vmem:[#allocation2 + $0x18] sm:$0xe] }
 0x219   : > { %4928 = vmatprep.subr.bf16.mxu1 %v5385_v61  ;;  %v2196_v19 = vrot.slane %v2194_v33, 1  ;;  %v1932_v60 = vrot.slane %v4523_v37, 1  ;;  %v4524_v59 = vcombine.low %v1723_v48, %v1702_v45  ;;  %v1809_v61 = vshll.u32 %v5387_v10, 16  ;;  %v5405_v33 = vld [vmem:[%s6926_s3 + $0x1e0] sm:$0xff]   ;;  %v1726_v10 = vld [vmem:[#allocation2 + $0x3c] sm:$0xe] }
 0x21a   : > { %5185 = vmatpush3.bf16.msra.mxu0 %v5383_v56  ;;  %v2204_v56 = vor.u32 %v2203_v22, %v2199_v21  ;;  %v1821_v21 = vshll.u32 %v6234_v36, 16  ;;  %v6323_v46 = vld [vmem:[#allocation2 + $0x50] ss:$0 sps:$4 sm:$0x11]  }
 0x21b   : > { %5186 = vmatprep.subr.bf16.mxu0 %v5384_v20  ;;  %5169 = vmatmul.mubr.bf16.gmra.mxu0 %v2265_v24  ;;  %v2197_v54 = vsel %vm523_vm2, %v2192_v58, %v2196_v19  ;;  %v1934_v43 = vsel %vm664_vm1, %v1932_v60, %v1933_v2  ;;  %v1811_v52 = vrot.slane %v1809_v61, 1  ;;  %v1814_v19 = vshrl.u32 %v6276_v12, 16  ;;  %v6289_v24 = vld [vmem:[#allocation2 + $0x40] sm:$0xf]  ;;  %v5415_v58 = vld [vmem:[%s6926_s3 + $0x1d8] sm:$0xff]   ;;  %v5411_v60 = vld [vmem:[%s6926_s3 + $0x230] sm:$0xff]  }
 0x21c   : > { %4929 = vmatpush3.bf16.msra.mxu1 %v5389_v51  ;;  %v2209_v51 = vsel %vm523_vm2, %v2204_v56, %v2208_v15  ;;  %v1823_v37 = vrot.slane %v1821_v21, 1  ;;  %v1727_v56 = vld [vmem:[#allocation2 + $0x48] sm:$0xe]  ;;  %v1707_v21 = vld [vmem:[#allocation2 + $0x3c] sm:$0xf] }
 0x21d   : > { %5204 = vmatprep.subr.bf16.mxu1 %v6231_v23 }
 0x21e   : > { %5187 = vmatpush3.bf16.msra.mxu0 %v5384_v20  ;;  %v1935_v20 = vrot.slane %v4524_v59, 1  ;;  %v6329_v59 = vld [vmem:[#allocation2 + $0x58] sm:$0xf] }
 0x21f   : > { %2532 = vmatmul.mubr.bf16.gmra.mxu1 %v6166_v17  ;;  %4994 = vmatprep.subr.bf16.mxu0 %v5392_v14  ;;  %v4522_v17 = vcombine.low %v1721_v27, %v1698_v26  ;;  %v1725_v14 = vld [vmem:[#allocation2 + $0x30] sm:$0xe]  ;;  %v1942_v26 = vrot.slane %v6284_v4, 1  ;;  %v6296_v27 = vcombine.low %v1701_v3, %v1702_v45  ;;  %v1845_v3 = vshll.u32 %v6263_v18, 16 }
 0x220   : > { %2539 = vmatprep.mubr.bf16.mxu1 %v2185_v40  ;;  %v1937_v1 = vsel %vm664_vm1, %v1935_v20, %v1936_v5  ;;  %v1816_v40 = vshll.u32 %v6276_v12, 16  ;;  %v4526_v16 = vcombine.low %v1725_v14, %v6278_v13  ;;  %v1948_v5 = vrot.slane %v6323_v46, 1  ;;  %v6361_v14 = vld [vmem:[#allocation2 + $0x1c] sm:$0xf] }
 0x221   : > { %v1929_v30 = vrot.slane %v4522_v17, 1  ;;  %v6298_v17 = vld [vmem:[#allocation2 + $0x44] ss:$0 sps:$4 sm:$0x11]  }
 0x222   : > { %v1818_v25 = vrot.slane %v1816_v40, 1  ;;  %v1941_v55 = vrot.slane %v4526_v16, 1  ;;  %v1945_v62 = vrot.slane %v6298_v17, 1 }
 0x223   : > { %v1931_v11 = vsel %vm664_vm1, %v1929_v30, %v1930_v42  ;;  %v4527_v42 = vcombine.low %v1726_v10, %v6289_v24  ;;  %v5417_v30 = vld [vmem:[%s6926_s3 + $0x1d0] sm:$0xff]  }
 0x224   : > { %5188 = vmatprep.mubr.bf16.mxu0 %v1931_v11  ;;  %v1943_v22 = vsel %vm664_vm1, %v1941_v55, %v1942_v26  ;;  %v1819_v36 = vor.u32 %v1818_v25, %v1814_v19  ;;  %v1833_v11 = vshll.u32 %v6254_v49, 16  ;;  %v6368_v19 = vld [vmem:[#allocation2 + $0x20] ss:$0 sps:$4 sm:$0x11]   ;;  %v3002_v55 = vld [vmem:[#allocation2 + $0x24] sm:$0xf] }
 0x225   : > { %5189 = vmatmul.mubr.bf16.vlgmr.msra.gmra.mxu0 %v1934_v43  ;;  %v6319_v43 = vld [vmem:[#allocation2 + $0x4c] sm:$0xf]  ;;  %v3112_v25 = vshll.u32 %v6368_v19, 16 }
 0x226   : > { %4995 = vmatpush3.bf16.msra.mxu0 %v5393_v34  ;;  %5192 = vmatprep.mubr.bf16.mxu0 %v1937_v1  ;;  %v1944_v34 = vrot.slane %v4527_v42, 1  ;;  %v1824_v15 = vsel %vm523_vm2, %v1819_v36, %v1823_v37  ;;  %v4528_v48 = vcombine.low %v1727_v56, %v6319_v43  ;;  %v1835_v49 = vrot.slane %v1833_v11, 1  ;;  %v3004_v11 = vld [vmem:[#allocation2 + $0x30] sm:$0xf] }
 0x227   : > { %2540 = vmatmul.mubr.bf16.gmra.mxu1 %v6190_v38  ;;  %v1802_v38 = vshrl.u32 %v6240_v41, 16  ;;  %4996 = vmatprep.subr.bf16.mxu0 %v5394_v39  ;;  %v5418_v39 = vld [vmem:[%s6926_s3 + $0x190] sm:$0xff]   ;;  %v3114_v42 = vrot.slane %v3112_v25, 1  ;;  %v1857_v36 = vshll.u32 %v6284_v4, 16 }
 0x228   : > { %2547 = vmatprep.mubr.bf16.mxu1 %v2197_v54  ;;  %v1703_v54 = vld [vmem:[#allocation2 + $0x24] sm:$0xf]  ;;  %v1946_v2 = vsel %vm664_vm1, %v1944_v34, %v1945_v62  ;;  %v1947_v20 = vrot.slane %v4528_v48, 1  ;;  %v6378_v62 = vld [vmem:[#allocation2 + $0x2c] ss:$0 sps:$4 sm:$0x11]  }
 0x229   : > { %v1807_v9 = vor.u32 %v1806_v7, %v1802_v38  ;;  %v5426_v38 = vld [vmem:[%s6926_s3 + $0x1c8] sm:$0xff]   ;;  %v6333_v61 = vcombine.low %v1703_v54, %v6256_v50  ;;  %v6340_v7 = vld [vmem:[#allocation2 + $0x5c] ss:$0 sps:$4 sm:$0x11]   ;;  %v5438_v4 = vld [vmem:[%s6926_s3 + $0x210] sm:$0xff]  }
 0x22a   : > { %4997 = vmatpush3.bf16.msra.mxu0 %v5395_v44  ;;  %v1826_v44 = vshrl.u32 %v6296_v27, 16  ;;  %v5427_v50 = vld [vmem:[%s6926_s3 + $0x188] sm:$0xff]   ;;  %v1949_v1 = vsel %vm664_vm1, %v1947_v20, %v1948_v5 }
 0x22b   : > { %4998 = vmatprep.subr.bf16.mxu0 %v5403_v31  ;;  %v1812_v6 = vsel %vm523_vm2, %v1807_v9, %v1811_v52  ;;  %v1705_v31 = vld [vmem:[#allocation2 + $0x30] sm:$0xf]  ;;  %v1840_v0 = vshll.u32 %v6333_v61, 16 }
 0x22c   : > { %v6357_v9 = vcombine.low %v1705_v31, %v6278_v13  ;;  %v1859_v31 = vrot.slane %v1857_v36, 1 }
 0x22d   : > { %v1842_v16 = vrot.slane %v1840_v0, 1 }
 0x22e   : > { %4999 = vmatpush3.bf16.msra.mxu0 %v5404_v57  ;;  %v5429_v57 = vld [vmem:[%s6926_s3 + $0x180] sm:$0xff]   ;;  %v1852_v10 = vshll.u32 %v6357_v9, 16 }
 0x22f   : > { %2548 = vmatmul.mubr.bf16.gmra.mxu1 %v6210_v32  ;;  %v1940_v32 = vsel %vm664_vm1, %v1938_v35, %v1939_v8  ;;  %5000 = vmatprep.subr.bf16.mxu0 %v5405_v33  ;;  %v1951_v8 = vrot.slane %v6340_v7, 1  ;;  %v1838_v33 = vshrl.u32 %v6333_v61, 16 }
 0x230   : > { %2555 = vmatprep.mubr.bf16.mxu1 %v2209_v51  ;;  %5193 = vmatmul.mubr.bf16.gmra.mxu0 %v1940_v32  ;;  %v1728_v51 = vld [vmem:[#allocation2 + $0x54] sm:$0xe]  ;;  %v3000_v32 = vld [vmem:[#allocation2 + $0x18] sm:$0xf] }
 0x231   : > { %5196 = vmatprep.mubr.bf16.mxu0 %v1943_v22  ;;  %v4650_v13 = vcombine.low %v3000_v32, %v6361_v14  ;;  %v1843_v26 = vor.u32 %v1842_v16, %v1838_v33  ;;  %v6417_v33 = vld [vmem:[#allocation2 + $0x44] ss:$0 sps:$4 sm:$0x11]  }
 0x232   : > { %5001 = vmatpush3.bf16.msra.mxu0 %v5406_v53  ;;  %v5432_v53 = vld [vmem:[%s6926_s3 + $0x220] sm:$0xff]   ;;  %v3148_v25 = vshll.u32 %v6417_v33, 16 }
 0x233   : > { %5002 = vmatprep.subr.bf16.mxu0 %v5415_v58  ;;  %v3105_v18 = vshrl.u32 %v4650_v13, 16  ;;  %v1847_v58 = vrot.slane %v1845_v3, 1 }
 0x234   : > { %v3150_v36 = vrot.slane %v3148_v25, 1 }
 0x236   : > { %5003 = vmatpush3.bf16.msra.mxu0 %v5416_v28  ;;  %v6373_v28 = vld [vmem:[#allocation2 + $0x28] sm:$0xf] }
 0x237   : > { %2556 = vmatmul.mubr.bf16.gmra.mxu1 %v6217_v29  ;;  %v1828_v29 = vshll.u32 %v6296_v27, 16  ;;  %5004 = vmatprep.subr.bf16.mxu0 %v5417_v30  ;;  %v5435_v30 = vld [vmem:[%s6926_s3 + $0x218] sm:$0xff]  }
 0x238   : > { %2837 = vmatprep.mubr.bf16.mxu1 %v1812_v6  ;;  %5197 = vmatmul.mubr.bf16.gmra.mxu0 %v1946_v2  ;;  %v3107_v6 = vshll.u32 %v4650_v13, 16  ;;  %v1848_v2 = vsel %vm523_vm2, %v1843_v26, %v1847_v58  ;;  %v5444_v26 = vld [vmem:[%s6926_s3 + $0x200] sm:$0xff]   ;;  %v1711_v58 = vld [vmem:[#allocation2 + $0x54] sm:$0xf] }
 0x239   : > { %v1830_v45 = vrot.slane %v1828_v29, 1  ;;  %5200 = vmatprep.mubr.bf16.mxu0 %v1949_v1  ;;  %v3124_v29 = vshll.u32 %v6378_v62, 16  ;;  %v6408_v1 = vld [vmem:[#allocation2 + $0x40] sm:$0xf] }
 0x23a   : > { %5005 = vmatpush3.bf16.msra.mxu0 %v5418_v39  ;;  %v3109_v22 = vrot.slane %v3107_v6, 1  ;;  %v1850_v39 = vshrl.u32 %v6357_v9, 16 }
 0x23b   : > { %v1831_v63 = vor.u32 %v1830_v45, %v1826_v44  ;;  %5006 = vmatprep.subr.bf16.mxu0 %v5426_v38  ;;  %v1854_v44 = vrot.slane %v1852_v10, 1  ;;  %v6392_v45 = vld [vmem:[#allocation2 + $0x34] sm:$0xf]  ;;  %v3126_v48 = vrot.slane %v3124_v29, 1  ;;  %v1709_v38 = vld [vmem:[#allocation2 + $0x48] sm:$0xf] }
 0x23c   : > { %v3110_v37 = vor.u32 %v3109_v22, %v3105_v18  ;;  %v6420_v0 = vcombine.low %v1709_v38, %v6319_v43  ;;  %v6427_v18 = vld [vmem:[#allocation2 + $0x4c] sm:$0xf] }
 0x23d   : > { %v1836_v40 = vsel %vm523_vm2, %v1831_v63, %v1835_v49  ;;  %v6401_v49 = vld [vmem:[#allocation2 + $0x38] ss:$0 sps:$4 sm:$0x11]   ;;  %v3006_v63 = vld [vmem:[#allocation2 + $0x3c] sm:$0xf] }
 0x23e   : > { %5007 = vmatpush3.bf16.msra.mxu0 %v5427_v50  ;;  %v3115_v56 = vsel %vm523_vm2, %v3110_v37, %v3114_v42  ;;  %v3136_v50 = vshll.u32 %v6401_v49, 16  ;;  %v1876_v22 = vshll.u32 %v6420_v0, 16  ;;  %v6440_v42 = vld [vmem:[#allocation2 + $0x50] ss:$0 sps:$4 sm:$0x11]  }
 0x23f   : > { %2838 = vmatmul.mubr.bf16.vlgmr.msra.gmra.mxu1 %v6240_v41  ;;  %v4529_v41 = vcombine.low %v1728_v51, %v6329_v59  ;;  %v1855_v51 = vor.u32 %v1854_v44, %v1850_v39 }
 0x240   : > { %5205 = vmatpush3.bf16.msra.mxu1 %v6231_v23  ;;  %2845 = vmatprep.mubr.bf16.mxu1 %v1824_v15  ;;  %v5428_v23 = vld [vmem:[%s6926_s3 + $0x1c0] sm:$0xff]  }
 0x241   : > { %5206 = vmatprep.subr.bf16.mxu1 %v5411_v60  ;;  %v1950_v35 = vrot.slane %v4529_v41, 1  ;;  %5008 = vmatprep.subr.bf16.mxu0 %v5428_v23  ;;  %v5441_v23 = vld [vmem:[%s6926_s3 + $0x208] sm:$0xff]  }
 0x242   : > { %5009 = vmatpush3.bf16.msra.mxu0 %v5429_v57  ;;  %v3138_v57 = vrot.slane %v3136_v50, 1 }
 0x243   : > { %v1952_v52 = vsel %vm664_vm1, %v1950_v35, %v1951_v8  ;;  %v6412_v8 = vcombine.low %v3006_v63, %v6408_v1 }
 0x244   : > { %5207 = vmatpush3.bf16.msra.mxu1 %v5411_v60  ;;  %5201 = vmatmul.mubr.bf16.gmra.mxu0 %v1952_v52  ;;  %v6388_v60 = vcombine.low %v1707_v21, %v6289_v24  ;;  %v6399_v24 = vcombine.low %v3004_v11, %v6392_v45  ;;  %v1878_v11 = vrot.slane %v1876_v22, 1  ;;  %v3025_v22 = vld [vmem:[#allocation2 + $0x24] sm:$0xe] }
 0x245   : > { %5208 = vmatprep.subr.bf16.mxu1 %v5422_v47  ;;  %3489 = vmatprep.mubr.bf16.mxu0 %v3115_v56  ;;  %v3143_v32 = vshll.u32 %v6412_v8, 16  ;;  %v3141_v21 = vshrl.u32 %v6412_v8, 16  ;;  %v3160_v56 = vshll.u32 %v6440_v42, 16 }
 0x246   : > { %v3129_v5 = vshrl.u32 %v6399_v24, 16  ;;  %v1864_v41 = vshll.u32 %v6388_v60, 16  ;;  %v1862_v52 = vshrl.u32 %v6388_v60, 16 }
 0x247   : > { %2846 = vmatmul.mubr.bf16.gmra.mxu1 %v6276_v12  ;;  %v6376_v12 = vcombine.low %v3002_v55, %v6373_v28  ;;  %v3145_v43 = vrot.slane %v3143_v32, 1  ;;  %v3024_v32 = vld [vmem:[#allocation2 + $0x18] sm:$0xe] }
 0x248   : > { %2853 = vmatprep.mubr.bf16.mxu1 %v1836_v40  ;;  %5209 = vmatpush3.bf16.msra.mxu1 %v5422_v47  ;;  %v3131_v47 = vshll.u32 %v6399_v24, 16  ;;  %v1860_v40 = vsel %vm523_vm2, %v1855_v51, %v1859_v31  ;;  %v1866_v16 = vrot.slane %v1864_v41, 1  ;;  %v3162_v31 = vrot.slane %v3160_v56, 1  ;;  %v6460_v51 = vld [vmem:[#allocation2 + $0x64] sm:$0xf] }
 0x249   : > { %5210 = vmatprep.subr.bf16.mxu1 %v5432_v53  ;;  %v3117_v34 = vshrl.u32 %v6376_v12, 16  ;;  %v3119_v54 = vshll.u32 %v6376_v12, 16  ;;  %v3239_v56 = vrot.slane %v6401_v49, 1  ;;  %v3242_v49 = vrot.slane %v6417_v33, 1 }
 0x24b   : > { %v3121_v15 = vrot.slane %v3119_v54, 1  ;;  %v6443_v54 = vld [vmem:[#allocation2 + $0x58] sm:$0xf] }
 0x24c   : > { %5211 = vmatpush3.bf16.msra.mxu1 %v5432_v53  ;;  %3490 = vmatmul.mubr.bf16.vlgmr.msra.gmra.mxu0 %v4650_v13  ;;  %v3008_v53 = vld [vmem:[#allocation2 + $0x48] sm:$0xf]  ;;  %v1869_v13 = vshll.u32 %v6298_v17, 16  ;;  %v1867_v17 = vor.u32 %v1866_v16, %v1862_v52 }
 0x24d   : > { %5212 = vmatprep.subr.bf16.mxu1 %v5435_v30  ;;  %v3122_v20 = vor.u32 %v3121_v15, %v3117_v34  ;;  %v6432_v55 = vcombine.low %v3008_v53, %v6427_v18  ;;  %v3010_v34 = vld [vmem:[#allocation2 + $0x54] sm:$0xf] }
 0x24e   : > { %v1871_v10 = vrot.slane %v1869_v13, 1  ;;  %v4655_v15 = vcombine.low %v3010_v34, %v6443_v54  ;;  %v3014_v13 = vld [vmem:[#allocation2 + $0x6c] sm:$0xf] }
 0x24f   : > { %2854 = vmatmul.mubr.bf16.gmra.mxu1 %v6296_v27  ;;  %v3127_v35 = vsel %vm523_vm2, %v3122_v20, %v3126_v48  ;;  %v3133_v27 = vrot.slane %v3131_v47, 1  ;;  %v3155_v37 = vshll.u32 %v6432_v55, 16  ;;  %v3153_v39 = vshrl.u32 %v6432_v55, 16  ;;  %v6458_v20 = vld [vmem:[#allocation2 + $0x5c] ss:$0 sps:$4 sm:$0x11]  }
 0x250   : > { %2861 = vmatprep.mubr.bf16.mxu1 %v1848_v2  ;;  %5213 = vmatpush3.bf16.msra.mxu1 %v5435_v30  ;;  %v3146_v30 = vor.u32 %v3145_v43, %v3141_v21  ;;  %v1872_v29 = vsel %vm523_vm2, %v1867_v17, %v1871_v10  ;;  %v1881_v2 = vshll.u32 %v6323_v46, 16  ;;  %v3012_v47 = vld [vmem:[#allocation2 + $0x60] sm:$0xf]  ;;  %v3165_v63 = vshrl.u32 %v4655_v15, 16  ;;  %v6472_v21 = vld [vmem:[#allocation2 + $0x70] sm:$0xf] }
 0x251   : > { %5214 = vmatprep.subr.bf16.mxu1 %v5438_v4  ;;  %3497 = vmatprep.mubr.bf16.mxu0 %v3127_v35  ;;  %v3134_v3 = vor.u32 %v3133_v27, %v3129_v5  ;;  %v3167_v5 = vshll.u32 %v4655_v15, 16  ;;  %v4666_v43 = vcombine.low %v3024_v32, %v6361_v14  ;;  %v3233_v10 = vrot.slane %v6368_v19, 1 }
 0x252   : > { %v3151_v44 = vsel %vm523_vm2, %v3146_v30, %v3150_v36  ;;  %v1883_v48 = vrot.slane %v1881_v2, 1  ;;  %v3026_v30 = vld [vmem:[#allocation2 + $0x30] sm:$0xe]  ;;  %v3248_v33 = vrot.slane %v6458_v20, 1 }
 0x253   : > { %v3139_v6 = vsel %vm523_vm2, %v3134_v3, %v3138_v57  ;;  %v3169_v27 = vrot.slane %v3167_v5, 1  ;;  %v4656_v57 = vcombine.low %v3012_v47, %v6460_v51  ;;  %v3232_v17 = vrot.slane %v4666_v43, 1 }
 0x254   : > { %5215 = vmatpush3.bf16.msra.mxu1 %v5438_v4  ;;  %3498 = vmatmul.mubr.bf16.gmra.mxu0 %v6376_v12  ;;  %v1874_v12 = vshrl.u32 %v6420_v0, 16  ;;  %v3157_v4 = vrot.slane %v3155_v37, 1  ;;  %v5455_v37 = vld [vmem:[#allocation2 + $0x74] ss:$0 sps:$4 sm:$0x11]   ;;  %v3245_v47 = vrot.slane %v6440_v42, 1 }
 0x255   : > { %5216 = vmatprep.subr.bf16.mxu1 %v5441_v23  ;;  %3505 = vmatprep.mubr.bf16.mxu0 %v3139_v6  ;;  %v3170_v53 = vor.u32 %v3169_v27, %v3165_v63  ;;  %v3179_v16 = vshll.u32 %v4656_v57, 16  ;;  %v3031_v42 = vld [vmem:[#allocation2 + $0x6c] sm:$0xe] }
 0x256   : > { %v3158_v38 = vor.u32 %v3157_v4, %v3153_v39  ;;  %v3196_v39 = vshll.u32 %v5455_v37, 16 }
 0x257   : > { %2862 = vmatmul.mubr.bf16.gmra.mxu1 %v6333_v61  ;;  %v6446_v61 = vcombine.low %v1711_v58, %v6329_v59  ;;  %v1879_v59 = vor.u32 %v1878_v11, %v1874_v12  ;;  %v3181_v25 = vrot.slane %v3179_v16, 1  ;;  %v4657_v58 = vcombine.low %v3014_v13, %v6472_v21 }
 0x258   : > { %2869 = vmatprep.mubr.bf16.mxu1 %v1860_v40  ;;  %5217 = vmatpush3.bf16.msra.mxu1 %v5441_v23  ;;  %v3163_v35 = vsel %vm523_vm2, %v3158_v38, %v3162_v31  ;;  %v3172_v23 = vshll.u32 %v6458_v20, 16  ;;  %v3234_v12 = vsel %vm664_vm1, %v3232_v17, %v3233_v10  ;;  %v4668_v11 = vcombine.low %v3026_v30, %v6392_v45  ;;  %v3028_v45 = vld [vmem:[#allocation2 + $0x48] sm:$0xe] }
 0x259   : > { %5218 = vmatprep.subr.bf16.mxu1 %v5444_v26  ;;  %v1888_v46 = vshll.u32 %v6446_v61, 16  ;;  %v1886_v41 = vshrl.u32 %v6446_v61, 16  ;;  %v3191_v34 = vshll.u32 %v4657_v58, 16 }
 0x25a   : > { %v3174_v40 = vrot.slane %v3172_v23, 1  ;;  %v3238_v4 = vrot.slane %v4668_v11, 1 }
 0x25b   : > { %v1890_v50 = vrot.slane %v1888_v46, 1  ;;  %v3193_v2 = vrot.slane %v3191_v34, 1 }
 0x25c   : > { %5219 = vmatpush3.bf16.msra.mxu1 %v5444_v26  ;;  %3506 = vmatmul.mubr.bf16.gmra.mxu0 %v6399_v24  ;;  %v1893_v24 = vshll.u32 %v6340_v7, 16  ;;  %v6470_v7 = vld [vmem:[#allocation2 + $0x68] ss:$0 sps:$4 sm:$0x11]   ;;  %v3240_v31 = vsel %vm664_vm1, %v3238_v4, %v3239_v56 }
 0x25d   : > { %3513 = vmatprep.mubr.bf16.mxu0 %v3151_v44  ;;  %v1891_v52 = vor.u32 %v1890_v50, %v1886_v41  ;;  %v3184_v26 = vshll.u32 %v6470_v7, 16  ;;  %v3236_v44 = vrot.slane %v6378_v62, 1  ;;  %v3029_v41 = vld [vmem:[#allocation2 + $0x54] sm:$0xe]  ;;  %v3251_v27 = vrot.slane %v6470_v7, 1 }
 0x25e   : > { %v1895_v3 = vrot.slane %v1893_v24, 1  ;;  %v4671_v50 = vcombine.low %v3029_v41, %v6443_v54 }
 0x25f   : > { %2870 = vmatmul.mubr.bf16.gmra.mxu1 %v6357_v9  ;;  %v1884_v9 = vsel %vm523_vm2, %v1879_v59, %v1883_v48  ;;  %v3186_v36 = vrot.slane %v3184_v26, 1  ;;  %v3027_v59 = vld [vmem:[#allocation2 + $0x3c] sm:$0xe]  ;;  %v3198_v48 = vrot.slane %v3196_v39, 1 }
 0x260   : > { %2877 = vmatprep.mubr.bf16.mxu1 %v1872_v29  ;;  %v1896_v6 = vsel %vm523_vm2, %v1891_v52, %v1895_v3  ;;  %v4667_v29 = vcombine.low %v3025_v22, %v6373_v28  ;;  %v4669_v38 = vcombine.low %v3027_v59, %v6408_v1  ;;  %v3247_v63 = vrot.slane %v4671_v50, 1 }
 0x262   : > { %v3235_v19 = vrot.slane %v4667_v29, 1  ;;  %v3241_v62 = vrot.slane %v4669_v38, 1  ;;  %v3249_v23 = vsel %vm664_vm1, %v3247_v63, %v3248_v33 }
 0x264   : > { %3514 = vmatmul.mubr.bf16.gmra.mxu0 %v6412_v8  ;;  %v3175_v8 = vsel %vm523_vm2, %v3170_v53, %v3174_v40  ;;  %v3237_v46 = vsel %vm664_vm1, %v3235_v19, %v3236_v44  ;;  %v3243_v1 = vsel %vm664_vm1, %v3241_v62, %v3242_v49 }
 0x265   : > { %3521 = vmatprep.mubr.bf16.mxu0 %v3163_v35 }
 0x267   : > { %2878 = vmatmul.mubr.bf16.gmra.mxu1 %v6388_v60  ;;  %v3177_v60 = vshrl.u32 %v4656_v57, 16 }
 0x268   : > { %2885 = vmatprep.mubr.bf16.mxu1 %v1884_v9  ;;  %v3030_v9 = vld [vmem:[#allocation2 + $0x60] sm:$0xe] }
 0x269   : > { %v3182_v14 = vor.u32 %v3181_v25, %v3177_v60  ;;  %v4672_v24 = vcombine.low %v3030_v9, %v6460_v51  ;;  %v3254_v51 = vrot.slane %v5455_v37, 1 }
 0x26b   : > { %v3250_v35 = vrot.slane %v4672_v24, 1 }
 0x26c   : > { %3522 = vmatmul.mubr.bf16.gmra.mxu0 %v6432_v55  ;;  %v3189_v55 = vshrl.u32 %v4657_v58, 16 }
 0x26d   : > { %3529 = vmatprep.mubr.bf16.mxu0 %v3175_v8  ;;  %v3252_v54 = vsel %vm664_vm1, %v3250_v35, %v3251_v27 }
 0x26e   : > { %v3194_v28 = vor.u32 %v3193_v2, %v3189_v55 }
 0x26f   : > { %2886 = vmatmul.mubr.bf16.gmra.mxu1 %v6420_v0  ;;  %v3187_v0 = vsel %vm523_vm2, %v3182_v14, %v3186_v36 }
 0x270   : > { %2893 = vmatprep.mubr.bf16.mxu1 %v1896_v6 }
 0x274   : > { %3530 = vmatmul.mubr.bf16.gmra.mxu0 %v4655_v15  ;;  %v3199_v15 = vsel %vm523_vm2, %v3194_v28, %v3198_v48  ;;  %vm4200_vm2 = vcmask 1044484  }
 0x275   : > { %3537 = vmatprep.mubr.bf16.mxu0 %v3187_v0 }
 0x277   : > { %2894 = vmatmul.mubr.bf16.gmra.mxu1 %v6446_v61  ;;  %v4670_v61 = vcombine.low %v3028_v45, %v6427_v18 }
 0x278   : > { %5220 = vmatprep.mubr.bf16.mxu1 %v3234_v12 }
 0x279   : > { %v3244_v5 = vrot.slane %v4670_v61, 1 }
 0x27b   : > { %v3246_v18 = vsel %vm664_vm1, %v3244_v5, %v3245_v47 }
 0x27c   : > { %3538 = vmatmul.mubr.bf16.gmra.mxu0 %v4656_v57  ;;  %v4673_v57 = vcombine.low %v3031_v42, %v6472_v21 }
 0x27d   : > { %3545 = vmatprep.mubr.bf16.mxu0 %v3199_v15 }
 0x27e   : > { %v3253_v52 = vrot.slane %v4673_v57, 1 }
 0x27f   : > { %5221 = vmatmul.mubr.bf16.vlgmr.msra.gmra.mxu1 %v3237_v46 }
 0x280   : > { %5224 = vmatprep.mubr.bf16.mxu1 %v3240_v31  ;;  %v3255_v3 = vsel %vm664_vm1, %v3253_v52, %v3254_v51  ;;  %vm4198_vm1 = vcmask 1043459  }
 0x284   : > { %3546 = vmatmul.mubr.bf16.gmra.mxu0 %v4657_v58 }
 0x287   : > { %5225 = vmatmul.mubr.bf16.gmra.mxu1 %v3243_v1 }
 0x288   : > { %5228 = vmatprep.mubr.bf16.mxu1 %v3246_v18 }
 0x28f   : > { %5229 = vmatmul.mubr.bf16.gmra.mxu1 %v3249_v23 }
 0x290   : > { %5232 = vmatprep.mubr.bf16.mxu1 %v3252_v54 }
 0x297   : > { %5233 = vmatmul.mubr.bf16.gmra.mxu1 %v3255_v3 }
 0x2bf   : > { %v4850_v32 = vpop.f32.mrf.mxu1 }
 0x2c1   : > { %v5158_v53 = vpop.f32.mrf.mxu0  ;;  %v4851_v20 = vpop.f32.mrf.mxu1 }
 0x2c2   : > { %v4852_v40 = vadd.f32 %v4851_v20, %v4850_v32 }
 0x2c3   : > { %v2598_v16 = vpop.f32.mrf.mxu0  ;;  %v4853_v7 = vpop.f32.mrf.mxu1 }
 0x2c4   : > { %v6506_v13 = vadd.f32 %v4852_v40, %v2598_v16 }
 0x2c5   : > { %v5159_v6 = vpop.f32.mrf.mxu0  ;;  %v4854_v43 = vpop.f32.mrf.mxu1 }
 0x2c6   : > { %v4855_v21 = vadd.f32 %v4854_v43, %v4853_v7 }
 0x2c7   : > { %v2601_v60 = vpop.f32.mrf.mxu0  ;;  %v4856_v8 = vpop.f32.mrf.mxu1 }
 0x2c8   : > { %v6508_v25 = vadd.f32 %v4855_v21, %v2601_v60 }
 0x2c9   : > { %v4857_v26 = vpop.f32.mrf.mxu1  ;;  %v5162_v17 = vpop.f32.mrf.mxu0 }
 0x2ca   : > { %v4858_v58 = vadd.f32 %v4857_v26, %v4856_v8 }
 0x2cb   : > { %v4859_v10 = vpop.f32.mrf.mxu1  ;;  %v2614_v30 = vpop.f32.mrf.mxu0 }
 0x2cc   : > { %v6510_v22 = vadd.f32 %v5158_v53, %v4858_v58 }
 0x2cd   : > { %v4860_v14 = vpop.f32.mrf.mxu1  ;;  %v5163_v12 = vpop.f32.mrf.mxu0 }
 0x2ce   : > { %v4861_v36 = vadd.f32 %v4860_v14, %v4859_v10 }
 0x2cf   : > { %v4862_v37 = vpop.f32.mrf.mxu1  ;;  %v2617_v2 = vpop.f32.mrf.mxu0 }
 0x2d0   : > { %v6512_v34 = vadd.f32 %v5159_v6, %v4861_v36 }
 0x2d1   : > { %v4863_v29 = vpop.f32.mrf.mxu1 }
 0x2d2   : > { %v4864_v11 = vadd.f32 %v4863_v29, %v4862_v37 }
 0x2d3   : > { %v4865_v0 = vpop.f32.mrf.mxu1  ;;  %v5166_v44 = vpop.f32.mrf.mxu0 }
 0x2d4   : > { %v6514_v55 = vadd.f32 %v4864_v11, %v2614_v30 }
 0x2d5   : > { %v4866_v39 = vpop.f32.mrf.mxu1  ;;  %v2630_v59 = vpop.f32.mrf.mxu0 }
 0x2d6   : > { %v4867_v19 = vadd.f32 %v4866_v39, %v4865_v0 }
 0x2d7   : > { %v4868_v4 = vpop.f32.mrf.mxu1  ;;  %v5167_v45 = vpop.f32.mrf.mxu0 }
 0x2d8   : > { %v6516_v56 = vadd.f32 %v4867_v19, %v2617_v2 }
 0x2d9   : > { %v4869_v28 = vpop.f32.mrf.mxu1  ;;  %v2633_v15 = vpop.f32.mrf.mxu0 }
 0x2da   : > { %v4870_v48 = vadd.f32 %v4869_v28, %v4868_v4 }
 0x2db   : > { %v4871_v46 = vpop.f32.mrf.mxu1  ;;  %v5170_v5 = vpop.f32.mrf.mxu0 }
 0x2dc   : > { %v6518_v38 = vadd.f32 %v5162_v17, %v4870_v48 }
 0x2dd   : > { %v4872_v31 = vpop.f32.mrf.mxu1  ;;  %v2646_v9 = vpop.f32.mrf.mxu0 }
 0x2de   : > { %v4873_v61 = vadd.f32 %v4872_v31, %v4871_v46 }
 0x2df   : > { %v4874_v62 = vpop.f32.mrf.mxu1  ;;  %v5171_v18 = vpop.f32.mrf.mxu0 }
 0x2e0   : > { %v6520_v49 = vadd.f32 %v5163_v12, %v4873_v61 }
 0x2e1   : > { %v4875_v47 = vpop.f32.mrf.mxu1  ;;  %v2649_v33 = vpop.f32.mrf.mxu0 }
 0x2e2   : > { %v4876_v41 = vadd.f32 %v4875_v47, %v4874_v62 }
 0x2e3   : > { %v4877_v1 = vpop.f32.mrf.mxu1 }
 0x2e4   : > { %v6522_v50 = vadd.f32 %v4876_v41, %v2630_v59 }
 0x2e5   : > { %v4878_v24 = vpop.f32.mrf.mxu1  ;;  %v6526_v23 = vpop.f32.mrf.mxu0 }
 0x2e6   : > { %v4879_v63 = vadd.f32 %v4878_v24, %v4877_v1 }
 0x2e7   : > { %v4880_v35 = vpop.f32.mrf.mxu1  ;;  %v6528_v52 = vpop.f32.mrf.mxu0 }
 0x2e8   : > { %v6524_v27 = vadd.f32 %v4879_v63, %v2633_v15 }
 0x2e9   : > { %v4881_v42 = vpop.f32.mrf.mxu1  ;;  %v6532_v32 = vpop.f32.mrf.mxu0 }
 0x2ea   : > { %v4882_v57 = vadd.f32 %v4881_v42, %v4880_v35 }
 0x2eb   : > { %v4883_v54 = vpop.f32.mrf.mxu1  ;;  %v6534_v40 = vpop.f32.mrf.mxu0 }
 0x2ec   : > { %v6530_v51 = vadd.f32 %v5166_v44, %v4882_v57  ;;  %6940 = vst [vmem:[#allocation3_spill] sm:$0xff] %v6534_v40 }
 0x2ed   : > { %v4884_v3 = vpop.f32.mrf.mxu1 }
 0x2ee   : > { %v4885_v53 = vadd.f32 %v4884_v3, %v4883_v54 }
 0x2ef   : > { %v4886_v20 = vpop.f32.mrf.mxu1 }
 0x2f0   : > { %v6536_v16 = vadd.f32 %v5167_v45, %v4885_v53  ;;  %v6538_v43 = vpop.f32.mrf.mxu0 }
 0x2f1   : > { %v4887_v7 = vpop.f32.mrf.mxu1  ;;  %6941 = vst [vmem:[#allocation4_spill] sm:$0xff] %v6538_v43 }
 0x2f2   : > { %v4888_v6 = vadd.f32 %v4887_v7, %v4886_v20  ;;  %v6542_v8 = vpop.f32.mrf.mxu0 }
 0x2f3   : > { %v4889_v21 = vpop.f32.mrf.mxu1  ;;  %6942 = vst [vmem:[#allocation5_spill] sm:$0xff] %v6542_v8 }
 0x2f4   : > { %v6540_v60 = vadd.f32 %v4888_v6, %v2646_v9  ;;  %v6544_v17 = vpop.f32.mrf.mxu0 }
 0x2f5   : > { %v4890_v26 = vpop.f32.mrf.mxu1  ;;  %6943 = vst [vmem:[#allocation6_spill] sm:$0xff] %v6544_v17 }
 0x2f6   : > { %v4891_v58 = vadd.f32 %v4890_v26, %v4889_v21  ;;  %v2955_v14 = vpop.f32.mrf.mxu0 }
 0x2f7   : > { %v4892_v10 = vpop.f32.mrf.mxu1 }
 0x2f8   : > { %v6546_v30 = vadd.f32 %v4891_v58, %v2649_v33  ;;  %v6550_v11 = vpop.f32.mrf.mxu0 }
 0x2f9   : > { %v4893_v36 = vpop.f32.mrf.mxu1 }
 0x2fa   : > { %v4894_v37 = vadd.f32 %v4893_v36, %v4892_v10  ;;  %v2968_v39 = vpop.f32.mrf.mxu0 }
 0x2fb   : > { %v4895_v12 = vpop.f32.mrf.mxu1 }
 0x2fc   : > { %v6548_v29 = vadd.f32 %v5170_v5, %v4894_v37  ;;  %v6556_v4 = vpop.f32.mrf.mxu0 }
 0x2fd   : > { %v4896_v0 = vpop.f32.mrf.mxu1 }
 0x2fe   : > { %v4897_v2 = vadd.f32 %v4896_v0, %v4895_v12  ;;  %v2971_v28 = vpop.f32.mrf.mxu0 }
 0x2ff   : > { %v6552_v19 = vpop.f32.mrf.mxu1 }
 0x300   : > { %v6554_v44 = vadd.f32 %v5171_v18, %v4897_v2 }
 0x301   : > { %v6558_v59 = vpop.f32.mrf.mxu1 }
 0x303   : > { %v6560_v48 = vpop.f32.mrf.mxu1 }
 0x304   : > { %v6564_v46 = vpop.f32.mrf.mxu0 }
 0x305   : > { %v6562_v45 = vpop.f32.mrf.mxu1 }
 0x306   : > { %v6568_v61 = vpop.f32.mrf.mxu0 }
 0x307   : > { %v6566_v31 = vpop.f32.mrf.mxu1 }
 0x308   : > { %v6572_v62 = vpop.f32.mrf.mxu0 }
 0x309   : > { %v6570_v15 = vpop.f32.mrf.mxu1 }
 0x30a   : > { %v6576_v47 = vpop.f32.mrf.mxu0 }
 0x30b   : > { %v6574_v5 = vpop.f32.mrf.mxu1 }
 0x30c   : > { %v6582_v1 = vpop.f32.mrf.mxu0 }
 0x30d   : > { %v6578_v41 = vpop.f32.mrf.mxu1 }
 0x30e   : > { %v6586_v24 = vpop.f32.mrf.mxu0 }
 0x30f   : > { %v6580_v9 = vpop.f32.mrf.mxu1 }
 0x310   : > { %v6588_v33 = vpop.f32.mrf.mxu0 }
 0x311   : > { %v6584_v18 = vpop.f32.mrf.mxu1 }
 0x312   : > { %v6590_v42 = vpop.f32.mrf.mxu0 }
 0x313   : > { %v4945_v63 = vpop.f32.mrf.mxu1 }
 0x314   : > { %v6594_v3 = vpop.f32.mrf.mxu0 }
 0x315   : > { %v4946_v35 = vpop.f32.mrf.mxu1 }
 0x316   : > { %v4947_v57 = vadd.f32 %v4946_v35, %v4945_v63  ;;  %v6599_v7 = vpop.f32.mrf.mxu0 }
 0x317   : > { %v6592_v54 = vpop.f32.mrf.mxu1 }
 0x318   : > { %v2859_v53 = vadd.f32 %v4947_v57, %v6516_v56  ;;  %v6605_v26 = vpop.f32.mrf.mxu0 }
 0x319   : > { %v6597_v20 = vpop.f32.mrf.mxu1 }
 0x31a   : > { %v6601_v6 = vadd.f32 %v2955_v14, %v2859_v53  ;;  %v6609_v10 = vpop.f32.mrf.mxu0 }
 0x31b   : > { %v6603_v21 = vpop.f32.mrf.mxu1 }
 0x31c   : > { %6944 = vst [vmem:[#allocation7_spill] sm:$0xff] %v6601_v6  ;;  %v6611_v37 = vpop.f32.mrf.mxu0 }
 0x31d   : > { %v6607_v58 = vpop.f32.mrf.mxu1  ;;  %6945 = vst [vmem:[#allocation8_spill] sm:$0xff] %v6611_v37 }
 0x31e   : > { %v6613_v0 = vpop.f32.mrf.mxu0 }
 0x31f   : > { %v4954_v36 = vpop.f32.mrf.mxu1  ;;  %6946 = vst [vmem:[#allocation9_spill] sm:$0xff] %v6613_v0 }
 0x320   : > { %v6615_v63 = vpop.f32.mrf.mxu0 }
 0x321   : > { %v4955_v12 = vpop.f32.mrf.mxu1  ;;  %6947 = vst [vmem:[#allocation10_spill] sm:$0xff] %v6615_v63 }
 0x322   : > { %v4956_v56 = vadd.f32 %v4955_v12, %v4954_v36  ;;  %v6618_v57 = vpop.f32.mrf.mxu0 }
 0x323   : > { %v4957_v2 = vpop.f32.mrf.mxu1 }
 0x324   : > { %v2872_v14 = vadd.f32 %v4956_v56, %v6522_v50  ;;  %v6622_v8 = vpop.f32.mrf.mxu0 }
 0x325   : > { %v4958_v35 = vpop.f32.mrf.mxu1 }
 0x326   : > { %v4959_v53 = vadd.f32 %v4958_v35, %v4957_v2  ;;  %v6620_v6 = vadd.f32 %v2968_v39, %v2872_v14  ;;  %v6625_v40 = vpop.f32.mrf.mxu0 }
 0x327   : > { %v4960_v17 = vpop.f32.mrf.mxu1 }
 0x328   : > { %v2875_v43 = vadd.f32 %v4959_v53, %v6524_v27  ;;  %v6629_v0 = vpop.f32.mrf.mxu0 }
 0x329   : > { %v4961_v37 = vpop.f32.mrf.mxu1 }
 0x32a   : > { %v4962_v36 = vadd.f32 %v4961_v37, %v4960_v17  ;;  %v6627_v12 = vadd.f32 %v2971_v28, %v2875_v43  ;;  %v6632_v2 = vpop.f32.mrf.mxu0 }
 0x32b   : > { %v4963_v63 = vpop.f32.mrf.mxu1 }
 0x32c   : > { %6948 = vst [vmem:[#allocation11_spill] sm:$0xff] %v6627_v12  ;;  %v2880_v50 = vadd.f32 %v4962_v36, %v6530_v51  ;;  %v6637_v27 = vpop.f32.mrf.mxu0 }
 0x32d   : > { %v4964_v56 = vpop.f32.mrf.mxu1 }
 0x32e   : > { %v4965_v39 = vadd.f32 %v4964_v56, %v4963_v63  ;;  %v6635_v14 = vadd.f32 %v6550_v11, %v2880_v50  ;;  %v6640_v43 = vpop.f32.mrf.mxu0 }
 0x32f   : > { %v4966_v35 = vpop.f32.mrf.mxu1 }
 0x330   : > { %v2883_v53 = vadd.f32 %v4965_v39, %v6536_v16  ;;  %v6645_v36 = vpop.f32.mrf.mxu0 }
 0x331   : > { %v4967_v17 = vpop.f32.mrf.mxu1 }
 0x332   : > { %v4968_v28 = vadd.f32 %v4967_v17, %v4966_v35  ;;  %v6643_v37 = vadd.f32 %v6556_v4, %v2883_v53  ;;  %v6648_v11 = vpop.f32.mrf.mxu0  ;;  %v4938_v35 = vadd.f32 %v6570_v15, %v6566_v31  ;;  %v4932_v53 = vadd.f32 %v6558_v59, %v6552_v19 }
 0x333   : > { %v4969_v51 = vpop.f32.mrf.mxu1  ;;  %v4935_v19 = vadd.f32 %v6562_v45, %v6560_v48  ;;  %v4953_v48 = vadd.f32 %v6607_v58, %v6603_v21 }
 0x334   : > { %v2888_v63 = vadd.f32 %v4968_v28, %v6540_v60  ;;  %v6653_v39 = vpop.f32.mrf.mxu0  ;;  %v2848_v31 = vadd.f32 %v4938_v35, %v6510_v22  ;;  %v2840_v15 = vadd.f32 %v4932_v53, %v6506_v13  ;;  %v4944_v13 = vadd.f32 %v6584_v18, %v6580_v9  ;;  %v6696_v9 = vld [vmem:[%s6928_s5] ss:$0 sm:$0xff] }
 0x335   : > { %v4970_v56 = vpop.f32.mrf.mxu1 }
 0x336   : > { %v4971_v50 = vadd.f32 %v4970_v56, %v4969_v51  ;;  %v6651_v12 = vadd.f32 %v6568_v61, %v2888_v63  ;;  %v6660_v60 = vpop.f32.mrf.mxu0  ;;  %v4941_v61 = vadd.f32 %v6578_v41, %v6574_v5  ;;  %v5018_v5 = vadd.f32 %v6599_v7, %v6594_v3 }
 0x337   : > { %v4972_v16 = vpop.f32.mrf.mxu1  ;;  %v5012_v3 = vadd.f32 %v6586_v24, %v6582_v1  ;;  %v2937_v18 = vadd.f32 %v6528_v52, %v2840_v15  ;;  %v5021_v1 = vadd.f32 %v6609_v10, %v6605_v26 }
 0x338   : > { %v2891_v4 = vadd.f32 %v4971_v50, %v6546_v30  ;;  %v6667_v56 = vpop.f32.mrf.mxu0  ;;  %v5503_v50 = vmov 1983009808   ;;  %v2851_v22 = vadd.f32 %v4941_v61, %v6512_v34  ;;  %v2843_v34 = vadd.f32 %v4935_v19, %v6508_v25 }
 0x339   : > { %v4973_v17 = vpop.f32.mrf.mxu1  ;;  %v2856_v25 = vadd.f32 %v4944_v13, %v6514_v55  ;;  %v2867_v61 = vadd.f32 %v4953_v48, %v6520_v49  ;;  %v6949_v49 = vld [vmem:[#allocation3_spill] sm:$0xff]  ;;  %v6954_v48 = vld [vmem:[#allocation6_spill] sm:$0xff] }
 0x33a   : > { %v4974_v28 = vadd.f32 %v4973_v17, %v4972_v16  ;;  %v6663_v51 = vadd.f32 %v6576_v47, %v2891_v4  ;;  %v3740_v16 = vunpack.c.l.s4 %v5503_v50  ;;  %v3742_v47 = vlaneseq  ;;  %v6674_v4 = vpop.f32.mrf.mxu0 }
 0x33b   : > { %v4975_v63 = vpop.f32.mrf.mxu1  ;;  %v2948_v52 = vadd.f32 %v6532_v32, %v2851_v22  ;;  %v2940_v19 = vadd.f32 %v6949_v49, %v2843_v34  ;;  %v6952_v22 = vld [vmem:[#allocation4_spill] sm:$0xff] }
 0x33c   : > { %v2896_v30 = vadd.f32 %v4974_v28, %v6548_v29  ;;  %v4950_v29 = vadd.f32 %v6597_v20, %v6592_v54  ;;  %v5046_v35 = vpop.f32.mrf.mxu0  ;;  %v3741_v20 = vunpack.c.0.s8 %v3740_v16  ;;  %v3743_v21 = vshrl.u32 %v3742_v47, 7  ;;  %v6950_v47 = vld [vmem:[#allocation8_spill] sm:$0xff] }
 0x33d   : > { %v4976_v59 = vpop.f32.mrf.mxu1 }
 0x33e   : > { %v4977_v41 = vadd.f32 %v4976_v59, %v4975_v63  ;;  %v6679_v17 = vadd.f32 %v6564_v46, %v2896_v30  ;;  %v2945_v46 = vadd.f32 %v6526_v23, %v2848_v31  ;;  %v5047_v58 = vpop.f32.mrf.mxu0  ;;  %v2864_v28 = vadd.f32 %v4950_v29, %v6518_v38 }
 0x33f   : > { %v5222_v45 = vpop.f32.mrf.mxu1  ;;  %v5015_v30 = vadd.f32 %v6590_v42, %v6588_v33  ;;  %v6713_v55 = vsub.s32 %v3741_v20, %v3743_v21  ;;  %v6715_v38 = vsub.s32 0, %v3743_v21  ;;  %v5033_v20 = vadd.f32 %v6632_v2, %v6629_v0 }
 0x340   : > { %v2899_v7 = vadd.f32 %v4977_v41, %v6554_v44  ;;  %v3597_v53 = vadd.f32 %v5222_v45, %v5018_v5  ;;  %v5049_v31 = vpop.f32.mrf.mxu0  ;;  %v6951_v5 = vld [vmem:[#allocation9_spill] sm:$0xff]  ;;  %v2961_v13 = vadd.f32 %v6952_v22, %v2864_v28  ;;  %v2964_v45 = vadd.f32 %v6954_v48, %v2867_v61 }
 0x341   : > { %v3588_v54 = vpop.f32.mrf.mxu1  ;;  %v5024_v41 = vadd.f32 %v6951_v5, %v6950_v47  ;;  %v6733_v21 = vadd.f32 %v6640_v43, %v6637_v27  ;;  %v6744_v0 = vadd.f32 %v6660_v60, %v6653_v39  ;;  %v6748_v2 = vadd.f32 %v6674_v4, %v6667_v56 }
 0x342   : > { %v3653_v44 = vadd.f32 %v3597_v53, %v2945_v46  ;;  %v3589_v24 = vadd.f32 %v5012_v3, %v3588_v54  ;;  %v6702_v23 = vadd.f32 %v6572_v62, %v2899_v7  ;;  %v5030_v62 = vadd.f32 %v6625_v40, %v6622_v8  ;;  %v5050_v59 = vpop.f32.mrf.mxu0  ;;  %v6953_v8 = vld [vmem:[#allocation5_spill] sm:$0xff] }
 0x343   : > { %v5223_v63 = vpop.f32.mrf.mxu1  ;;  %v2953_v29 = vadd.f32 %v6953_v8, %v2856_v25  ;;  %v6750_v43 = vadd.f32 %v5047_v58, %v5046_v35  ;;  %v6756_v4 = vadd.f32 %v5050_v59, %v5049_v31 }
 0x344   : > { %v3676_v26 = vadd.f32 %v6696_v9, %v3653_v44  ;;  %v3651_v10 = vadd.f32 %v3589_v24, %v2937_v18  ;;  %v3600_v15 = vadd.f32 %v5223_v63, %v5021_v1  ;;  %v5052_v34 = vpop.f32.mrf.mxu0  ;;  %v6955_v18 = vld [vmem:[#allocation10_spill] sm:$0xff]  ;;  %v6737_v1 = vadd.f32 %v6648_v11, %v6645_v36 }
 0x345   : > { %v3591_v32 = vpop.f32.mrf.mxu1  ;;  %v5027_v54 = vadd.f32 %v6618_v57, %v6955_v18 }
 0x346   : > { %v3692_v50 = vmax.f32 %v3676_v26, 0.0  ;;  %v3674_v16 = vadd.f32 %v6696_v9, %v3651_v10  ;;  %v3654_v33 = vadd.f32 %v3600_v15, %v2948_v52  ;;  %v3592_v42 = vadd.f32 %v5015_v30, %v3591_v32  ;;  %v5053_v39 = vpop.f32.mrf.mxu0 }
 0x347   : > { %v5226_v40 = vpop.f32.mrf.mxu1  ;;  %v6758_v35 = vadd.f32 %v5053_v39, %v5052_v34 }
 0x348   : > { %3708 = vst.msk [vmem:[%s5600_s14 + $0x10] sm:$0xff] %vm736_vm4, %v3692_v50  ;;  %v3690_v3 = vmax.f32 %v3674_v16, 0.0  ;;  %v3677_v7 = vadd.f32 %v6696_v9, %v3654_v33  ;;  %v3652_v46 = vadd.f32 %v3592_v42, %v2940_v19  ;;  %v3613_v53 = vadd.f32 %v5226_v40, %v5030_v62 }
 0x349   : > { %v3604_v44 = vpop.f32.mrf.mxu1 }
 0x34a   : > { %3706 = vst.msk [vmem:[%s5600_s14] sm:$0xff] %vm736_vm4, %v3690_v3  ;;  %v3722_v24 = vmax.f32 %v3690_v3, %v3692_v50  ;;  %v3693_v25 = vmax.f32 %v3677_v7, 0.0  ;;  %v3675_v28 = vadd.f32 %v6696_v9, %v3652_v46  ;;  %v3657_v57 = vadd.f32 %v3613_v53, %v2961_v13 }
 0x34b   : > { %v3605_v27 = vadd.f32 %v5024_v41, %v3604_v44  ;;  %v5227_v36 = vpop.f32.mrf.mxu1 }
 0x34c   : > { %v3738_v11 = vcombine.high %v3722_v24, %v3722_v24  ;;  %v3745_v61 = vrot.slane %v3722_v24, %v6713_v55  ;;  %3709 = vst.msk [vmem:[%s5600_s14 + $0x18] sm:$0xff] %vm736_vm4, %v3693_v25  ;;  %v3691_v52 = vmax.f32 %v3675_v28, 0.0  ;;  %v3680_v63 = vadd.f32 %v6696_v9, %v3657_v57 }
 0x34d   : > { %v3655_v60 = vadd.f32 %v3605_v27, %v2953_v29  ;;  %v3616_v30 = vadd.f32 %v5227_v36, %v5033_v20  ;;  %v3607_v56 = vpop.f32.mrf.mxu1 }
 0x34e   : > { %v3752_v58 = vrot.slane %v3738_v11, %v6713_v55  ;;  %v3753_v26 = vcombine.high %v3745_v61, %v3745_v61  ;;  %v4747_v10 = vrot.slane %v3745_v61, 9  ;;  %3707 = vst.msk [vmem:[%s5600_s14 + $0x8] sm:$0xff] %vm736_vm4, %v3691_v52  ;;  %v3723_v15 = vmax.f32 %v3691_v52, %v3693_v25 }
 0x34f   : > { %v3696_v62 = vmax.f32 %v3680_v63, 0.0  ;;  %v3678_v49 = vadd.f32 %v6696_v9, %v3655_v60  ;;  %v3658_v19 = vadd.f32 %v3616_v30, %v2964_v45  ;;  %v3608_v32 = vadd.f32 %v5027_v54, %v3607_v56  ;;  %v6764_v50 = vpop.f32.mrf.mxu1 }
 0x350   : > { %v3754_v31 = vcombine.high %v3752_v58, %v3752_v58  ;;  %v4748_v59 = vrot.slane %v3753_v26, 9  ;;  %v4749_v16 = vrot.slane %v3752_v58, 9  ;;  %v4002_v33 = vmax.f32 %v3745_v61, %v4747_v10 }
 0x351   : > { %v3755_v42 = vcombine.high %v3723_v15, %v3723_v15  ;;  %v3762_v47 = vrot.slane %v3723_v15, %v6713_v55  ;;  %3712 = vst.msk [vmem:[%s5600_s14 + $0x30] sm:$0xff] %vm736_vm4, %v3696_v62  ;;  %v3694_v5 = vmax.f32 %v3678_v49, 0.0  ;;  %v6770_v41 = vadd.f32 %v6696_v9, %v3658_v19  ;;  %v3620_v22 = vpop.f32.mrf.mxu1 }
 0x352   : > { %v4750_v13 = vrot.slane %v3754_v31, 9  ;;  %v4003_v40 = vmax.f32 %v3753_v26, %v4748_v59  ;;  %v4004_v8 = vmax.f32 %v3752_v58, %v4749_v16  ;;  %v4069_v29 = vrot.slane %v4002_v33, %v6715_v38 }
 0x353   : > { %v3769_v48 = vrot.slane %v3755_v42, %v6713_v55  ;;  %v3770_v45 = vcombine.high %v3762_v47, %v3762_v47  ;;  %v4751_v3 = vrot.slane %v3762_v47, 9  ;;  %3710 = vst.msk [vmem:[%s5600_s14 + $0x20] sm:$0xff] %vm736_vm4, %v3694_v5  ;;  %v3724_v7 = vmax.f32 %v3694_v5, %v3696_v62  ;;  %v5231_v25 = vpop.f32.mrf.mxu1  ;;  %v5055_v62 = vpop.f32.mrf.mxu0  ;;  %v6956_v5 = vld [vmem:[#allocation7_spill] sm:$0xff] }
 0x354   : > { %v4005_v46 = vmax.f32 %v3754_v31, %v4750_v13  ;;  %v4073_v53 = vrot.slane %v4003_v40, %v6715_v38  ;;  %v4077_v34 = vrot.slane %v4004_v8, %v6715_v38  ;;  %v3697_v18 = vmax.f32 %v6770_v41, 0.0 }
 0x355   : > { %v3771_v54 = vcombine.high %v3769_v48, %v3769_v48  ;;  %v4752_v20 = vrot.slane %v3770_v45, 9  ;;  %v4753_v44 = vrot.slane %v3769_v48, 9  ;;  %v4006_v24 = vmax.f32 %v3762_v47, %v4751_v3  ;;  %v3623_v49 = vpop.f32.mrf.mxu1 }
 0x356   : > { %v4081_v28 = vrot.slane %v4005_v46, %v6715_v38  ;;  %v4195_v57 = vsel %vm4194_vm15, %v4073_v53, %v4069_v29  ;;  %v3772_v27 = vcombine.high %v3724_v7, %v3724_v7  ;;  %v3779_v36 = vrot.slane %v3724_v7, %v6713_v55  ;;  %3713 = vst.msk [vmem:[%s5600_s14 + $0x38] sm:$0xff] %vm736_vm4, %v3697_v18  ;;  %v5056_v46 = vpop.f32.mrf.mxu0 }
 0x357   : > { %v4197_v11 = vsel %vm4196_vm0, %v4077_v34, %v4195_v57  ;;  %v4754_v61 = vrot.slane %v3771_v54, 9  ;;  %v4007_v52 = vmax.f32 %v3770_v45, %v4752_v20  ;;  %v4008_v63 = vmax.f32 %v3769_v48, %v4753_v44  ;;  %v5234_v53 = vpop.f32.mrf.mxu1 }
 0x358   : > { %v4085_v39 = vrot.slane %v4006_v24, %v6715_v38  ;;  %v4199_v60 = vsel %vm4198_vm1, %v4081_v28, %v4197_v11  ;;  %v3786_v30 = vrot.slane %v3772_v27, %v6713_v55  ;;  %v3787_v56 = vcombine.high %v3779_v36, %v3779_v36 }
 0x359   : > { %v4009_v58 = vmax.f32 %v3771_v54, %v4754_v61  ;;  %v4089_v26 = vrot.slane %v4007_v52, %v6715_v38  ;;  %v4093_v10 = vrot.slane %v4008_v63, %v6715_v38  ;;  %v4755_v15 = vrot.slane %v3779_v36, 9  ;;  %v6957_v61 = vld [vmem:[#allocation11_spill] sm:$0xff] }
 0x35a   : > { %v4201_v19 = vsel %vm4200_vm2, %v4085_v39, %v4199_v60  ;;  %v3788_v31 = vcombine.high %v3786_v30, %v3786_v30  ;;  %v4756_v59 = vrot.slane %v3787_v56, 9  ;;  %v4757_v16 = vrot.slane %v3786_v30, 9 }
 0x35b   : > { %v4097_v33 = vrot.slane %v4009_v58, %v6715_v38  ;;  %v4203_v42 = vsel %vm4202_vm3, %v4089_v26, %v4201_v19  ;;  %v4010_v47 = vmax.f32 %v3779_v36, %v4755_v15  ;;  %v3656_v41 = vadd.f32 %v3608_v32, %v6956_v5 }
 0x35c   : > { %v4205_v13 = vsel %vm4204_vm5, %v4093_v10, %v4203_v42  ;;  %v4758_v40 = vrot.slane %v3788_v31, 9  ;;  %v4011_v8 = vmax.f32 %v3787_v56, %v4756_v59  ;;  %v4012_v29 = vmax.f32 %v3786_v30, %v4757_v16 }
 0x35d   : > { %v4207_v48 = vsel %vm4206_vm6, %v4097_v33, %v4205_v13  ;;  %v4101_v45 = vrot.slane %v4010_v47, %v6715_v38  ;;  %v3679_v3 = vadd.f32 %v6696_v9, %v3656_v41  ;;  %v3629_v7 = vadd.f32 %v6764_v50, %v6744_v0 }
 0x35e   : > { %4233 = vst.msk [vmem:[%s5621_s18] sm:$0xff] %vm736_vm4, %v4207_v48  ;;  %v4013_v32 = vmax.f32 %v3788_v31, %v4758_v40  ;;  %v4105_v34 = vrot.slane %v4011_v8, %v6715_v38  ;;  %v4109_v54 = vrot.slane %v4012_v29, %v6715_v38  ;;  %v3621_v20 = vadd.f32 %v6733_v21, %v3620_v22 }
 0x35f   : > { %v3695_v44 = vmax.f32 %v3679_v3, 0.0  ;;  %v3661_v24 = vadd.f32 %v3629_v7, %v6635_v14  ;;  %v3632_v28 = vadd.f32 %v5231_v25, %v6748_v2  ;;  %v3624_v57 = vadd.f32 %v6737_v1, %v3623_v49  ;;  %v3636_v2 = vpop.f32.mrf.mxu1 }
 0x360   : > { %v4113_v0 = vrot.slane %v4013_v32, %v6715_v38  ;;  %v4208_v50 = vsel %vm4194_vm15, %v4105_v34, %v4101_v45  ;;  %v3659_v27 = vadd.f32 %v3621_v20, %v6620_v6  ;;  %v6811_v36 = vadd.f32 %v5056_v46, %v5055_v62 }
 0x361   : > { %v4209_v11 = vsel %vm4196_vm0, %v4109_v54, %v4208_v50  ;;  %3711 = vst.msk [vmem:[%s5600_s14 + $0x28] sm:$0xff] %vm736_vm4, %v3695_v44  ;;  %v3725_v21 = vmax.f32 %v3695_v44, %v3697_v18  ;;  %v3684_v22 = vadd.f32 %v6696_v9, %v3661_v24  ;;  %v3662_v14 = vadd.f32 %v3632_v28, %v6643_v37 }
 0x362   : > { %v4210_v1 = vsel %vm4198_vm1, %v4113_v0, %v4209_v11  ;;  %v3682_v25 = vadd.f32 %v6696_v9, %v3659_v27  ;;  %v3660_v6 = vadd.f32 %v3624_v57, %v6957_v61  ;;  %v3645_v52 = vadd.f32 %v5234_v53, %v6758_v35 }
 0x363   : > { %v3789_v63 = vcombine.high %v3725_v21, %v3725_v21  ;;  %v3796_v39 = vrot.slane %v3725_v21, %v6713_v55  ;;  %v3700_v60 = vmax.f32 %v3684_v22, 0.0  ;;  %v3685_v18 = vadd.f32 %v6696_v9, %v3662_v14  ;;  %v5235_v21 = vpop.f32.mrf.mxu1 }
 0x364   : > { %v3698_v30 = vmax.f32 %v3682_v25, 0.0  ;;  %v3683_v37 = vadd.f32 %v6696_v9, %v3660_v6  ;;  %v3665_v56 = vadd.f32 %v3645_v52, %v6679_v17  ;;  %v3637_v58 = vadd.f32 %v6750_v43, %v3636_v2 }
 0x365   : > { %v3803_v26 = vrot.slane %v3789_v63, %v6713_v55  ;;  %v3804_v10 = vcombine.high %v3796_v39, %v3796_v39  ;;  %v4759_v15 = vrot.slane %v3796_v39, 9  ;;  %3716 = vst.msk [vmem:[%s5600_s14 + $0x50] sm:$0xff] %vm736_vm4, %v3700_v60  ;;  %v3701_v35 = vmax.f32 %v3685_v18, 0.0 }
 0x366   : > { %3714 = vst.msk [vmem:[%s5600_s14 + $0x40] sm:$0xff] %vm736_vm4, %v3698_v30  ;;  %v3726_v62 = vmax.f32 %v3698_v30, %v3700_v60  ;;  %v3699_v49 = vmax.f32 %v3683_v37, 0.0  ;;  %v6833_v19 = vadd.f32 %v6696_v9, %v3665_v56  ;;  %v3663_v17 = vadd.f32 %v3637_v58, %v6651_v12 }
 0x367   : > { %v3805_v31 = vcombine.high %v3803_v26, %v3803_v26  ;;  %v4760_v59 = vrot.slane %v3804_v10, 9  ;;  %v4761_v43 = vrot.slane %v3803_v26, 9  ;;  %v4014_v16 = vmax.f32 %v3796_v39, %v4759_v15  ;;  %3717 = vst.msk [vmem:[%s5600_s14 + $0x58] sm:$0xff] %vm736_vm4, %v3701_v35 }
 0x368   : > { %v3806_v33 = vcombine.high %v3726_v62, %v3726_v62  ;;  %v3813_v42 = vrot.slane %v3726_v62, %v6713_v55  ;;  %3715 = vst.msk [vmem:[%s5600_s14 + $0x48] sm:$0xff] %vm736_vm4, %v3699_v49  ;;  %v3727_v47 = vmax.f32 %v3699_v49, %v3701_v35  ;;  %v3704_v5 = vmax.f32 %v6833_v19, 0.0 }
 0x369   : > { %v4762_v41 = vrot.slane %v3805_v31, 9  ;;  %v4015_v13 = vmax.f32 %v3804_v10, %v4760_v59  ;;  %v4016_v40 = vmax.f32 %v3803_v26, %v4761_v43  ;;  %v4117_v12 = vrot.slane %v4014_v16, %v6715_v38  ;;  %v3639_v26 = vpop.f32.mrf.mxu1 }
 0x36a   : > { %v3820_v8 = vrot.slane %v3806_v33, %v6713_v55  ;;  %v3821_v29 = vcombine.high %v3813_v42, %v3813_v42  ;;  %v4763_v48 = vrot.slane %v3813_v42, 9  ;;  %v3823_v45 = vcombine.high %v3727_v47, %v3727_v47  ;;  %3720 = vst.msk [vmem:[%s5600_s14 + $0x70] sm:$0xff] %vm736_vm4, %v3704_v5 }
 0x36b   : > { %v4017_v3 = vmax.f32 %v3805_v31, %v4762_v41  ;;  %v4121_v7 = vrot.slane %v4015_v13, %v6715_v38  ;;  %v4125_v46 = vrot.slane %v4016_v40, %v6715_v38  ;;  %v4211_v53 = vsel %vm4200_vm2, %v4117_v12, %v4210_v1 }
 0x36c   : > { %v3822_v32 = vcombine.high %v3820_v8, %v3820_v8  ;;  %v4764_v34 = vrot.slane %v3821_v29, 9  ;;  %v4765_v54 = vrot.slane %v3820_v8, 9  ;;  %v4018_v20 = vmax.f32 %v3813_v42, %v4763_v48 }
 0x36d   : > { %v4129_v44 = vrot.slane %v4017_v3, %v6715_v38  ;;  %v4212_v24 = vsel %vm4202_vm3, %v4121_v7, %v4211_v53  ;;  %v3830_v28 = vrot.slane %v3727_v47, %v6713_v55  ;;  %v3837_v57 = vrot.slane %v3823_v45, %v6713_v55 }
 0x36e   : > { %v4213_v0 = vsel %vm4204_vm5, %v4125_v46, %v4212_v24  ;;  %v4766_v50 = vrot.slane %v3822_v32, 9  ;;  %v4019_v27 = vmax.f32 %v3821_v29, %v4764_v34  ;;  %v4020_v11 = vmax.f32 %v3820_v8, %v4765_v54 }
 0x36f   : > { %v4214_v22 = vsel %vm4206_vm6, %v4129_v44, %v4213_v0  ;;  %v4133_v14 = vrot.slane %v4018_v20, %v6715_v38  ;;  %v3838_v2 = vcombine.high %v3830_v28, %v3830_v28  ;;  %v3839_v1 = vcombine.high %v3837_v57, %v3837_v57 }
 0x370   : > { %4234 = vst.msk [vmem:[%s5621_s18 + $0x8] sm:$0xff] %vm736_vm4, %v4214_v22  ;;  %v4021_v25 = vmax.f32 %v3822_v32, %v4766_v50  ;;  %v4137_v61 = vrot.slane %v4019_v27, %v6715_v38  ;;  %v4141_v6 = vrot.slane %v4020_v11, %v6715_v38  ;;  %v4767_v52 = vrot.slane %v3830_v28, 9 }
 0x371   : > { %v4768_v63 = vrot.slane %v3838_v2, 9  ;;  %v4769_v39 = vrot.slane %v3837_v57, 9  ;;  %v4770_v60 = vrot.slane %v3839_v1, 9  ;;  %v3686_v18 = vadd.f32 %v6696_v9, %v3663_v17 }
 0x372   : > { %v4145_v30 = vrot.slane %v4021_v25, %v6715_v38  ;;  %v4215_v37 = vsel %vm4194_vm15, %v4137_v61, %v4133_v14  ;;  %v4022_v56 = vmax.f32 %v3830_v28, %v4767_v52  ;;  %v3648_v58 = vadd.f32 %v5235_v21, %v6811_v36 }
 0x373   : > { %v4216_v10 = vsel %vm4196_vm0, %v4141_v6, %v4215_v37  ;;  %v4023_v15 = vmax.f32 %v3838_v2, %v4768_v63  ;;  %v4024_v35 = vmax.f32 %v3837_v57, %v4769_v39  ;;  %v4025_v62 = vmax.f32 %v3839_v1, %v4770_v60 }
 0x374   : > { %v4149_v49 = vrot.slane %v4022_v56, %v6715_v38  ;;  %v4217_v19 = vsel %vm4198_vm1, %v4145_v30, %v4216_v10  ;;  %v3702_v31 = vmax.f32 %v3686_v18, 0.0  ;;  %v3666_v17 = vadd.f32 %v3648_v58, %v6702_v23 }
 0x375   : > { %v4153_v59 = vrot.slane %v4023_v15, %v6715_v38  ;;  %v4157_v43 = vrot.slane %v4024_v35, %v6715_v38  ;;  %v4161_v36 = vrot.slane %v4025_v62, %v6715_v38  ;;  %v3640_v16 = vadd.f32 %v6756_v4, %v3639_v26 }
 0x376   : > { %v4218_v33 = vsel %vm4200_vm2, %v4149_v49, %v4217_v19  ;;  %3718 = vst.msk [vmem:[%s5600_s14 + $0x60] sm:$0xff] %vm736_vm4, %v3702_v31  ;;  %v3728_v42 = vmax.f32 %v3702_v31, %v3704_v5  ;;  %v3689_v47 = vadd.f32 %v6696_v9, %v3666_v17 }
 0x377   : > { %v4219_v41 = vsel %vm4202_vm3, %v4153_v59, %v4218_v33  ;;  %v3664_v23 = vadd.f32 %v3640_v16, %v6663_v51 }
 0x378   : > { %v4220_v13 = vsel %vm4204_vm5, %v4157_v43, %v4219_v41  ;;  %v3840_v40 = vcombine.high %v3728_v42, %v3728_v42  ;;  %v3847_v12 = vrot.slane %v3728_v42, %v6713_v55  ;;  %v3705_v8 = vmax.f32 %v3689_v47, 0.0 }
 0x379   : > { %v4221_v4 = vsel %vm4206_vm6, %v4161_v36, %v4220_v13  ;;  %v3687_v29 = vadd.f32 %v6696_v9, %v3664_v23 }
 0x37a   : > { %4235 = vst.msk [vmem:[%s5621_s18 + $0x10] sm:$0xff] %vm736_vm4, %v4221_v4  ;;  %v3854_v5 = vrot.slane %v3840_v40, %v6713_v55  ;;  %v3855_v48 = vcombine.high %v3847_v12, %v3847_v12  ;;  %v4771_v45 = vrot.slane %v3847_v12, 9  ;;  %3721 = vst.msk [vmem:[%s5600_s14 + $0x78] sm:$0xff] %vm736_vm4, %v3705_v8 }
 0x37b   : > { %v3703_v51 = vmax.f32 %v3687_v29, 0.0 }
 0x37c   : > { %v3856_v3 = vcombine.high %v3854_v5, %v3854_v5  ;;  %v4772_v7 = vrot.slane %v3855_v48, 9  ;;  %v4773_v46 = vrot.slane %v3854_v5, 9  ;;  %v4026_v53 = vmax.f32 %v3847_v12, %v4771_v45 }
 0x37d   : > { %3719 = vst.msk [vmem:[%s5600_s14 + $0x68] sm:$0xff] %vm736_vm4, %v3703_v51  ;;  %v3729_v32 = vmax.f32 %v3703_v51, %v3705_v8 }
 0x37e   : > { %v4774_v34 = vrot.slane %v3856_v3, 9  ;;  %v4027_v54 = vmax.f32 %v3855_v48, %v4772_v7  ;;  %v4028_v20 = vmax.f32 %v3854_v5, %v4773_v46  ;;  %v4165_v28 = vrot.slane %v4026_v53, %v6715_v38 }
 0x37f   : > { %v3857_v9 = vcombine.high %v3729_v32, %v3729_v32  ;;  %v3864_v44 = vrot.slane %v3729_v32, %v6713_v55 }
 0x380   : > { %v4029_v24 = vmax.f32 %v3856_v3, %v4774_v34  ;;  %v4169_v57 = vrot.slane %v4027_v54, %v6715_v38  ;;  %v4173_v0 = vrot.slane %v4028_v20, %v6715_v38 }
 0x381   : > { %v3871_v50 = vrot.slane %v3857_v9, %v6713_v55  ;;  %v3872_v27 = vcombine.high %v3864_v44, %v3864_v44  ;;  %v4775_v11 = vrot.slane %v3864_v44, 9 }
 0x382   : > { %v4177_v21 = vrot.slane %v4029_v24, %v6715_v38  ;;  %v4222_v22 = vsel %vm4194_vm15, %v4169_v57, %v4165_v28 }
 0x383   : > { %v4223_v14 = vsel %vm4196_vm0, %v4173_v0, %v4222_v22  ;;  %v3873_v2 = vcombine.high %v3871_v50, %v3871_v50  ;;  %v4776_v1 = vrot.slane %v3872_v27, 9  ;;  %v4777_v25 = vrot.slane %v3871_v50, 9 }
 0x384   : > { %v4030_v61 = vmax.f32 %v3864_v44, %v4775_v11  ;;  %v4224_v39 = vsel %vm4198_vm1, %v4177_v21, %v4223_v14 }
 0x385   : > { %v4778_v6 = vrot.slane %v3873_v2, 9  ;;  %v4031_v52 = vmax.f32 %v3872_v27, %v4776_v1  ;;  %v4032_v63 = vmax.f32 %v3871_v50, %v4777_v25 }
 0x386   : > { %v4181_v55 = vrot.slane %v4030_v61, %v6715_v38 }
 0x387   : > { %v4033_v60 = vmax.f32 %v3873_v2, %v4778_v6  ;;  %v4185_v18 = vrot.slane %v4031_v52, %v6715_v38  ;;  %v4189_v30 = vrot.slane %v4032_v63, %v6715_v38 }
 0x388   : > { %v4225_v37 = vsel %vm4200_vm2, %v4181_v55, %v4224_v39 }
 0x389   : > { %v4193_v56 = vrot.slane %v4033_v60, %v6715_v38  ;;  %v4226_v58 = vsel %vm4202_vm3, %v4185_v18, %v4225_v37 }
 0x38a   : > { %v4227_v26 = vsel %vm4204_vm5, %v4189_v30, %v4226_v58 }
 0x38b   : > { %v4228_v10 = vsel %vm4206_vm6, %v4193_v56, %v4227_v26 }
 0x38c   : > { %4236 = vst.msk [vmem:[%s5621_s18 + $0x18] sm:$0xff] %vm736_vm4, %v4228_v10 }
 0x38d PF: > { %s18_s28 = sadd.s32 1, %s5497_s28   ;;  %s6958_s24 = smov %s5489_s26 }
 0x38e   : > { %p15_p12 = scmp.ge.s32.totalorder %s18_s28, 6   ;;  %s6959_s25 = smov %s5493_s27 }
 0x38f   : > { %s6960_s26 = smov %s6963_s29  ;;  %s6961_s27 = smov %s6967_s30 }
 0x390   :  { %17 = sbr.rel (!%p15_p12) target bundleno = 3 (0x3), region = 104 }

</bundles_post_ra>
